<compile_context>
chip_gen: v6e
topology: v6e:2x2x1
jax: 0.10.0
libtpu: 0.0.40
codegen_flags: <defaults>
</compile_context>

<pallas_src>
import jax
import jax.numpy as jnp
from jax.experimental import pallas as pl
from jax.experimental.pallas import tpu as pltpu

LATENT_DIM = 2
H500 = 500
MDN_H = 50
COV_SCALE = 0.8

# Lane-padded sizes.
H_PAD = 512          # 500 -> 512
MDN_PAD = 64         # 50  -> 64
PI_W, MU_W, LOC_W = 276, 552, 276
SEG_PI = 384         # 276 -> 384  (multiple of 128)
SEG_MU = 640         # 552 -> 640  (multiple of 128)

# Column offsets of each head inside the fused (64, 3200) weight / output.
OFF_PI0 = 0
OFF_PI1 = OFF_PI0 + SEG_PI     # 384
OFF_PI2 = OFF_PI1 + SEG_PI     # 768
OFF_MU = OFF_PI2 + SEG_PI      # 1152
OFF_SIG = OFF_MU + SEG_MU      # 1792
OFF_LOC = OFF_SIG + SEG_MU     # 2432
OFF_CON = OFF_LOC + SEG_PI     # 2816
HEADS_PAD = OFF_CON + SEG_PI   # 3200


def _softplus(x):
    # numerically stable softplus = log1p(exp(-|x|)) + max(x, 0)
    return jnp.log1p(jnp.exp(-jnp.abs(x))) + jnp.maximum(x, 0.0)


def decoder_kernel(
    x_ref,
    w1_ref, b1_ref, w2_ref, b2_ref, w3_ref, b3_ref,
    wm_ref, bm_ref, wh_ref, bh_ref,
    out_ref,
):
    x = x_ref[...]                                               # (TB, 2)

    # fc1 (K=2): two VPU broadcast-FMAs instead of a full-depth MXU pass.
    h = jnp.tanh(x[:, 0:1] * w1_ref[0:1, :]
                 + x[:, 1:2] * w1_ref[1:2, :]
                 + b1_ref[...])

    # Trunk 512x512 matmuls on the MXU, f32 accumulation.
    h = jnp.tanh(jnp.dot(h, w2_ref[...], preferred_element_type=jnp.float32)
                 + b2_ref[...])
    h = jnp.tanh(jnp.dot(h, w3_ref[...], preferred_element_type=jnp.float32)
                 + b3_ref[...])

    # MDN trunk: padded fc lanes are sigmoid(0)=0.5, but the corresponding
    # rows of the fused head weight are zero so they contribute nothing.
    fc = jax.nn.sigmoid(
        jnp.dot(h, wm_ref[...], preferred_element_type=jnp.float32) + bm_ref[...])

    # Single fused head matmul: (TB, 64) @ (64, 3200).
    heads = jnp.dot(fc, wh_ref[...], preferred_element_type=jnp.float32) + bh_ref[...]

    # pi: softmax across the three lane-aligned component slabs.
    l0 = heads[:, OFF_PI0:OFF_PI0 + SEG_PI]
    l1 = heads[:, OFF_PI1:OFF_PI1 + SEG_PI]
    l2 = heads[:, OFF_PI2:OFF_PI2 + SEG_PI]
    m = jnp.maximum(jnp.maximum(l0, l1), l2)
    e0 = jnp.exp(l0 - m)
    e1 = jnp.exp(l1 - m)
    e2 = jnp.exp(l2 - m)
    # approx=True would offload to the EUP; kept exact so the result stays
    # within 1e-5 of the PyTorch/JAX reference.
    inv = pl.reciprocal(e0 + e1 + e2, approx=False)
    out_ref[:, OFF_PI0:OFF_PI0 + SEG_PI] = e0 * inv
    out_ref[:, OFF_PI1:OFF_PI1 + SEG_PI] = e1 * inv
    out_ref[:, OFF_PI2:OFF_PI2 + SEG_PI] = e2 * inv

    # mu / sigma / loc / concentration heads (all 128-aligned slabs).
    out_ref[:, OFF_MU:OFF_MU + SEG_MU] = heads[:, OFF_MU:OFF_MU + SEG_MU]
    out_ref[:, OFF_SIG:OFF_SIG + SEG_MU] = COV_SCALE * jax.nn.sigmoid(
        heads[:, OFF_SIG:OFF_SIG + SEG_MU])
    out_ref[:, OFF_LOC:OFF_LOC + SEG_PI] = heads[:, OFF_LOC:OFF_LOC + SEG_PI]
    out_ref[:, OFF_CON:OFF_CON + SEG_PI] = _softplus(
        heads[:, OFF_CON:OFF_CON + SEG_PI])


# ----------------------------------------------------------------------------
# Parameter construction / padding
# ----------------------------------------------------------------------------

def _round_up(n, m):
    return ((n + m - 1) // m) * m


def _pad_to(a, shape):
    out = jnp.zeros(shape, a.dtype)
    return out.at[tuple(slice(0, s) for s in a.shape)].set(a)


def init_linear(key, fan_in, fan_out):
    # PyTorch nn.Linear default init: U(-1/sqrt(fan_in), 1/sqrt(fan_in))
    kw, kb = jax.random.split(key)
    bound = 1.0 / (fan_in ** 0.5)
    w = jax.random.uniform(kw, (fan_in, fan_out), jnp.float32, -bound, bound)
    b = jax.random.uniform(kb, (1, fan_out), jnp.float32, -bound, bound)
    return w, b


def init_decoder_params(key):
    keys = jax.random.split(key, 9)
    p = {}
    p["w1"], p["b1"] = init_linear(keys[0], LATENT_DIM, H500)
    p["w2"], p["b2"] = init_linear(keys[1], H500, H500)
    p["w3"], p["b3"] = init_linear(keys[2], H500, H500)
    p["wm"], p["bm"] = init_linear(keys[3], H500, MDN_H)           # MDN.fc1
    p["wpi"], p["bpi"] = init_linear(keys[4], MDN_H, 828)          # MDN.fc_pi
    p["wmu"], p["bmu"] = init_linear(keys[5], MDN_H, 552)          # MDN.fc_mu
    p["wsig"], p["bsig"] = init_linear(keys[6], MDN_H, 552)        # MDN.fc_sigma
    p["wloc"], p["bloc"] = init_linear(keys[7], MDN_H, 276)        # MDN.fc_loc
    p["wcon"], p["bcon"] = init_linear(keys[8], MDN_H, 276)        # MDN.fc_concentration
    return p


def prepare_padded_params(p):
    """Zero-pad weights to lane-friendly shapes and fuse the MDN heads."""
    w1p = _pad_to(p["w1"], (LATENT_DIM, H_PAD))
    b1p = _pad_to(p["b1"], (1, H_PAD))
    w2p = _pad_to(p["w2"], (H_PAD, H_PAD))
    b2p = _pad_to(p["b2"], (1, H_PAD))
    w3p = _pad_to(p["w3"], (H_PAD, H_PAD))
    b3p = _pad_to(p["b3"], (1, H_PAD))
    wmp = _pad_to(p["wm"], (H_PAD, MDN_PAD))
    bmp = _pad_to(p["bm"], (1, MDN_PAD))

    # Fused head weight (64, 3200): rows 50:64 stay zero (they multiply fc's
    # 0.5 padded lanes), padded columns of each head segment stay zero too.
    wh = jnp.zeros((MDN_PAD, HEADS_PAD), jnp.float32)
    bh = jnp.zeros((1, HEADS_PAD), jnp.float32)

    def put(wh, bh, w, b, off):
        wh = wh.at[: w.shape[0], off:off + w.shape[1]].set(w)
        bh = bh.at[:, off:off + b.shape[1]].set(b)
        return wh, bh

    # torch's .view(-1, 276, 3): component c of row r is flat column 3*r + c,
    # i.e. columns c::3 of the 828-wide fc_pi output.
    for c, off in zip(range(3), (OFF_PI0, OFF_PI1, OFF_PI2)):
        wh, bh = put(wh, bh, p["wpi"][:, c::3], p["bpi"][:, c::3], off)
    wh, bh = put(wh, bh, p["wmu"], p["bmu"], OFF_MU)
    wh, bh = put(wh, bh, p["wsig"], p["bsig"], OFF_SIG)
    wh, bh = put(wh, bh, p["wloc"], p["bloc"], OFF_LOC)
    wh, bh = put(wh, bh, p["wcon"], p["bcon"], OFF_CON)

    return (w1p, b1p, w2p, b2p, w3p, b3p, wmp, bmp, wh, bh)


# ----------------------------------------------------------------------------
# Wrapper
# ----------------------------------------------------------------------------

def decoder_forward(x, p, *, block_b=256):
    B = x.shape[0]
    f32 = jnp.float32
    x = x.astype(f32)

    weights = prepare_padded_params(p)

    # Batch tiling: TB rows per grid step (MXU-height-sized at large B,
    # sublane-multiple at small B); pad B up to a multiple of TB.
    TB = min(block_b, _round_up(B, 8))
    Bp = _round_up(B, TB)
    if Bp != B:
        x = jnp.pad(x, ((0, Bp - B), (0, 0)))
    n_blocks = Bp // TB

    # x / output tiled over the batch; weights/biases resident (constant index).
    in_specs = [pl.BlockSpec((TB, LATENT_DIM), lambda i: (i, 0))]
    in_specs += [pl.BlockSpec(w.shape, lambda i: (0, 0)) for w in weights]
    out_spec = pl.BlockSpec((TB, HEADS_PAD), lambda i: (i, 0))

    # TODO(synk): optionally run the 512x512 trunk matmuls in bf16 (x3 MXU
    # throughput on v6e/v7x) — needs relaxed output tolerance, so kept f32.
    weight_elems = sum(int(w.size) for w in weights)
    flops = 2 * Bp * (LATENT_DIM * H_PAD + 2 * H_PAD * H_PAD
                      + H_PAD * MDN_PAD + MDN_PAD * HEADS_PAD)
    transcendentals = Bp * (3 * H_PAD + MDN_PAD + 3 * SEG_PI + SEG_MU + 2 * SEG_PI)
    bytes_accessed = 4 * (Bp * LATENT_DIM + weight_elems + Bp * HEADS_PAD)

    out = pl.pallas_call(
        decoder_kernel,
        out_shape=jax.ShapeDtypeStruct((Bp, HEADS_PAD), f32),
        grid=(n_blocks,),
        in_specs=in_specs,
        out_specs=out_spec,
        compiler_params=pltpu.CompilerParams(
            dimension_semantics=("parallel",),
            # ~3 MiB resident weights + double-buffered batch tiles; well under
            # physical VMEM on v5e/v6e (128 MiB) and v7x (64 MiB).
            vmem_limit_bytes=32 << 20,
        ),
        cost_estimate=pl.CostEstimate(
            flops=flops,
            transcendentals=transcendentals,
            bytes_accessed=bytes_accessed,
        ),
    )(x, *weights)

    # Slice the lane-padded fused output back to the PyTorch .view(...) layouts.
    pi = jnp.stack(
        [out[:B, OFF_PI0:OFF_PI0 + PI_W],
         out[:B, OFF_PI1:OFF_PI1 + PI_W],
         out[:B, OFF_PI2:OFF_PI2 + PI_W]],
        axis=-1)                                            # (B, 276, 3)
    mu = out[:B, OFF_MU:OFF_MU + MU_W].reshape(B, 184, 3)
    sigma = out[:B, OFF_SIG:OFF_SIG + MU_W].reshape(B, 184, 3)
    loc = out[:B, OFF_LOC:OFF_LOC + LOC_W].reshape(B, 92, 3)
    conc = out[:B, OFF_CON:OFF_CON + LOC_W].reshape(B, 92, 3)
    return pi, mu, sigma, loc, conc


def decoder_reference(x, p):
    # Pure-JAX reference matching PyTorch semantics exactly.
    h = jnp.tanh(x @ p["w1"] + p["b1"])
    h = jnp.tanh(h @ p["w2"] + p["b2"])
    h = jnp.tanh(h @ p["w3"] + p["b3"])
    fc = jax.nn.sigmoid(h @ p["wm"] + p["bm"])
    B = x.shape[0]
    pi = jax.nn.softmax((fc @ p["wpi"] + p["bpi"]).reshape(B, 276, 3), axis=-1)
    mu = (fc @ p["wmu"] + p["bmu"]).reshape(B, 184, 3)
    sigma = (COV_SCALE * jax.nn.sigmoid(fc @ p["wsig"] + p["bsig"])).reshape(B, 184, 3)
    loc = (fc @ p["wloc"] + p["bloc"]).reshape(B, 92, 3)
    conc = jax.nn.softplus(fc @ p["wcon"] + p["bcon"]).reshape(B, 92, 3)
    return pi, mu, sigma, loc, conc


if __name__ == "__main__":
    key = jax.random.PRNGKey(0)
    kp, kx = jax.random.split(key)
    params = init_decoder_params(kp)

    B = 8
    x = jax.random.normal(kx, (B, LATENT_DIM), jnp.float32)

    outs = decoder_forward(x, params)
    outs = jax.block_until_ready(outs)

    refs = decoder_reference(x, params)
    names = ("pi", "mu", "sigma", "loc", "conc")
    for name, o, r in zip(names, outs, refs):
        assert o.shape == r.shape, (name, o.shape, r.shape)
        assert jnp.allclose(o, r, atol=1e-5, rtol=1e-5), name

    print("KERNEL_OK")
</pallas_src>

<mosaic_0001>
module attributes {stable_mosaic.version = 11 : i64} {
  func.func @decoder_kernel(%arg0: i32, %arg1: memref<8x2xf32, #tpu.memory_space<vmem>>, %arg2: memref<2x512xf32, #tpu.memory_space<vmem>>, %arg3: memref<1x512xf32, #tpu.memory_space<vmem>>, %arg4: memref<512x512xf32, #tpu.memory_space<vmem>>, %arg5: memref<1x512xf32, #tpu.memory_space<vmem>>, %arg6: memref<512x512xf32, #tpu.memory_space<vmem>>, %arg7: memref<1x512xf32, #tpu.memory_space<vmem>>, %arg8: memref<512x64xf32, #tpu.memory_space<vmem>>, %arg9: memref<1x64xf32, #tpu.memory_space<vmem>>, %arg10: memref<64x3200xf32, #tpu.memory_space<vmem>>, %arg11: memref<1x3200xf32, #tpu.memory_space<vmem>>, %arg12: memref<8x3200xf32, #tpu.memory_space<vmem>>) attributes {dimension_semantics = [#tpu.dimension_semantics<parallel>], iteration_bounds = array<i64: 1>, scalar_prefetch = 0 : i64, scratch_operands = 0 : i64, tpu.core_type = #tpu.core_type<tc>, window_params = [{transform_indices = @transform_0, window_bounds = array<i64: 8, 2>}, {pipeline_mode = #tpu.pipeline_mode<synchronous>, transform_indices = @transform_1, window_bounds = array<i64: 2, 512>}, {pipeline_mode = #tpu.pipeline_mode<synchronous>, transform_indices = @transform_2, window_bounds = array<i64: 1, 512>}, {pipeline_mode = #tpu.pipeline_mode<synchronous>, transform_indices = @transform_3, window_bounds = array<i64: 512, 512>}, {pipeline_mode = #tpu.pipeline_mode<synchronous>, transform_indices = @transform_4, window_bounds = array<i64: 1, 512>}, {pipeline_mode = #tpu.pipeline_mode<synchronous>, transform_indices = @transform_5, window_bounds = array<i64: 512, 512>}, {pipeline_mode = #tpu.pipeline_mode<synchronous>, transform_indices = @transform_6, window_bounds = array<i64: 1, 512>}, {pipeline_mode = #tpu.pipeline_mode<synchronous>, transform_indices = @transform_7, window_bounds = array<i64: 512, 64>}, {pipeline_mode = #tpu.pipeline_mode<synchronous>, transform_indices = @transform_8, window_bounds = array<i64: 1, 64>}, {pipeline_mode = #tpu.pipeline_mode<synchronous>, transform_indices = @transform_9, window_bounds = array<i64: 64, 3200>}, {pipeline_mode = #tpu.pipeline_mode<synchronous>, transform_indices = @transform_10, window_bounds = array<i64: 1, 3200>}, {transform_indices = @transform_11, window_bounds = array<i64: 8, 3200>}]} {
    %c0 = arith.constant 0 : index
    %c0_0 = arith.constant 0 : index
    %0 = vector.load %arg1[%c0, %c0_0] : memref<8x2xf32, #tpu.memory_space<vmem>>, vector<8x2xf32>
    %1 = vector.extract_strided_slice %0 {offsets = [0, 0], sizes = [8, 1], strides = [1, 1]} : vector<8x2xf32> to vector<8x1xf32>
    %c0_1 = arith.constant 0 : index
    %c0_2 = arith.constant 0 : index
    %2 = vector.load %arg2[%c0_1, %c0_2] : memref<2x512xf32, #tpu.memory_space<vmem>>, vector<1x512xf32>
    %3 = vector.broadcast %1 : vector<8x1xf32> to vector<8x512xf32>
    %4 = vector.broadcast %2 : vector<1x512xf32> to vector<8x512xf32>
    %5 = arith.mulf %3, %4 : vector<8x512xf32>
    %6 = vector.extract_strided_slice %0 {offsets = [0, 1], sizes = [8, 1], strides = [1, 1]} : vector<8x2xf32> to vector<8x1xf32>
    %c1 = arith.constant 1 : index
    %c0_3 = arith.constant 0 : index
    %7 = vector.load %arg2[%c1, %c0_3] : memref<2x512xf32, #tpu.memory_space<vmem>>, vector<1x512xf32>
    %8 = vector.broadcast %6 : vector<8x1xf32> to vector<8x512xf32>
    %9 = vector.broadcast %7 : vector<1x512xf32> to vector<8x512xf32>
    %10 = arith.mulf %8, %9 : vector<8x512xf32>
    %11 = arith.addf %5, %10 : vector<8x512xf32>
    %c0_4 = arith.constant 0 : index
    %c0_5 = arith.constant 0 : index
    %12 = vector.load %arg3[%c0_4, %c0_5] : memref<1x512xf32, #tpu.memory_space<vmem>>, vector<1x512xf32>
    %13 = vector.broadcast %12 : vector<1x512xf32> to vector<8x512xf32>
    %14 = arith.addf %11, %13 : vector<8x512xf32>
    %15 = math.tanh %14 : vector<8x512xf32>
    %c0_6 = arith.constant 0 : index
    %c0_7 = arith.constant 0 : index
    %16 = vector.load %arg4[%c0_6, %c0_7] : memref<512x512xf32, #tpu.memory_space<vmem>>, vector<512x512xf32>
    %cst = arith.constant dense<0.000000e+00> : vector<8x512xf32>
    %17 = tpu.matmul %15, %16, %cst {dimension_numbers = #tpu.dot_dimension_numbers<[1], [0], [0], [1], [0, 0, 1, 1], [], []>} : vector<8x512xf32>, vector<512x512xf32>, vector<8x512xf32> -> vector<8x512xf32>
    %c0_8 = arith.constant 0 : index
    %c0_9 = arith.constant 0 : index
    %18 = vector.load %arg5[%c0_8, %c0_9] : memref<1x512xf32, #tpu.memory_space<vmem>>, vector<1x512xf32>
    %19 = vector.broadcast %18 : vector<1x512xf32> to vector<8x512xf32>
    %20 = arith.addf %17, %19 : vector<8x512xf32>
    %21 = math.tanh %20 : vector<8x512xf32>
    %c0_10 = arith.constant 0 : index
    %c0_11 = arith.constant 0 : index
    %22 = vector.load %arg6[%c0_10, %c0_11] : memref<512x512xf32, #tpu.memory_space<vmem>>, vector<512x512xf32>
    %cst_12 = arith.constant dense<0.000000e+00> : vector<8x512xf32>
    %23 = tpu.matmul %21, %22, %cst_12 {dimension_numbers = #tpu.dot_dimension_numbers<[1], [0], [0], [1], [0, 0, 1, 1], [], []>} : vector<8x512xf32>, vector<512x512xf32>, vector<8x512xf32> -> vector<8x512xf32>
    %c0_13 = arith.constant 0 : index
    %c0_14 = arith.constant 0 : index
    %24 = vector.load %arg7[%c0_13, %c0_14] : memref<1x512xf32, #tpu.memory_space<vmem>>, vector<1x512xf32>
    %25 = vector.broadcast %24 : vector<1x512xf32> to vector<8x512xf32>
    %26 = arith.addf %23, %25 : vector<8x512xf32>
    %27 = math.tanh %26 : vector<8x512xf32>
    %c0_15 = arith.constant 0 : index
    %c0_16 = arith.constant 0 : index
    %28 = vector.load %arg8[%c0_15, %c0_16] : memref<512x64xf32, #tpu.memory_space<vmem>>, vector<512x64xf32>
    %cst_17 = arith.constant dense<0.000000e+00> : vector<8x64xf32>
    %29 = tpu.matmul %27, %28, %cst_17 {dimension_numbers = #tpu.dot_dimension_numbers<[1], [0], [0], [1], [0, 0, 1, 1], [], []>} : vector<8x512xf32>, vector<512x64xf32>, vector<8x64xf32> -> vector<8x64xf32>
    %c0_18 = arith.constant 0 : index
    %c0_19 = arith.constant 0 : index
    %30 = vector.load %arg9[%c0_18, %c0_19] : memref<1x64xf32, #tpu.memory_space<vmem>>, vector<1x64xf32>
    %31 = vector.broadcast %30 : vector<1x64xf32> to vector<8x64xf32>
    %32 = arith.addf %29, %31 : vector<8x64xf32>
    %33 = arith.negf %32 : vector<8x64xf32>
    %34 = math.exp %33 : vector<8x64xf32>
    %cst_20 = arith.constant 1.000000e+00 : f32
    %35 = vector.broadcast %cst_20 : f32 to vector<8x64xf32>
    %36 = arith.addf %35, %34 : vector<8x64xf32>
    %37 = arith.divf %35, %36 : vector<8x64xf32>
    %c0_21 = arith.constant 0 : index
    %c0_22 = arith.constant 0 : index
    %38 = vector.load %arg10[%c0_21, %c0_22] : memref<64x3200xf32, #tpu.memory_space<vmem>>, vector<64x3200xf32>
    %cst_23 = arith.constant dense<0.000000e+00> : vector<8x3200xf32>
    %39 = tpu.matmul %37, %38, %cst_23 {dimension_numbers = #tpu.dot_dimension_numbers<[1], [0], [0], [1], [0, 0, 1, 1], [], []>} : vector<8x64xf32>, vector<64x3200xf32>, vector<8x3200xf32> -> vector<8x3200xf32>
    %c0_24 = arith.constant 0 : index
    %c0_25 = arith.constant 0 : index
    %40 = vector.load %arg11[%c0_24, %c0_25] : memref<1x3200xf32, #tpu.memory_space<vmem>>, vector<1x3200xf32>
    %41 = vector.broadcast %40 : vector<1x3200xf32> to vector<8x3200xf32>
    %42 = arith.addf %39, %41 : vector<8x3200xf32>
    %43 = vector.extract_strided_slice %42 {offsets = [0, 0], sizes = [8, 384], strides = [1, 1]} : vector<8x3200xf32> to vector<8x384xf32>
    %44 = vector.extract_strided_slice %42 {offsets = [0, 384], sizes = [8, 384], strides = [1, 1]} : vector<8x3200xf32> to vector<8x384xf32>
    %45 = vector.extract_strided_slice %42 {offsets = [0, 768], sizes = [8, 384], strides = [1, 1]} : vector<8x3200xf32> to vector<8x384xf32>
    %46 = arith.maximumf %43, %44 : vector<8x384xf32>
    %47 = arith.maximumf %46, %45 : vector<8x384xf32>
    %48 = arith.subf %43, %47 : vector<8x384xf32>
    %49 = math.exp %48 : vector<8x384xf32>
    %50 = arith.subf %44, %47 : vector<8x384xf32>
    %51 = math.exp %50 : vector<8x384xf32>
    %52 = arith.subf %45, %47 : vector<8x384xf32>
    %53 = math.exp %52 : vector<8x384xf32>
    %54 = arith.addf %49, %51 : vector<8x384xf32>
    %55 = arith.addf %54, %53 : vector<8x384xf32>
    %56 = tpu.reciprocal %55 : vector<8x384xf32> -> vector<8x384xf32>
    %57 = arith.mulf %49, %56 : vector<8x384xf32>
    %c0_26 = arith.constant 0 : index
    %c0_27 = arith.constant 0 : index
    %58 = vector.load %arg12[%c0_26, %c0_27] : memref<8x3200xf32, #tpu.memory_space<vmem>>, vector<8x384xf32>
    tpu.vector_store %arg12[%c0_26, %c0_27], %57 {strides = array<i32>} : memref<8x3200xf32, #tpu.memory_space<vmem>>, vector<8x384xf32>,
    %59 = arith.mulf %51, %56 : vector<8x384xf32>
    %c0_28 = arith.constant 0 : index
    %c384 = arith.constant 384 : index
    %60 = vector.load %arg12[%c0_28, %c384] : memref<8x3200xf32, #tpu.memory_space<vmem>>, vector<8x384xf32>
    tpu.vector_store %arg12[%c0_28, %c384], %59 {strides = array<i32>} : memref<8x3200xf32, #tpu.memory_space<vmem>>, vector<8x384xf32>,
    %61 = arith.mulf %53, %56 : vector<8x384xf32>
    %c0_29 = arith.constant 0 : index
    %c768 = arith.constant 768 : index
    %62 = vector.load %arg12[%c0_29, %c768] : memref<8x3200xf32, #tpu.memory_space<vmem>>, vector<8x384xf32>
    tpu.vector_store %arg12[%c0_29, %c768], %61 {strides = array<i32>} : memref<8x3200xf32, #tpu.memory_space<vmem>>, vector<8x384xf32>,
    %63 = vector.extract_strided_slice %42 {offsets = [0, 1152], sizes = [8, 640], strides = [1, 1]} : vector<8x3200xf32> to vector<8x640xf32>
    %c0_30 = arith.constant 0 : index
    %c1152 = arith.constant 1152 : index
    %64 = vector.load %arg12[%c0_30, %c1152] : memref<8x3200xf32, #tpu.memory_space<vmem>>, vector<8x640xf32>
    tpu.vector_store %arg12[%c0_30, %c1152], %63 {strides = array<i32>} : memref<8x3200xf32, #tpu.memory_space<vmem>>, vector<8x640xf32>,
    %65 = vector.extract_strided_slice %42 {offsets = [0, 1792], sizes = [8, 640], strides = [1, 1]} : vector<8x3200xf32> to vector<8x640xf32>
    %66 = arith.negf %65 : vector<8x640xf32>
    %67 = math.exp %66 : vector<8x640xf32>
    %cst_31 = arith.constant 1.000000e+00 : f32
    %68 = vector.broadcast %cst_31 : f32 to vector<8x640xf32>
    %69 = arith.addf %68, %67 : vector<8x640xf32>
    %70 = arith.divf %68, %69 : vector<8x640xf32>
    %cst_32 = arith.constant 8.000000e-01 : f32
    %71 = vector.broadcast %cst_32 : f32 to vector<8x640xf32>
    %72 = arith.mulf %71, %70 : vector<8x640xf32>
    %c0_33 = arith.constant 0 : index
    %c1792 = arith.constant 1792 : index
    %73 = vector.load %arg12[%c0_33, %c1792] : memref<8x3200xf32, #tpu.memory_space<vmem>>, vector<8x640xf32>
    tpu.vector_store %arg12[%c0_33, %c1792], %72 {strides = array<i32>} : memref<8x3200xf32, #tpu.memory_space<vmem>>, vector<8x640xf32>,
    %74 = vector.extract_strided_slice %42 {offsets = [0, 2432], sizes = [8, 384], strides = [1, 1]} : vector<8x3200xf32> to vector<8x384xf32>
    %c0_34 = arith.constant 0 : index
    %c2432 = arith.constant 2432 : index
    %75 = vector.load %arg12[%c0_34, %c2432] : memref<8x3200xf32, #tpu.memory_space<vmem>>, vector<8x384xf32>
    tpu.vector_store %arg12[%c0_34, %c2432], %74 {strides = array<i32>} : memref<8x3200xf32, #tpu.memory_space<vmem>>, vector<8x384xf32>,
    %76 = vector.extract_strided_slice %42 {offsets = [0, 2816], sizes = [8, 384], strides = [1, 1]} : vector<8x3200xf32> to vector<8x384xf32>
    %77 = math.absf %76 : vector<8x384xf32>
    %cst_35 = arith.constant 0.000000e+00 : f32
    %78 = vector.broadcast %cst_35 : f32 to vector<8x384xf32>
    %79 = arith.subf %78, %77 : vector<8x384xf32>
    %80 = math.exp %79 : vector<8x384xf32>
    %81 = math.log1p %80 : vector<8x384xf32>
    %cst_36 = arith.constant 0.000000e+00 : f32
    %82 = vector.broadcast %cst_36 : f32 to vector<8x384xf32>
    %83 = arith.maximumf %76, %82 : vector<8x384xf32>
    %84 = arith.addf %81, %83 : vector<8x384xf32>
    %c0_37 = arith.constant 0 : index
    %c2816 = arith.constant 2816 : index
    %85 = vector.load %arg12[%c0_37, %c2816] : memref<8x3200xf32, #tpu.memory_space<vmem>>, vector<8x384xf32>
    tpu.vector_store %arg12[%c0_37, %c2816], %84 {strides = array<i32>} : memref<8x3200xf32, #tpu.memory_space<vmem>>, vector<8x384xf32>,
    return
  }
  func.func @transform_0(%arg0: i32) -> (i32, i32) {
    %c0_i32 = arith.constant 0 : i32
    %c0_i32_0 = arith.constant 0 : i32
    return %arg0, %c0_i32 : i32, i32
  }
  func.func @transform_1(%arg0: i32) -> (i32, i32) {
    %c0_i32 = arith.constant 0 : i32
    %c0_i32_0 = arith.constant 0 : i32
    %c0_i32_1 = arith.constant 0 : i32
    return %c0_i32, %c0_i32_0 : i32, i32
  }
  func.func @transform_2(%arg0: i32) -> (i32, i32) {
    %c0_i32 = arith.constant 0 : i32
    %c0_i32_0 = arith.constant 0 : i32
    %c0_i32_1 = arith.constant 0 : i32
    return %c0_i32, %c0_i32_0 : i32, i32
  }
  func.func @transform_3(%arg0: i32) -> (i32, i32) {
    %c0_i32 = arith.constant 0 : i32
    %c0_i32_0 = arith.constant 0 : i32
    %c0_i32_1 = arith.constant 0 : i32
    return %c0_i32, %c0_i32_0 : i32, i32
  }
  func.func @transform_4(%arg0: i32) -> (i32, i32) {
    %c0_i32 = arith.constant 0 : i32
    %c0_i32_0 = arith.constant 0 : i32
    %c0_i32_1 = arith.constant 0 : i32
    return %c0_i32, %c0_i32_0 : i32, i32
  }
  func.func @transform_5(%arg0: i32) -> (i32, i32) {
    %c0_i32 = arith.constant 0 : i32
    %c0_i32_0 = arith.constant 0 : i32
    %c0_i32_1 = arith.constant 0 : i32
    return %c0_i32, %c0_i32_0 : i32, i32
  }
  func.func @transform_6(%arg0: i32) -> (i32, i32) {
    %c0_i32 = arith.constant 0 : i32
    %c0_i32_0 = arith.constant 0 : i32
    %c0_i32_1 = arith.constant 0 : i32
    return %c0_i32, %c0_i32_0 : i32, i32
  }
  func.func @transform_7(%arg0: i32) -> (i32, i32) {
    %c0_i32 = arith.constant 0 : i32
    %c0_i32_0 = arith.constant 0 : i32
    %c0_i32_1 = arith.constant 0 : i32
    return %c0_i32, %c0_i32_0 : i32, i32
  }
  func.func @transform_8(%arg0: i32) -> (i32, i32) {
    %c0_i32 = arith.constant 0 : i32
    %c0_i32_0 = arith.constant 0 : i32
    %c0_i32_1 = arith.constant 0 : i32
    return %c0_i32, %c0_i32_0 : i32, i32
  }
  func.func @transform_9(%arg0: i32) -> (i32, i32) {
    %c0_i32 = arith.constant 0 : i32
    %c0_i32_0 = arith.constant 0 : i32
    %c0_i32_1 = arith.constant 0 : i32
    return %c0_i32, %c0_i32_0 : i32, i32
  }
  func.func @transform_10(%arg0: i32) -> (i32, i32) {
    %c0_i32 = arith.constant 0 : i32
    %c0_i32_0 = arith.constant 0 : i32
    %c0_i32_1 = arith.constant 0 : i32
    return %c0_i32, %c0_i32_0 : i32, i32
  }
  func.func @transform_11(%arg0: i32) -> (i32, i32) {
    %c0_i32 = arith.constant 0 : i32
    %c0_i32_0 = arith.constant 0 : i32
    return %arg0, %c0_i32 : i32, i32
  }
}

</mosaic_0001>

<bundles_post_ra>
// kernel: tpu_custom_call.1
= control target key start
LH: loop header
LB: loop body
LE: loop exit
PB: predicated region body
PF: predicated region fallthrough
CT: control target
= control target key end

     0   :  { %16 = vsyncpa [#allocation3], 0  ;;  %s3715_s0 = inlined_call_operand.vmem [shape: f32[8,2], index: 0, kind: input, shape index: {}]   ;;  %s3716_s1 = inlined_call_operand.vmem [shape: f32[2,512], index: 1, kind: input, shape index: {}]   ;;  %s3717_s2 = inlined_call_operand.vmem [shape: f32[1,512], index: 2, kind: input, shape index: {}]   ;;  %s3718_s3 = inlined_call_operand.hbm [shape: f32[512,512], index: 3, kind: input, shape index: {}]   ;;  %s3719_s4 = inlined_call_operand.vmem [shape: f32[1,512], index: 4, kind: input, shape index: {}]   ;;  %s3720_s5 = inlined_call_operand.hbm [shape: f32[512,512], index: 5, kind: input, shape index: {}]   ;;  %s3721_s6 = inlined_call_operand.vmem [shape: f32[1,512], index: 6, kind: input, shape index: {}]   ;;  %s3722_s7 = inlined_call_operand.vmem [shape: f32[512,64], index: 7, kind: input, shape index: {}]   ;;  %s3723_s8 = inlined_call_operand.vmem [shape: f32[1,64], index: 8, kind: input, shape index: {}]   ;;  %s3724_s9 = inlined_call_operand.hbm [shape: f32[64,3200], index: 9, kind: input, shape index: {}]   ;;  %s3725_s10 = inlined_call_operand.vmem [shape: f32[1,3200], index: 10, kind: input, shape index: {}]   ;;  %s3726_s11 = inlined_call_operand.hbm [shape: f32[8,3200], index: 11, kind: output, shape index: {}]  }
   0x1   :  { %17 = vsyncpa [#allocation6], 0 }
   0x2   :  { %18 = vsyncpa [#allocation4], 0  ;;  %s3261_s17 = smov [#allocation5]   ;;  %s3262_s19 = smov [#allocation2]  }
   0x3   :  { %s44_s18 = sshll.u32 %s3261_s17, 4  ;;  %s30_s20 = sshll.u32 %s3262_s19, 4  ;;  %s45_s18 = int_to_ptr.vmem [resolvable:$true] %s44_s18  ;;  %s31_s20 = int_to_ptr.vmem [resolvable:$true] %s30_s20 }
   0x4   :  { %s3183_s21 = scalar_lea.vmem %s45_s18, 32768  ;;  %p3188_p1 = scmp.lt.s32.totalorder %s45_s18, %s45_s18 }
   0x5   :  { %p3184_p0 = scmp.ne.s32.totalorder %s45_s18, %s3183_s21  ;;  %p3189_p2 = scmp.lt.s32.totalorder %s3183_s21, %s3183_s21 }
   0x7   :  { %p3190_p3 = por %p3189_p2, %p3188_p1 }
   0x9   :  { %p3191_p4 = pnand %p3190_p3, %p3184_p0 }
   0xb   :  { %3194 = shalt.err (!%p3191_p4)
}
   0xc   :  { %s3263_s22 = smov 512   ;;  %s3264_s23 = smov 32  }
   0xd   :  { %50 = dma.hbm_to_vmem [thread:$0]  %s3720_s5, 32768, %s45_s18, [#allocation6], %s3263_s22, %s3263_s22, %s3264_s23  }
   0xe   :  { %s3203_s26 = scalar_lea.vmem %s31_s20, 32768  ;;  %p3208_p6 = scmp.lt.s32.totalorder %s31_s20, %s31_s20 }
   0xf   :  { %p3204_p5 = scmp.ne.s32.totalorder %s31_s20, %s3203_s26  ;;  %p3209_p7 = scmp.lt.s32.totalorder %s3203_s26, %s3203_s26 }
  0x11   :  { %p3210_p8 = por %p3209_p7, %p3208_p6 }
  0x13   :  { %p3211_p9 = pnand %p3210_p8, %p3204_p5 }
  0x15   :  { %3214 = shalt.err (!%p3211_p9)
}
  0x16   :  { %36 = dma.hbm_to_vmem [thread:$0]  %s3718_s3, 32768, %s31_s20, [#allocation3], %s3263_s22, %s3263_s22, %s3264_s23  }
  0x17   :  { %s3265_s29 = smov [#allocation7]  }
  0x18   :  { %s62_s30 = sshll.u32 %s3265_s29, 4  ;;  %s63_s30 = int_to_ptr.vmem [resolvable:$true] %s62_s30 }
  0x19   :  { %s3223_s12 = scalar_lea.vmem %s63_s30, 25600  ;;  %p3228_p11 = scmp.lt.s32.totalorder %s63_s30, %s63_s30 }
  0x1a   :  { %p3224_p10 = scmp.ne.s32.totalorder %s63_s30, %s3223_s12  ;;  %p3229_p12 = scmp.lt.s32.totalorder %s3223_s12, %s3223_s12 }
  0x1c   :  { %p3230_p13 = por %p3229_p12, %p3228_p11 }
  0x1e   :  { %p3231_p0 = pnand %p3230_p13, %p3224_p10 }
  0x20   :  { %3234 = shalt.err (!%p3231_p0)
}
  0x21   :  { %s3266_s5 = smov 3200   ;;  %s3267_s13 = smov 200  }
  0x22   :  { %68 = dma.hbm_to_vmem [thread:$0]  %s3724_s9, 25600, %s63_s30, [#allocation6], %s3266_s5, %s3266_s5, %s3267_s13  }
  0x23   :  { %3255 = dma.done.wait [#allocation3], 32768  }
  0x24   :  { %3256 = vsyncadd [#allocation3], 4294934528 }
  0x25   :  { %3257 = dma.done.wait [#allocation6], 58368  }
  0x26   :  { %3258 = vsyncadd [#allocation6], 4294908928  ;;  %v3268_v0 = vmov 0   ;;  %v80_v1 = vld [vmem:[%s3715_s0] sm:$0xff]  ;;  %v238_v2 = vld [vmem:[#allocation2 + $0x1e8] sm:$0xff]  ;;  %v3269_v13 = vmov 1  }
  0x27   :  { %3089 = vset.pattern.permute.xlu0 %v3268_v0  ;;  %v366_v3 = vld [vmem:[#allocation2 + $0x5e8] sm:$0xff]  ;;  %455 = vmatprep.subr.mxu0 %v238_v2  ;;  %v237_v4 = vld [vmem:[#allocation2 + $0x1e0] sm:$0xff]  ;;  %vm1859_vm0 = vcmask 523264   ;;  %vm3271_vm1 = vmmov 0  }
  0x28   :  { %84 = vperm.xlu0 %3089, %v80_v1   ;;  %v365_v5 = vld [vmem:[#allocation2 + $0x5e0] sm:$0xff]  ;;  %v234_v6 = vld [vmem:[#allocation2 + $0x1c8] sm:$0xff]  ;;  %526 = vmatprep.subr.mxu1 %v366_v3 }
  0x29   :  { %456 = vmatpush1.msra.mxu0 %v237_v4  ;;  %v362_v7 = vld [vmem:[#allocation2 + $0x5c8] sm:$0xff]  ;;  %v233_v8 = vld [vmem:[#allocation2 + $0x1c0] sm:$0xff]  ;;  %527 = vmatpush1.msra.mxu1 %v365_v5 }
  0x2a   :  { %v361_v9 = vld [vmem:[#allocation2 + $0x5c0] sm:$0xff]  ;;  %457 = vmatprep.subr.mxu0 %v234_v6  ;;  %v230_v10 = vld [vmem:[#allocation2 + $0x1a8] sm:$0xff]  ;;  %528 = vmatprep.subr.mxu1 %v362_v7 }
  0x2b   :  { %458 = vmatpush1.msra.mxu0 %v233_v8  ;;  %v358_v11 = vld [vmem:[#allocation2 + $0x5a8] sm:$0xff]  ;;  %v229_v12 = vld [vmem:[#allocation2 + $0x1a0] sm:$0xff]  ;;  %529 = vmatpush1.msra.mxu1 %v361_v9 }
  0x2c   :  { %3090 = vset.pattern.permute.xlu0 %v3269_v13  ;;  %v357_v14 = vld [vmem:[#allocation2 + $0x5a0] sm:$0xff]  ;;  %v226_v15 = vld [vmem:[#allocation2 + $0x188] sm:$0xff]  ;;  %459 = vmatprep.subr.mxu0 %v230_v10 }
  0x2d   :  { %115 = vperm.xlu0 %3090, %v80_v1   ;;  %v354_v16 = vld [vmem:[#allocation2 + $0x588] sm:$0xff]  ;;  %v225_v17 = vld [vmem:[#allocation2 + $0x180] sm:$0xff]  ;;  %530 = vmatprep.subr.mxu1 %v358_v11 }
  0x2e   :  { %460 = vmatpush1.msra.mxu0 %v229_v12  ;;  %v353_v18 = vld [vmem:[#allocation2 + $0x580] sm:$0xff]  ;;  %v222_v19 = vld [vmem:[#allocation2 + $0x168] sm:$0xff]  ;;  %531 = vmatpush1.msra.mxu1 %v357_v14 }
  0x2f   :  { %461 = vmatprep.subr.mxu0 %v226_v15  ;;  %v350_v20 = vld [vmem:[#allocation2 + $0x568] sm:$0xff]  ;;  %v221_v21 = vld [vmem:[#allocation2 + $0x160] sm:$0xff]  ;;  %532 = vmatprep.subr.mxu1 %v354_v16 }
  0x30   :  { %462 = vmatpush1.msra.mxu0 %v225_v17  ;;  %v349_v22 = vld [vmem:[#allocation2 + $0x560] sm:$0xff]  ;;  %v218_v23 = vld [vmem:[#allocation2 + $0x148] sm:$0xff]  ;;  %533 = vmatpush1.msra.mxu1 %v353_v18 }
  0x31   :  { %463 = vmatprep.subr.mxu0 %v222_v19  ;;  %v346_v24 = vld [vmem:[#allocation2 + $0x548] sm:$0xff]  ;;  %v217_v25 = vld [vmem:[#allocation2 + $0x140] sm:$0xff]  ;;  %534 = vmatprep.subr.mxu1 %v350_v20 }
  0x32   :  { %464 = vmatpush1.msra.mxu0 %v221_v21  ;;  %v345_v26 = vld [vmem:[#allocation2 + $0x540] sm:$0xff]  ;;  %v214_v27 = vld [vmem:[#allocation2 + $0x128] sm:$0xff]  ;;  %535 = vmatpush1.msra.mxu1 %v349_v22 }
  0x33   :  { %465 = vmatprep.subr.mxu0 %v218_v23  ;;  %v342_v28 = vld [vmem:[#allocation2 + $0x528] sm:$0xff]  ;;  %v213_v29 = vld [vmem:[#allocation2 + $0x120] sm:$0xff]  ;;  %536 = vmatprep.subr.mxu1 %v346_v24 }
  0x34   :  { %466 = vmatpush1.msra.mxu0 %v217_v25  ;;  %v341_v30 = vld [vmem:[#allocation2 + $0x520] sm:$0xff]  ;;  %v210_v31 = vld [vmem:[#allocation2 + $0x108] sm:$0xff]  ;;  %537 = vmatpush1.msra.mxu1 %v345_v26 }
  0x35   :  { %467 = vmatprep.subr.mxu0 %v214_v27  ;;  %v338_v32 = vld [vmem:[#allocation2 + $0x508] sm:$0xff]  ;;  %v209_v33 = vld [vmem:[#allocation2 + $0x100] sm:$0xff]  ;;  %538 = vmatprep.subr.mxu1 %v342_v28 }
  0x36   :  { %468 = vmatpush1.msra.mxu0 %v213_v29  ;;  %v337_v34 = vld [vmem:[#allocation2 + $0x500] sm:$0xff]  ;;  %v206_v35 = vld [vmem:[#allocation2 + $0xe8] sm:$0xff]  ;;  %539 = vmatpush1.msra.mxu1 %v341_v30 }
  0x37   :  { %469 = vmatprep.subr.mxu0 %v210_v31  ;;  %v334_v36 = vld [vmem:[#allocation2 + $0x4e8] sm:$0xff]  ;;  %v205_v37 = vld [vmem:[#allocation2 + $0xe0] sm:$0xff]  ;;  %540 = vmatprep.subr.mxu1 %v338_v32 }
  0x38   :  { %470 = vmatpush1.msra.mxu0 %v209_v33  ;;  %v333_v38 = vld [vmem:[#allocation2 + $0x4e0] sm:$0xff]  ;;  %v202_v39 = vld [vmem:[#allocation2 + $0xc8] sm:$0xff]  ;;  %541 = vmatpush1.msra.mxu1 %v337_v34 }
  0x39   :  { %471 = vmatprep.subr.mxu0 %v206_v35  ;;  %v330_v40 = vld [vmem:[#allocation2 + $0x4c8] sm:$0xff]  ;;  %v201_v41 = vld [vmem:[#allocation2 + $0xc0] sm:$0xff]  ;;  %542 = vmatprep.subr.mxu1 %v334_v36 }
  0x3a   :  { %472 = vmatpush1.msra.mxu0 %v205_v37  ;;  %v329_v42 = vld [vmem:[#allocation2 + $0x4c0] sm:$0xff]  ;;  %v198_v43 = vld [vmem:[#allocation2 + $0xa8] sm:$0xff]  ;;  %543 = vmatpush1.msra.mxu1 %v333_v38 }
  0x3b   :  { %473 = vmatprep.subr.mxu0 %v202_v39  ;;  %v326_v44 = vld [vmem:[#allocation2 + $0x4a8] sm:$0xff]  ;;  %v197_v45 = vld [vmem:[#allocation2 + $0xa0] sm:$0xff]  ;;  %544 = vmatprep.subr.mxu1 %v330_v40 }
  0x3c   :  { %474 = vmatpush1.msra.mxu0 %v201_v41  ;;  %v325_v46 = vld [vmem:[#allocation2 + $0x4a0] sm:$0xff]  ;;  %v194_v47 = vld [vmem:[#allocation2 + $0x88] sm:$0xff]  ;;  %545 = vmatpush1.msra.mxu1 %v329_v42 }
  0x3d   :  { %475 = vmatprep.subr.mxu0 %v198_v43  ;;  %v322_v48 = vld [vmem:[#allocation2 + $0x488] sm:$0xff]  ;;  %v193_v49 = vld [vmem:[#allocation2 + $0x80] sm:$0xff]  ;;  %546 = vmatprep.subr.mxu1 %v326_v44 }
  0x3e   :  { %476 = vmatpush1.msra.mxu0 %v197_v45  ;;  %v321_v50 = vld [vmem:[#allocation2 + $0x480] sm:$0xff]  ;;  %v190_v51 = vld [vmem:[#allocation2 + $0x68] sm:$0xff]  ;;  %547 = vmatpush1.msra.mxu1 %v325_v46 }
  0x3f   :  { %477 = vmatprep.subr.mxu0 %v194_v47  ;;  %v318_v52 = vld [vmem:[#allocation2 + $0x468] sm:$0xff]  ;;  %v189_v53 = vld [vmem:[#allocation2 + $0x60] sm:$0xff]  ;;  %548 = vmatprep.subr.mxu1 %v322_v48 }
  0x40   :  { %478 = vmatpush1.msra.mxu0 %v193_v49  ;;  %v317_v54 = vld [vmem:[#allocation2 + $0x460] sm:$0xff]  ;;  %v186_v55 = vld [vmem:[#allocation2 + $0x48] sm:$0xff]  ;;  %549 = vmatpush1.msra.mxu1 %v321_v50 }
  0x41   :  { %479 = vmatprep.subr.mxu0 %v190_v51  ;;  %v314_v56 = vld [vmem:[#allocation2 + $0x448] sm:$0xff]  ;;  %v185_v57 = vld [vmem:[#allocation2 + $0x40] sm:$0xff]  ;;  %550 = vmatprep.subr.mxu1 %v318_v52 }
  0x42   :  { %480 = vmatpush1.msra.mxu0 %v189_v53  ;;  %v313_v58 = vld [vmem:[#allocation2 + $0x440] sm:$0xff]  ;;  %v182_v59 = vld [vmem:[#allocation2 + $0x28] sm:$0xff]  ;;  %551 = vmatpush1.msra.mxu1 %v317_v54 }
  0x43   :  { %481 = vmatprep.subr.mxu0 %v186_v55  ;;  %v310_v60 = vld [vmem:[#allocation2 + $0x428] sm:$0xff]  ;;  %v181_v61 = vld [vmem:[#allocation2 + $0x20] sm:$0xff]  ;;  %552 = vmatprep.subr.mxu1 %v314_v56 }
  0x44   :  { %482 = vmatpush1.msra.mxu0 %v185_v57  ;;  %v309_v62 = vld [vmem:[#allocation2 + $0x420] sm:$0xff]  ;;  %v178_v63 = vld [vmem:[#allocation2 + $0x8] sm:$0xff]  ;;  %553 = vmatpush1.msra.mxu1 %v313_v58 }
  0x45   :  { %483 = vmatprep.subr.mxu0 %v182_v59  ;;  %v306_v0 = vld [vmem:[#allocation2 + $0x408] sm:$0xff]  ;;  %v177_v1 = vld [vmem:[#allocation2] sm:$0xff]  ;;  %554 = vmatprep.subr.mxu1 %v310_v60 }
  0x46   :  { %484 = vmatpush1.msra.mxu0 %v181_v61  ;;  %v305_v2 = vld [vmem:[#allocation2 + $0x400] sm:$0xff]  ;;  %v302_v3 = vld [vmem:[#allocation2 + $0x3e8] sm:$0xff]  ;;  %555 = vmatpush1.msra.mxu1 %v309_v62 }
  0x47   :  { %485 = vmatprep.subr.mxu0 %v178_v63  ;;  %v430_v4 = vld [vmem:[#allocation2 + $0x7e8] sm:$0xff]  ;;  %v301_v5 = vld [vmem:[#allocation2 + $0x3e0] sm:$0xff]  ;;  %556 = vmatprep.subr.mxu1 %v306_v0 }
  0x48   :  { %486 = vmatpush1.msra.mxu0 %v177_v1  ;;  %v429_v6 = vld [vmem:[#allocation2 + $0x7e0] sm:$0xff]  ;;  %v298_v7 = vld [vmem:[#allocation2 + $0x3c8] sm:$0xff]  ;;  %557 = vmatpush1.msra.mxu1 %v305_v2 }
  0x49   :  { %487 = vmatprep.subr.mxu0 %v302_v3  ;;  %v426_v8 = vld [vmem:[#allocation2 + $0x7c8] sm:$0xff]  ;;  %v297_v9 = vld [vmem:[#allocation2 + $0x3c0] sm:$0xff]  ;;  %558 = vmatprep.subr.mxu1 %v430_v4  ;;  %v240_v3 = vld [vmem:[#allocation2 + $0x1f8] sm:$0xff] }
  0x4a   :  { %488 = vmatpush2.msra.mxu0 %v301_v5  ;;  %v425_v10 = vld [vmem:[#allocation2 + $0x7c0] sm:$0xff]  ;;  %v294_v11 = vld [vmem:[#allocation2 + $0x3a8] sm:$0xff]  ;;  %559 = vmatpush2.msra.mxu1 %v429_v6  ;;  %v368_v4 = vld [vmem:[#allocation2 + $0x5f8] sm:$0xff]  ;;  %v88_v5 = vlaneseq }
  0x4b   :  { %489 = vmatprep.subr.mxu0 %v298_v7  ;;  %v422_v12 = vld [vmem:[#allocation2 + $0x7a8] sm:$0xff]  ;;  %v293_v13 = vld [vmem:[#allocation2 + $0x3a0] sm:$0xff]  ;;  %560 = vmatprep.subr.mxu1 %v426_v8 }
  0x4c   :  { %490 = vmatpush2.msra.mxu0 %v297_v9  ;;  %v421_v14 = vld [vmem:[#allocation2 + $0x7a0] sm:$0xff]  ;;  %v290_v15 = vld [vmem:[#allocation2 + $0x388] sm:$0xff]  ;;  %561 = vmatpush2.msra.mxu1 %v425_v10  ;;  %v3345_v6 = vshrl.u32 %v88_v5, 7  ;;  %v347_v5 = vld [vmem:[#allocation2 + $0x550] sm:$0xff] }
  0x4d   :  { %491 = vmatprep.subr.mxu0 %v294_v11  ;;  %v418_v16 = vld [vmem:[#allocation2 + $0x788] sm:$0xff]  ;;  %v289_v17 = vld [vmem:[#allocation2 + $0x380] sm:$0xff]  ;;  %562 = vmatprep.subr.mxu1 %v422_v12 }
  0x4e   :  { %492 = vmatpush2.msra.mxu0 %v293_v13  ;;  %v417_v18 = vld [vmem:[#allocation2 + $0x780] sm:$0xff]  ;;  %v286_v19 = vld [vmem:[#allocation2 + $0x368] sm:$0xff]  ;;  %563 = vmatpush2.msra.mxu1 %v421_v14  ;;  %v3348_v7 = vsub.s32 0, %v3345_v6  ;;  %v3351_v8 = vsub.s32 1, %v3345_v6  ;;  %v3354_v9 = vsub.s32 2, %v3345_v6  ;;  %v3357_v10 = vsub.s32 3, %v3345_v6 }
  0x4f   :  { %493 = vmatprep.subr.mxu0 %v290_v15  ;;  %v414_v20 = vld [vmem:[#allocation2 + $0x768] sm:$0xff]  ;;  %v285_v21 = vld [vmem:[#allocation2 + $0x360] sm:$0xff]  ;;  %564 = vmatprep.subr.mxu1 %v418_v16 }
  0x50   :  { %494 = vmatpush2.msra.mxu0 %v289_v17  ;;  %v413_v22 = vld [vmem:[#allocation2 + $0x760] sm:$0xff]  ;;  %v282_v23 = vld [vmem:[#allocation2 + $0x348] sm:$0xff]  ;;  %565 = vmatpush2.msra.mxu1 %v417_v18 }
  0x51   :  { %495 = vmatprep.subr.mxu0 %v286_v19  ;;  %v410_v24 = vld [vmem:[#allocation2 + $0x748] sm:$0xff]  ;;  %v281_v25 = vld [vmem:[#allocation2 + $0x340] sm:$0xff]  ;;  %566 = vmatprep.subr.mxu1 %v414_v20 }
  0x52   :  { %496 = vmatpush2.msra.mxu0 %v285_v21  ;;  %v409_v26 = vld [vmem:[#allocation2 + $0x740] sm:$0xff]  ;;  %v278_v27 = vld [vmem:[#allocation2 + $0x328] sm:$0xff]  ;;  %567 = vmatpush2.msra.mxu1 %v413_v22 }
  0x53   :  { %497 = vmatprep.subr.mxu0 %v282_v23  ;;  %v406_v28 = vld [vmem:[#allocation2 + $0x728] sm:$0xff]  ;;  %v277_v29 = vld [vmem:[#allocation2 + $0x320] sm:$0xff]  ;;  %568 = vmatprep.subr.mxu1 %v410_v24 }
  0x54   :  { %498 = vmatpush2.msra.mxu0 %v281_v25  ;;  %v405_v30 = vld [vmem:[#allocation2 + $0x720] sm:$0xff]  ;;  %v274_v31 = vld [vmem:[#allocation2 + $0x308] sm:$0xff]  ;;  %569 = vmatpush2.msra.mxu1 %v409_v26 }
  0x55   :  { %499 = vmatprep.subr.mxu0 %v278_v27  ;;  %v402_v32 = vld [vmem:[#allocation2 + $0x708] sm:$0xff]  ;;  %v273_v33 = vld [vmem:[#allocation2 + $0x300] sm:$0xff]  ;;  %570 = vmatprep.subr.mxu1 %v406_v28 }
  0x56   :  { %500 = vmatpush2.msra.mxu0 %v277_v29  ;;  %v401_v34 = vld [vmem:[#allocation2 + $0x700] sm:$0xff]  ;;  %v270_v35 = vld [vmem:[#allocation2 + $0x2e8] sm:$0xff]  ;;  %571 = vmatpush2.msra.mxu1 %v405_v30 }
  0x57   :  { %501 = vmatprep.subr.mxu0 %v274_v31  ;;  %v398_v36 = vld [vmem:[#allocation2 + $0x6e8] sm:$0xff]  ;;  %v269_v37 = vld [vmem:[#allocation2 + $0x2e0] sm:$0xff]  ;;  %572 = vmatprep.subr.mxu1 %v402_v32 }
  0x58   :  { %502 = vmatpush2.msra.mxu0 %v273_v33  ;;  %v397_v38 = vld [vmem:[#allocation2 + $0x6e0] sm:$0xff]  ;;  %v266_v39 = vld [vmem:[#allocation2 + $0x2c8] sm:$0xff]  ;;  %573 = vmatpush2.msra.mxu1 %v401_v34 }
  0x59   :  { %503 = vmatprep.subr.mxu0 %v270_v35  ;;  %v394_v40 = vld [vmem:[#allocation2 + $0x6c8] sm:$0xff]  ;;  %v265_v41 = vld [vmem:[#allocation2 + $0x2c0] sm:$0xff]  ;;  %574 = vmatprep.subr.mxu1 %v398_v36 }
  0x5a   :  { %504 = vmatpush2.msra.mxu0 %v269_v37  ;;  %v393_v42 = vld [vmem:[#allocation2 + $0x6c0] sm:$0xff]  ;;  %v262_v43 = vld [vmem:[#allocation2 + $0x2a8] sm:$0xff]  ;;  %575 = vmatpush2.msra.mxu1 %v397_v38 }
  0x5b   :  { %505 = vmatprep.subr.mxu0 %v266_v39  ;;  %v390_v44 = vld [vmem:[#allocation2 + $0x6a8] sm:$0xff]  ;;  %v261_v45 = vld [vmem:[#allocation2 + $0x2a0] sm:$0xff]  ;;  %576 = vmatprep.subr.mxu1 %v394_v40 }
  0x5c   :  { %506 = vmatpush2.msra.mxu0 %v265_v41  ;;  %v389_v46 = vld [vmem:[#allocation2 + $0x6a0] sm:$0xff]  ;;  %v258_v47 = vld [vmem:[#allocation2 + $0x288] sm:$0xff]  ;;  %577 = vmatpush2.msra.mxu1 %v393_v42 }
  0x5d   :  { %507 = vmatprep.subr.mxu0 %v262_v43  ;;  %v386_v48 = vld [vmem:[#allocation2 + $0x688] sm:$0xff]  ;;  %v257_v49 = vld [vmem:[#allocation2 + $0x280] sm:$0xff]  ;;  %578 = vmatprep.subr.mxu1 %v390_v44 }
  0x5e   :  { %508 = vmatpush2.msra.mxu0 %v261_v45  ;;  %v385_v50 = vld [vmem:[#allocation2 + $0x680] sm:$0xff]  ;;  %v254_v51 = vld [vmem:[#allocation2 + $0x268] sm:$0xff]  ;;  %579 = vmatpush2.msra.mxu1 %v389_v46  ;;  %v239_v46 = vld [vmem:[#allocation2 + $0x1f0] sm:$0xff] }
  0x5f   :  { %509 = vmatprep.subr.mxu0 %v258_v47  ;;  %v382_v52 = vld [vmem:[#allocation2 + $0x668] sm:$0xff]  ;;  %v253_v53 = vld [vmem:[#allocation2 + $0x260] sm:$0xff]  ;;  %580 = vmatprep.subr.mxu1 %v386_v48  ;;  %v236_v48 = vld [vmem:[#allocation2 + $0x1d8] sm:$0xff] }
  0x60   :  { %510 = vmatpush2.msra.mxu0 %v257_v49  ;;  %v381_v54 = vld [vmem:[#allocation2 + $0x660] sm:$0xff]  ;;  %v250_v55 = vld [vmem:[#allocation2 + $0x248] sm:$0xff]  ;;  %581 = vmatpush2.msra.mxu1 %v385_v50  ;;  %v367_v50 = vld [vmem:[#allocation2 + $0x5f0] sm:$0xff] }
  0x61   :  { %511 = vmatprep.subr.mxu0 %v254_v51  ;;  %v378_v56 = vld [vmem:[#allocation2 + $0x648] sm:$0xff]  ;;  %v249_v57 = vld [vmem:[#allocation2 + $0x240] sm:$0xff]  ;;  %582 = vmatprep.subr.mxu1 %v382_v52  ;;  %v364_v51 = vld [vmem:[#allocation2 + $0x5d8] sm:$0xff] }
  0x62   :  { %512 = vmatpush2.msra.mxu0 %v253_v53  ;;  %v377_v58 = vld [vmem:[#allocation2 + $0x640] sm:$0xff]  ;;  %v246_v59 = vld [vmem:[#allocation2 + $0x228] sm:$0xff]  ;;  %583 = vmatpush2.msra.mxu1 %v381_v54  ;;  %v235_v52 = vld [vmem:[#allocation2 + $0x1d0] sm:$0xff] }
  0x63   :  { %513 = vmatprep.subr.mxu0 %v250_v55  ;;  %v374_v60 = vld [vmem:[#allocation2 + $0x628] sm:$0xff]  ;;  %v245_v61 = vld [vmem:[#allocation2 + $0x220] sm:$0xff]  ;;  %584 = vmatprep.subr.mxu1 %v378_v56  ;;  %v363_v53 = vld [vmem:[#allocation2 + $0x5d0] sm:$0xff] }
  0x64   :  { %514 = vmatpush2.msra.mxu0 %v249_v57  ;;  %v373_v62 = vld [vmem:[#allocation2 + $0x620] sm:$0xff]  ;;  %v242_v63 = vld [vmem:[#allocation2 + $0x208] sm:$0xff]  ;;  %585 = vmatpush2.msra.mxu1 %v377_v58  ;;  %v232_v54 = vld [vmem:[#allocation2 + $0x1b8] sm:$0xff] }
  0x65   :  { %515 = vmatprep.subr.mxu0 %v246_v59  ;;  %v370_v0 = vld [vmem:[#allocation2 + $0x608] sm:$0xff]  ;;  %v241_v1 = vld [vmem:[#allocation2 + $0x200] sm:$0xff]  ;;  %586 = vmatprep.subr.mxu1 %v374_v60  ;;  %v360_v55 = vld [vmem:[#allocation2 + $0x5b8] sm:$0xff] }
  0x66   :  { %516 = vmatpush2.msra.mxu0 %v245_v61  ;;  %v369_v2 = vld [vmem:[#allocation2 + $0x600] sm:$0xff]  ;;  %587 = vmatpush2.msra.mxu1 %v373_v62  ;;  %v231_v56 = vld [vmem:[#allocation2 + $0x1b0] sm:$0xff]  ;;  %v228_v58 = vld [vmem:[#allocation2 + $0x198] sm:$0xff] }
  0x67   :  { %517 = vmatprep.subr.mxu0 %v242_v63  ;;  %588 = vmatprep.subr.mxu1 %v370_v0  ;;  %v81_v11 = vld [vmem:[%s3716_s1] ss:$2 sm:$0xf]  ;;  %v2957_v12 = vld [vmem:[%s3716_s1 + $0x1] ss:$2 sm:$0xf] }
  0x68   :  { %518 = vmatpush2.msra.mxu0 %v241_v1  ;;  %589 = vmatpush2.msra.mxu1 %v369_v2  ;;  %v91_v14 = vrot.slane %v81_v11, %v3348_v7  ;;  %v95_v15 = vrot.slane %v81_v11, %v3351_v8  ;;  %v99_v16 = vrot.slane %v81_v11, %v3354_v9  ;;  %v147_v18 = vld [vmem:[%s3717_s2] sm:$0xf]  ;;  %v359_v57 = vld [vmem:[#allocation2 + $0x5b0] sm:$0xff]  ;;  %v356_v59 = vld [vmem:[#allocation2 + $0x598] sm:$0xff] }
  0x69   :  { %597 = vmatprep.subr.mxu0 %v240_v3  ;;  %668 = vmatprep.subr.mxu1 %v368_v4  ;;  %v103_v17 = vrot.slane %v81_v11, %v3357_v10  ;;  %v122_v19 = vrot.slane %v2957_v12, %v3348_v7  ;;  %v126_v20 = vrot.slane %v2957_v12, %v3351_v8  ;;  %v227_v60 = vld [vmem:[#allocation2 + $0x190] sm:$0xff]  ;;  %v224_v62 = vld [vmem:[#allocation2 + $0x178] sm:$0xff] }
  0x6a   :  { %v130_v21 = vrot.slane %v2957_v12, %v3354_v9  ;;  %v134_v22 = vrot.slane %v2957_v12, %v3357_v10  ;;  %v152_v23 = vrot.slane %v147_v18, %v3348_v7  ;;  %v156_v24 = vrot.slane %v147_v18, %v3351_v8  ;;  %v355_v61 = vld [vmem:[#allocation2 + $0x590] sm:$0xff]  ;;  %v352_v63 = vld [vmem:[#allocation2 + $0x578] sm:$0xff] }
  0x6b   :  { %v160_v25 = vrot.slane %v147_v18, %v3354_v9  ;;  %v164_v35 = vrot.slane %v147_v18, %v3357_v10  ;;  %v223_v0 = vld [vmem:[#allocation2 + $0x170] sm:$0xff]  ;;  %v220_v2 = vld [vmem:[#allocation2 + $0x158] sm:$0xff] }
  0x6c   :  { %v351_v1 = vld [vmem:[#allocation2 + $0x570] sm:$0xff]  ;;  %v348_v3 = vld [vmem:[#allocation2 + $0x558] sm:$0xff] }
  0x6d   :  { %v219_v4 = vld [vmem:[#allocation2 + $0x150] sm:$0xff]  ;;  %v216_v11 = vld [vmem:[#allocation2 + $0x138] sm:$0xff] }
  0x6e   :  { %v344_v12 = vld [vmem:[#allocation2 + $0x538] sm:$0xff]  ;;  %v339_v18 = vld [vmem:[#allocation2 + $0x510] sm:$0xff] }
  0xa3   :  { %v85_v13 = vpop.permute.xlu0 %84 }
  0xa4   :  { %v108_v26 = vmul.f32 %v91_v14, %v85_v13  ;;  %v109_v27 = vmul.f32 %v95_v15, %v85_v13  ;;  %v110_v28 = vmul.f32 %v99_v16, %v85_v13  ;;  %v111_v29 = vmul.f32 %v103_v17, %v85_v13  ;;  %v215_v13 = vld [vmem:[#allocation2 + $0x130] sm:$0xff]  ;;  %v212_v15 = vld [vmem:[#allocation2 + $0x118] sm:$0xff] }
  0xa5   :  { %v343_v14 = vld [vmem:[#allocation2 + $0x530] sm:$0xff]  ;;  %v340_v16 = vld [vmem:[#allocation2 + $0x518] sm:$0xff] }
  0xa6   :  { %v211_v17 = vld [vmem:[#allocation2 + $0x110] sm:$0xff] }
  0xa8   :  { %v116_v30 = vpop.permute.xlu0 %115 }
  0xa9   :  { %v139_v31 = vmul.f32 %v122_v19, %v116_v30  ;;  %v140_v32 = vmul.f32 %v126_v20, %v116_v30  ;;  %v141_v33 = vmul.f32 %v130_v21, %v116_v30  ;;  %v142_v34 = vmul.f32 %v134_v22, %v116_v30  ;;  %v208_v19 = vld [vmem:[#allocation2 + $0xf8] sm:$0xff]  ;;  %v207_v21 = vld [vmem:[#allocation2 + $0xf0] sm:$0xff] }
  0xaa   :  { %v336_v20 = vld [vmem:[#allocation2 + $0x4f8] sm:$0xff]  ;;  %v335_v22 = vld [vmem:[#allocation2 + $0x4f0] sm:$0xff] }
  0xab   :  { %v143_v36 = vadd.f32 %v139_v31, %v108_v26  ;;  %v144_v37 = vadd.f32 %v140_v32, %v109_v27  ;;  %v145_v38 = vadd.f32 %v141_v33, %v110_v28  ;;  %v146_v39 = vadd.f32 %v142_v34, %v111_v29  ;;  %v331_v26 = vld [vmem:[#allocation2 + $0x4d0] sm:$0xff]  ;;  %v200_v27 = vld [vmem:[#allocation2 + $0xb8] sm:$0xff] }
  0xac   :  { %v328_v28 = vld [vmem:[#allocation2 + $0x4b8] sm:$0xff]  ;;  %v199_v29 = vld [vmem:[#allocation2 + $0xb0] sm:$0xff] }
  0xad   :  { %v169_v40 = vadd.f32 %v152_v23, %v143_v36  ;;  %v170_v41 = vadd.f32 %v156_v24, %v144_v37  ;;  %v171_v42 = vadd.f32 %v160_v25, %v145_v38  ;;  %v172_v43 = vadd.f32 %v164_v35, %v146_v39  ;;  %v204_v23 = vld [vmem:[#allocation2 + $0xd8] sm:$0xff]  ;;  %v203_v25 = vld [vmem:[#allocation2 + $0xd0] sm:$0xff] }
  0xae   :  { %v332_v24 = vld [vmem:[#allocation2 + $0x4d8] sm:$0xff]  ;;  %v327_v30 = vld [vmem:[#allocation2 + $0x4b0] sm:$0xff] }
  0xaf   :  { %3091 = vtanh.f32 %v169_v40  ;;  %v196_v31 = vld [vmem:[#allocation2 + $0x98] sm:$0xff]  ;;  %v195_v33 = vld [vmem:[#allocation2 + $0x90] sm:$0xff] }
  0xb0   :  { %3093 = vtanh.f32 %v170_v41  ;;  %v324_v32 = vld [vmem:[#allocation2 + $0x498] sm:$0xff]  ;;  %v323_v34 = vld [vmem:[#allocation2 + $0x490] sm:$0xff] }
  0xb1   :  { %3095 = vtanh.f32 %v171_v42  ;;  %v192_v35 = vld [vmem:[#allocation2 + $0x78] sm:$0xff]  ;;  %v191_v37 = vld [vmem:[#allocation2 + $0x70] sm:$0xff] }
  0xb2   :  { %3097 = vtanh.f32 %v172_v43  ;;  %v320_v36 = vld [vmem:[#allocation2 + $0x478] sm:$0xff]  ;;  %v319_v38 = vld [vmem:[#allocation2 + $0x470] sm:$0xff] }
  0xb3   :  { %v188_v39 = vld [vmem:[#allocation2 + $0x58] sm:$0xff]  ;;  %v187_v41 = vld [vmem:[#allocation2 + $0x50] sm:$0xff] }
  0xb4   :  { %v316_v40 = vld [vmem:[#allocation2 + $0x458] sm:$0xff]  ;;  %v315_v42 = vld [vmem:[#allocation2 + $0x450] sm:$0xff] }
  0xb5   :  { %v184_v43 = vld [vmem:[#allocation2 + $0x38] sm:$0xff] }
  0xbc   :  { %v3380_v44 = vpop.eup %3091 }
  0xbd   :  { %v3094_v45 = vpop.eup %3093 }
  0xbe   :  { %v3382_v47 = vpop.eup %3095  ;;  %519 = vmatprep.mubr.f32.mxu0 %v3094_v45 }
  0xbf   :  { %v3098_v49 = vpop.eup %3097  ;;  %520 = vmatmul.mubr.f32.vlgmr.msra.gmra.mxu0 %v3380_v44 }
  0xc0   :  { %590 = vmatprep.mubr.f32.mxu1 %v3098_v49  ;;  %598 = vmatpush1.msra.mxu0 %v239_v46  ;;  %v183_v46 = vld [vmem:[#allocation2 + $0x30] sm:$0xff] }
  0xc1   :  { %591 = vmatmul.mubr.f32.vlgmr.msra.gmra.mxu1 %v3382_v47  ;;  %599 = vmatprep.subr.mxu0 %v236_v48  ;;  %v311_v48 = vld [vmem:[#allocation2 + $0x430] sm:$0xff] }
  0xc2   :  { %669 = vmatpush1.msra.mxu1 %v367_v50  ;;  %661 = vmatprep.mubr.f32.mxu0 %v3094_v45  ;;  %v312_v45 = vld [vmem:[#allocation2 + $0x438] sm:$0xff] }
  0xc3   :  { %670 = vmatprep.subr.mxu1 %v364_v51  ;;  %732 = vmatprep.mubr.f32.mxu1 %v3098_v49  ;;  %v180_v49 = vld [vmem:[#allocation2 + $0x18] sm:$0xff]  ;;  %v179_v51 = vld [vmem:[#allocation2 + $0x10] sm:$0xff] }
  0xc4   :  { %600 = vmatpush1.msra.mxu0 %v235_v52  ;;  %671 = vmatpush1.msra.mxu1 %v363_v53  ;;  %v308_v50 = vld [vmem:[#allocation2 + $0x418] sm:$0xff]  ;;  %v307_v52 = vld [vmem:[#allocation2 + $0x410] sm:$0xff] }
  0xc5   :  { %601 = vmatprep.subr.mxu0 %v232_v54  ;;  %672 = vmatprep.subr.mxu1 %v360_v55  ;;  %v304_v53 = vld [vmem:[#allocation2 + $0x3f8] sm:$0xff]  ;;  %v303_v55 = vld [vmem:[#allocation2 + $0x3f0] sm:$0xff] }
  0xc6   :  { %602 = vmatpush1.msra.mxu0 %v231_v56  ;;  %673 = vmatpush1.msra.mxu1 %v359_v57  ;;  %v432_v54 = vld [vmem:[#allocation2 + $0x7f8] sm:$0xff]  ;;  %v431_v56 = vld [vmem:[#allocation2 + $0x7f0] sm:$0xff] }
  0xc7   :  { %603 = vmatprep.subr.mxu0 %v228_v58  ;;  %674 = vmatprep.subr.mxu1 %v356_v59  ;;  %v300_v57 = vld [vmem:[#allocation2 + $0x3d8] sm:$0xff]  ;;  %v299_v59 = vld [vmem:[#allocation2 + $0x3d0] sm:$0xff] }
  0xc8   :  { %604 = vmatpush1.msra.mxu0 %v227_v60  ;;  %675 = vmatpush1.msra.mxu1 %v355_v61  ;;  %v428_v58 = vld [vmem:[#allocation2 + $0x7d8] sm:$0xff]  ;;  %v427_v60 = vld [vmem:[#allocation2 + $0x7d0] sm:$0xff] }
  0xc9   :  { %605 = vmatprep.subr.mxu0 %v224_v62  ;;  %676 = vmatprep.subr.mxu1 %v352_v63  ;;  %v296_v61 = vld [vmem:[#allocation2 + $0x3b8] sm:$0xff]  ;;  %v295_v63 = vld [vmem:[#allocation2 + $0x3b0] sm:$0xff] }
  0xca   :  { %606 = vmatpush1.msra.mxu0 %v223_v0  ;;  %677 = vmatpush1.msra.mxu1 %v351_v1  ;;  %v424_v62 = vld [vmem:[#allocation2 + $0x7b8] sm:$0xff]  ;;  %v423_v0 = vld [vmem:[#allocation2 + $0x7b0] sm:$0xff] }
  0xcb   :  { %607 = vmatprep.subr.mxu0 %v220_v2  ;;  %678 = vmatprep.subr.mxu1 %v348_v3  ;;  %v292_v1 = vld [vmem:[#allocation2 + $0x398] sm:$0xff]  ;;  %v291_v3 = vld [vmem:[#allocation2 + $0x390] sm:$0xff] }
  0xcc   :  { %608 = vmatpush1.msra.mxu0 %v219_v4  ;;  %679 = vmatpush1.msra.mxu1 %v347_v5  ;;  %v420_v2 = vld [vmem:[#allocation2 + $0x798] sm:$0xff]  ;;  %v419_v4 = vld [vmem:[#allocation2 + $0x790] sm:$0xff] }
  0xcd   :  { %609 = vmatprep.subr.mxu0 %v216_v11  ;;  %680 = vmatprep.subr.mxu1 %v344_v12  ;;  %v288_v5 = vld [vmem:[#allocation2 + $0x378] sm:$0xff]  ;;  %v287_v12 = vld [vmem:[#allocation2 + $0x370] sm:$0xff] }
  0xce   :  { %610 = vmatpush1.msra.mxu0 %v215_v13  ;;  %681 = vmatpush1.msra.mxu1 %v343_v14  ;;  %v416_v11 = vld [vmem:[#allocation2 + $0x778] sm:$0xff]  ;;  %v415_v13 = vld [vmem:[#allocation2 + $0x770] sm:$0xff] }
  0xcf   :  { %611 = vmatprep.subr.mxu0 %v212_v15  ;;  %682 = vmatprep.subr.mxu1 %v340_v16  ;;  %v284_v14 = vld [vmem:[#allocation2 + $0x358] sm:$0xff]  ;;  %v283_v16 = vld [vmem:[#allocation2 + $0x350] sm:$0xff] }
  0xd0   :  { %612 = vmatpush1.msra.mxu0 %v211_v17  ;;  %683 = vmatpush1.msra.mxu1 %v339_v18  ;;  %v412_v15 = vld [vmem:[#allocation2 + $0x758] sm:$0xff]  ;;  %v411_v17 = vld [vmem:[#allocation2 + $0x750] sm:$0xff] }
  0xd1   :  { %613 = vmatprep.subr.mxu0 %v208_v19  ;;  %684 = vmatprep.subr.mxu1 %v336_v20  ;;  %v280_v18 = vld [vmem:[#allocation2 + $0x338] sm:$0xff]  ;;  %v279_v20 = vld [vmem:[#allocation2 + $0x330] sm:$0xff] }
  0xd2   :  { %614 = vmatpush1.msra.mxu0 %v207_v21  ;;  %685 = vmatpush1.msra.mxu1 %v335_v22  ;;  %v408_v19 = vld [vmem:[#allocation2 + $0x738] sm:$0xff]  ;;  %v407_v21 = vld [vmem:[#allocation2 + $0x730] sm:$0xff] }
  0xd3   :  { %615 = vmatprep.subr.mxu0 %v204_v23  ;;  %686 = vmatprep.subr.mxu1 %v332_v24  ;;  %v276_v22 = vld [vmem:[#allocation2 + $0x318] sm:$0xff]  ;;  %v275_v24 = vld [vmem:[#allocation2 + $0x310] sm:$0xff] }
  0xd4   :  { %616 = vmatpush1.msra.mxu0 %v203_v25  ;;  %687 = vmatpush1.msra.mxu1 %v331_v26  ;;  %v404_v23 = vld [vmem:[#allocation2 + $0x718] sm:$0xff]  ;;  %v403_v25 = vld [vmem:[#allocation2 + $0x710] sm:$0xff] }
  0xd5   :  { %617 = vmatprep.subr.mxu0 %v200_v27  ;;  %688 = vmatprep.subr.mxu1 %v328_v28  ;;  %v272_v26 = vld [vmem:[#allocation2 + $0x2f8] sm:$0xff]  ;;  %v271_v28 = vld [vmem:[#allocation2 + $0x2f0] sm:$0xff] }
  0xd6   :  { %618 = vmatpush1.msra.mxu0 %v199_v29  ;;  %689 = vmatpush1.msra.mxu1 %v327_v30  ;;  %v400_v27 = vld [vmem:[#allocation2 + $0x6f8] sm:$0xff]  ;;  %v399_v29 = vld [vmem:[#allocation2 + $0x6f0] sm:$0xff] }
  0xd7   :  { %619 = vmatprep.subr.mxu0 %v196_v31  ;;  %690 = vmatprep.subr.mxu1 %v324_v32  ;;  %v268_v30 = vld [vmem:[#allocation2 + $0x2d8] sm:$0xff]  ;;  %v267_v32 = vld [vmem:[#allocation2 + $0x2d0] sm:$0xff] }
  0xd8   :  { %620 = vmatpush1.msra.mxu0 %v195_v33  ;;  %691 = vmatpush1.msra.mxu1 %v323_v34  ;;  %v396_v31 = vld [vmem:[#allocation2 + $0x6d8] sm:$0xff]  ;;  %v395_v33 = vld [vmem:[#allocation2 + $0x6d0] sm:$0xff] }
  0xd9   :  { %621 = vmatprep.subr.mxu0 %v192_v35  ;;  %692 = vmatprep.subr.mxu1 %v320_v36  ;;  %v264_v34 = vld [vmem:[#allocation2 + $0x2b8] sm:$0xff]  ;;  %v263_v36 = vld [vmem:[#allocation2 + $0x2b0] sm:$0xff] }
  0xda   :  { %622 = vmatpush1.msra.mxu0 %v191_v37  ;;  %693 = vmatpush1.msra.mxu1 %v319_v38  ;;  %v392_v35 = vld [vmem:[#allocation2 + $0x6b8] sm:$0xff]  ;;  %v391_v37 = vld [vmem:[#allocation2 + $0x6b0] sm:$0xff] }
  0xdb   :  { %623 = vmatprep.subr.mxu0 %v188_v39  ;;  %694 = vmatprep.subr.mxu1 %v316_v40  ;;  %v260_v38 = vld [vmem:[#allocation2 + $0x298] sm:$0xff]  ;;  %v259_v40 = vld [vmem:[#allocation2 + $0x290] sm:$0xff] }
  0xdc   :  { %624 = vmatpush1.msra.mxu0 %v187_v41  ;;  %695 = vmatpush1.msra.mxu1 %v315_v42  ;;  %v388_v39 = vld [vmem:[#allocation2 + $0x698] sm:$0xff]  ;;  %v387_v41 = vld [vmem:[#allocation2 + $0x690] sm:$0xff] }
  0xdd   :  { %625 = vmatprep.subr.mxu0 %v184_v43  ;;  %696 = vmatprep.subr.mxu1 %v312_v45  ;;  %v256_v42 = vld [vmem:[#allocation2 + $0x278] sm:$0xff]  ;;  %v255_v45 = vld [vmem:[#allocation2 + $0x270] sm:$0xff] }
  0xde   :  { %626 = vmatpush1.msra.mxu0 %v183_v46  ;;  %697 = vmatpush1.msra.mxu1 %v311_v48  ;;  %v384_v43 = vld [vmem:[#allocation2 + $0x678] sm:$0xff]  ;;  %v383_v46 = vld [vmem:[#allocation2 + $0x670] sm:$0xff] }
  0xdf   :  { %627 = vmatprep.subr.mxu0 %v180_v49  ;;  %698 = vmatprep.subr.mxu1 %v308_v50  ;;  %v252_v48 = vld [vmem:[#allocation2 + $0x258] sm:$0xff]  ;;  %v251_v50 = vld [vmem:[#allocation2 + $0x250] sm:$0xff] }
  0xe0   :  { %628 = vmatpush1.msra.mxu0 %v179_v51  ;;  %699 = vmatpush1.msra.mxu1 %v307_v52  ;;  %v380_v49 = vld [vmem:[#allocation2 + $0x658] sm:$0xff]  ;;  %v379_v51 = vld [vmem:[#allocation2 + $0x650] sm:$0xff] }
  0xe1   :  { %629 = vmatprep.subr.mxu0 %v304_v53  ;;  %700 = vmatprep.subr.mxu1 %v432_v54  ;;  %v248_v52 = vld [vmem:[#allocation2 + $0x238] sm:$0xff]  ;;  %v247_v54 = vld [vmem:[#allocation2 + $0x230] sm:$0xff] }
  0xe2   :  { %630 = vmatpush2.msra.mxu0 %v303_v55  ;;  %701 = vmatpush2.msra.mxu1 %v431_v56  ;;  %v376_v53 = vld [vmem:[#allocation2 + $0x638] sm:$0xff]  ;;  %v375_v55 = vld [vmem:[#allocation2 + $0x630] sm:$0xff] }
  0xe3   :  { %631 = vmatprep.subr.mxu0 %v300_v57  ;;  %702 = vmatprep.subr.mxu1 %v428_v58  ;;  %v244_v56 = vld [vmem:[#allocation2 + $0x218] sm:$0xff]  ;;  %v243_v58 = vld [vmem:[#allocation2 + $0x210] sm:$0xff] }
  0xe4   :  { %632 = vmatpush2.msra.mxu0 %v299_v59  ;;  %703 = vmatpush2.msra.mxu1 %v427_v60  ;;  %v372_v57 = vld [vmem:[#allocation2 + $0x618] sm:$0xff]  ;;  %v371_v59 = vld [vmem:[#allocation2 + $0x610] sm:$0xff]  ;;  %v804_v60 = vld [vmem:[#allocation5 + $0x1e8] sm:$0xff] }
  0xe5   :  { %633 = vmatprep.subr.mxu0 %v296_v61  ;;  %704 = vmatprep.subr.mxu1 %v424_v62  ;;  %v803_v61 = vld [vmem:[#allocation5 + $0x1e0] sm:$0xff]  ;;  %v800_v62 = vld [vmem:[#allocation5 + $0x1c8] sm:$0xff] }
  0xe6   :  { %634 = vmatpush2.msra.mxu0 %v295_v63  ;;  %705 = vmatpush2.msra.mxu1 %v423_v0  ;;  %v799_v63 = vld [vmem:[#allocation5 + $0x1c0] sm:$0xff]  ;;  %v796_v0 = vld [vmem:[#allocation5 + $0x1a8] sm:$0xff] }
  0xe7   :  { %635 = vmatprep.subr.mxu0 %v292_v1  ;;  %706 = vmatprep.subr.mxu1 %v420_v2  ;;  %v795_v1 = vld [vmem:[#allocation5 + $0x1a0] sm:$0xff]  ;;  %v792_v2 = vld [vmem:[#allocation5 + $0x188] sm:$0xff] }
  0xe8   :  { %636 = vmatpush2.msra.mxu0 %v291_v3  ;;  %707 = vmatpush2.msra.mxu1 %v419_v4  ;;  %v791_v3 = vld [vmem:[#allocation5 + $0x180] sm:$0xff]  ;;  %v788_v4 = vld [vmem:[#allocation5 + $0x168] sm:$0xff] }
  0xe9   :  { %637 = vmatprep.subr.mxu0 %v288_v5  ;;  %708 = vmatprep.subr.mxu1 %v416_v11  ;;  %v787_v5 = vld [vmem:[#allocation5 + $0x160] sm:$0xff]  ;;  %v784_v11 = vld [vmem:[#allocation5 + $0x148] sm:$0xff] }
  0xea   :  { %638 = vmatpush2.msra.mxu0 %v287_v12  ;;  %709 = vmatpush2.msra.mxu1 %v415_v13  ;;  %v932_v12 = vld [vmem:[#allocation5 + $0x5e8] sm:$0xff]  ;;  %v779_v13 = vld [vmem:[#allocation5 + $0x120] sm:$0xff] }
  0xeb   :  { %639 = vmatprep.subr.mxu0 %v284_v14  ;;  %710 = vmatprep.subr.mxu1 %v412_v15  ;;  %v776_v14 = vld [vmem:[#allocation5 + $0x108] sm:$0xff]  ;;  %v775_v15 = vld [vmem:[#allocation5 + $0x100] sm:$0xff] }
  0xec   :  { %640 = vmatpush2.msra.mxu0 %v283_v16  ;;  %711 = vmatpush2.msra.mxu1 %v411_v17  ;;  %v772_v16 = vld [vmem:[#allocation5 + $0xe8] sm:$0xff]  ;;  %v771_v17 = vld [vmem:[#allocation5 + $0xe0] sm:$0xff] }
  0xed   :  { %641 = vmatprep.subr.mxu0 %v280_v18  ;;  %712 = vmatprep.subr.mxu1 %v408_v19  ;;  %v768_v18 = vld [vmem:[#allocation5 + $0xc8] sm:$0xff]  ;;  %v767_v19 = vld [vmem:[#allocation5 + $0xc0] sm:$0xff] }
  0xee   :  { %642 = vmatpush2.msra.mxu0 %v279_v20  ;;  %713 = vmatpush2.msra.mxu1 %v407_v21  ;;  %v764_v20 = vld [vmem:[#allocation5 + $0xa8] sm:$0xff]  ;;  %v763_v21 = vld [vmem:[#allocation5 + $0xa0] sm:$0xff] }
  0xef   :  { %643 = vmatprep.subr.mxu0 %v276_v22  ;;  %714 = vmatprep.subr.mxu1 %v404_v23  ;;  %v931_v22 = vld [vmem:[#allocation5 + $0x5e0] sm:$0xff]  ;;  %v760_v23 = vld [vmem:[#allocation5 + $0x88] sm:$0xff] }
  0xf0   :  { %644 = vmatpush2.msra.mxu0 %v275_v24  ;;  %715 = vmatpush2.msra.mxu1 %v403_v25  ;;  %v928_v24 = vld [vmem:[#allocation5 + $0x5c8] sm:$0xff]  ;;  %v759_v25 = vld [vmem:[#allocation5 + $0x80] sm:$0xff] }
  0xf1   :  { %645 = vmatprep.subr.mxu0 %v272_v26  ;;  %716 = vmatprep.subr.mxu1 %v400_v27  ;;  %v927_v26 = vld [vmem:[#allocation5 + $0x5c0] sm:$0xff]  ;;  %v756_v27 = vld [vmem:[#allocation5 + $0x68] sm:$0xff] }
  0xf2   :  { %646 = vmatpush2.msra.mxu0 %v271_v28  ;;  %717 = vmatpush2.msra.mxu1 %v399_v29  ;;  %v924_v28 = vld [vmem:[#allocation5 + $0x5a8] sm:$0xff]  ;;  %v755_v29 = vld [vmem:[#allocation5 + $0x60] sm:$0xff] }
  0xf3   :  { %647 = vmatprep.subr.mxu0 %v268_v30  ;;  %718 = vmatprep.subr.mxu1 %v396_v31  ;;  %v923_v30 = vld [vmem:[#allocation5 + $0x5a0] sm:$0xff]  ;;  %v752_v31 = vld [vmem:[#allocation5 + $0x48] sm:$0xff] }
  0xf4   :  { %648 = vmatpush2.msra.mxu0 %v267_v32  ;;  %719 = vmatpush2.msra.mxu1 %v395_v33  ;;  %v920_v32 = vld [vmem:[#allocation5 + $0x588] sm:$0xff]  ;;  %v751_v33 = vld [vmem:[#allocation5 + $0x40] sm:$0xff] }
  0xf5   :  { %649 = vmatprep.subr.mxu0 %v264_v34  ;;  %720 = vmatprep.subr.mxu1 %v392_v35  ;;  %v919_v34 = vld [vmem:[#allocation5 + $0x580] sm:$0xff]  ;;  %v748_v35 = vld [vmem:[#allocation5 + $0x28] sm:$0xff] }
  0xf6   :  { %650 = vmatpush2.msra.mxu0 %v263_v36  ;;  %721 = vmatpush2.msra.mxu1 %v391_v37  ;;  %v916_v36 = vld [vmem:[#allocation5 + $0x568] sm:$0xff]  ;;  %v747_v37 = vld [vmem:[#allocation5 + $0x20] sm:$0xff] }
  0xf7   :  { %651 = vmatprep.subr.mxu0 %v260_v38  ;;  %722 = vmatprep.subr.mxu1 %v388_v39  ;;  %v915_v38 = vld [vmem:[#allocation5 + $0x560] sm:$0xff]  ;;  %v744_v39 = vld [vmem:[#allocation5 + $0x8] sm:$0xff] }
  0xf8   :  { %652 = vmatpush2.msra.mxu0 %v259_v40  ;;  %723 = vmatpush2.msra.mxu1 %v387_v41  ;;  %v912_v40 = vld [vmem:[#allocation5 + $0x548] sm:$0xff]  ;;  %v743_v41 = vld [vmem:[#allocation5] sm:$0xff] }
  0xf9   :  { %653 = vmatprep.subr.mxu0 %v256_v42  ;;  %724 = vmatprep.subr.mxu1 %v384_v43  ;;  %v911_v42 = vld [vmem:[#allocation5 + $0x540] sm:$0xff]  ;;  %v868_v43 = vld [vmem:[#allocation5 + $0x3e8] sm:$0xff] }
  0xfa   :  { %654 = vmatpush2.msra.mxu0 %v255_v45  ;;  %725 = vmatpush2.msra.mxu1 %v383_v46  ;;  %v908_v45 = vld [vmem:[#allocation5 + $0x528] sm:$0xff]  ;;  %v867_v46 = vld [vmem:[#allocation5 + $0x3e0] sm:$0xff] }
  0xfb   :  { %655 = vmatprep.subr.mxu0 %v252_v48  ;;  %726 = vmatprep.subr.mxu1 %v380_v49  ;;  %v907_v48 = vld [vmem:[#allocation5 + $0x520] sm:$0xff]  ;;  %v864_v49 = vld [vmem:[#allocation5 + $0x3c8] sm:$0xff] }
  0xfc   :  { %656 = vmatpush2.msra.mxu0 %v251_v50  ;;  %727 = vmatpush2.msra.mxu1 %v379_v51  ;;  %v904_v50 = vld [vmem:[#allocation5 + $0x508] sm:$0xff]  ;;  %v863_v51 = vld [vmem:[#allocation5 + $0x3c0] sm:$0xff] }
  0xfd   :  { %657 = vmatprep.subr.mxu0 %v248_v52  ;;  %728 = vmatprep.subr.mxu1 %v376_v53  ;;  %v903_v52 = vld [vmem:[#allocation5 + $0x500] sm:$0xff]  ;;  %v860_v53 = vld [vmem:[#allocation5 + $0x3a8] sm:$0xff] }
  0xfe   :  { %658 = vmatpush2.msra.mxu0 %v247_v54  ;;  %729 = vmatpush2.msra.mxu1 %v375_v55  ;;  %v900_v54 = vld [vmem:[#allocation5 + $0x4e8] sm:$0xff]  ;;  %v859_v55 = vld [vmem:[#allocation5 + $0x3a0] sm:$0xff] }
  0xff   :  { %659 = vmatprep.subr.mxu0 %v244_v56  ;;  %730 = vmatprep.subr.mxu1 %v372_v57  ;;  %v899_v56 = vld [vmem:[#allocation5 + $0x4e0] sm:$0xff]  ;;  %v856_v57 = vld [vmem:[#allocation5 + $0x388] sm:$0xff] }
 0x100   :  { %660 = vmatpush2.msra.mxu0 %v243_v58  ;;  %731 = vmatpush2.msra.mxu1 %v371_v59  ;;  %v896_v58 = vld [vmem:[#allocation5 + $0x4c8] sm:$0xff]  ;;  %v855_v59 = vld [vmem:[#allocation5 + $0x380] sm:$0xff] }
 0x101   :  { %662 = vmatmul.mubr.f32.vlgmr.msra.gmra.mxu0 %v3380_v44  ;;  %733 = vmatmul.mubr.f32.vlgmr.msra.gmra.mxu1 %v3382_v47  ;;  %v783_v44 = vld [vmem:[#allocation5 + $0x140] sm:$0xff]  ;;  %v780_v47 = vld [vmem:[#allocation5 + $0x128] sm:$0xff] }
 0x102   :  { %1021 = vmatprep.subr.mxu0 %v804_v60  ;;  %1092 = vmatprep.subr.mxu1 %v932_v12  ;;  %v895_v60 = vld [vmem:[#allocation5 + $0x4c0] sm:$0xff]  ;;  %v840_v12 = vld [vmem:[#allocation5 + $0x308] sm:$0xff] }
 0x103   :  { %1022 = vmatpush1.msra.mxu0 %v803_v61  ;;  %1093 = vmatpush1.msra.mxu1 %v931_v22  ;;  %v852_v61 = vld [vmem:[#allocation5 + $0x368] sm:$0xff]  ;;  %v831_v22 = vld [vmem:[#allocation5 + $0x2c0] sm:$0xff] }
 0x104   :  { %1023 = vmatprep.subr.mxu0 %v800_v62  ;;  %1094 = vmatprep.subr.mxu1 %v928_v24  ;;  %v892_v62 = vld [vmem:[#allocation5 + $0x4a8] sm:$0xff] }
 0x105   :  { %1024 = vmatpush1.msra.mxu0 %v799_v63  ;;  %1095 = vmatpush1.msra.mxu1 %v927_v26  ;;  %v851_v63 = vld [vmem:[#allocation5 + $0x360] sm:$0xff]  ;;  %v828_v24 = vld [vmem:[#allocation5 + $0x2a8] sm:$0xff] }
 0x106   :  { %1025 = vmatprep.subr.mxu0 %v796_v0  ;;  %1096 = vmatprep.subr.mxu1 %v924_v28  ;;  %v891_v0 = vld [vmem:[#allocation5 + $0x4a0] sm:$0xff]  ;;  %v824_v28 = vld [vmem:[#allocation5 + $0x288] sm:$0xff] }
 0x107   :  { %1026 = vmatpush1.msra.mxu0 %v795_v1  ;;  %1097 = vmatpush1.msra.mxu1 %v923_v30  ;;  %v848_v1 = vld [vmem:[#allocation5 + $0x348] sm:$0xff]  ;;  %v827_v26 = vld [vmem:[#allocation5 + $0x2a0] sm:$0xff] }
 0x108   :  { %1027 = vmatprep.subr.mxu0 %v792_v2  ;;  %1098 = vmatprep.subr.mxu1 %v920_v32  ;;  %v888_v2 = vld [vmem:[#allocation5 + $0x488] sm:$0xff]  ;;  %v823_v30 = vld [vmem:[#allocation5 + $0x280] sm:$0xff] }
 0x109   :  { %1028 = vmatpush1.msra.mxu0 %v791_v3  ;;  %1099 = vmatpush1.msra.mxu1 %v919_v34  ;;  %v847_v3 = vld [vmem:[#allocation5 + $0x340] sm:$0xff]  ;;  %v820_v32 = vld [vmem:[#allocation5 + $0x268] sm:$0xff] }
 0x10a   :  { %1029 = vmatprep.subr.mxu0 %v788_v4  ;;  %1100 = vmatprep.subr.mxu1 %v916_v36  ;;  %v887_v4 = vld [vmem:[#allocation5 + $0x480] sm:$0xff]  ;;  %v816_v36 = vld [vmem:[#allocation5 + $0x248] sm:$0xff] }
 0x10b   :  { %1030 = vmatpush1.msra.mxu0 %v787_v5  ;;  %1101 = vmatpush1.msra.mxu1 %v915_v38  ;;  %v844_v5 = vld [vmem:[#allocation5 + $0x328] sm:$0xff]  ;;  %v819_v34 = vld [vmem:[#allocation5 + $0x260] sm:$0xff] }
 0x10c   :  { %1031 = vmatprep.subr.mxu0 %v784_v11  ;;  %1102 = vmatprep.subr.mxu1 %v912_v40  ;;  %v884_v11 = vld [vmem:[#allocation5 + $0x468] sm:$0xff]  ;;  %v815_v38 = vld [vmem:[#allocation5 + $0x240] sm:$0xff] }
 0x10d   :  { %1032 = vmatpush1.msra.mxu0 %v783_v44  ;;  %1103 = vmatpush1.msra.mxu1 %v911_v42  ;;  %v843_v44 = vld [vmem:[#allocation5 + $0x320] sm:$0xff]  ;;  %v812_v40 = vld [vmem:[#allocation5 + $0x228] sm:$0xff] }
 0x10e   :  { %1033 = vmatprep.subr.mxu0 %v780_v47  ;;  %1104 = vmatprep.subr.mxu1 %v908_v45  ;;  %v883_v47 = vld [vmem:[#allocation5 + $0x460] sm:$0xff]  ;;  %v808_v45 = vld [vmem:[#allocation5 + $0x208] sm:$0xff] }
 0x10f   :  { %1034 = vmatpush1.msra.mxu0 %v779_v13  ;;  %1105 = vmatpush1.msra.mxu1 %v907_v48  ;;  %v880_v13 = vld [vmem:[#allocation5 + $0x448] sm:$0xff]  ;;  %v811_v42 = vld [vmem:[#allocation5 + $0x220] sm:$0xff] }
 0x110   :  { %1035 = vmatprep.subr.mxu0 %v776_v14  ;;  %1106 = vmatprep.subr.mxu1 %v904_v50  ;;  %v839_v14 = vld [vmem:[#allocation5 + $0x300] sm:$0xff] }
 0x111   :  { %1036 = vmatpush1.msra.mxu0 %v775_v15  ;;  %1107 = vmatpush1.msra.mxu1 %v903_v52  ;;  %v879_v15 = vld [vmem:[#allocation5 + $0x440] sm:$0xff] }
 0x112   :  { %1037 = vmatprep.subr.mxu0 %v772_v16  ;;  %1108 = vmatprep.subr.mxu1 %v900_v54  ;;  %v836_v16 = vld [vmem:[#allocation5 + $0x2e8] sm:$0xff]  ;;  %v807_v48 = vld [vmem:[#allocation5 + $0x200] sm:$0xff] }
 0x113   :  { %1038 = vmatpush1.msra.mxu0 %v771_v17  ;;  %1109 = vmatpush1.msra.mxu1 %v899_v56  ;;  %v876_v17 = vld [vmem:[#allocation5 + $0x428] sm:$0xff]  ;;  %v975_v50 = vld [vmem:[#allocation5 + $0x740] sm:$0xff] }
 0x114   :  { %1039 = vmatprep.subr.mxu0 %v768_v18  ;;  %1110 = vmatprep.subr.mxu1 %v896_v58  ;;  %v835_v18 = vld [vmem:[#allocation5 + $0x2e0] sm:$0xff] }
 0x115   :  { %1040 = vmatpush1.msra.mxu0 %v767_v19  ;;  %1111 = vmatpush1.msra.mxu1 %v895_v60  ;;  %v875_v19 = vld [vmem:[#allocation5 + $0x420] sm:$0xff] }
 0x116   :  { %1041 = vmatprep.subr.mxu0 %v764_v20  ;;  %1112 = vmatprep.subr.mxu1 %v892_v62  ;;  %v832_v20 = vld [vmem:[#allocation5 + $0x2c8] sm:$0xff]  ;;  %v971_v52 = vld [vmem:[#allocation5 + $0x720] sm:$0xff] }
 0x117   :  { %1042 = vmatpush1.msra.mxu0 %v763_v21  ;;  %1113 = vmatpush1.msra.mxu1 %v891_v0  ;;  %v872_v21 = vld [vmem:[#allocation5 + $0x408] sm:$0xff]  ;;  %v967_v54 = vld [vmem:[#allocation5 + $0x700] sm:$0xff] }
 0x118   :  { %1043 = vmatprep.subr.mxu0 %v760_v23  ;;  %1114 = vmatprep.subr.mxu1 %v888_v2  ;;  %v871_v23 = vld [vmem:[#allocation5 + $0x400] sm:$0xff] }
 0x119   :  { %1044 = vmatpush1.msra.mxu0 %v759_v25  ;;  %1115 = vmatpush1.msra.mxu1 %v887_v4  ;;  %v996_v25 = vld [vmem:[#allocation5 + $0x7e8] sm:$0xff]  ;;  %v963_v56 = vld [vmem:[#allocation5 + $0x6e0] sm:$0xff] }
 0x11a   :  { %1045 = vmatprep.subr.mxu0 %v756_v27  ;;  %1116 = vmatprep.subr.mxu1 %v884_v11  ;;  %v995_v27 = vld [vmem:[#allocation5 + $0x7e0] sm:$0xff] }
 0x11b   :  { %1046 = vmatpush1.msra.mxu0 %v755_v29  ;;  %1117 = vmatpush1.msra.mxu1 %v883_v47  ;;  %v992_v29 = vld [vmem:[#allocation5 + $0x7c8] sm:$0xff]  ;;  %v959_v58 = vld [vmem:[#allocation5 + $0x6c0] sm:$0xff] }
 0x11c   :  { %1047 = vmatprep.subr.mxu0 %v752_v31  ;;  %1118 = vmatprep.subr.mxu1 %v880_v13  ;;  %v991_v31 = vld [vmem:[#allocation5 + $0x7c0] sm:$0xff] }
 0x11d   :  { %1048 = vmatpush1.msra.mxu0 %v751_v33  ;;  %1119 = vmatpush1.msra.mxu1 %v879_v15  ;;  %v988_v33 = vld [vmem:[#allocation5 + $0x7a8] sm:$0xff]  ;;  %v955_v60 = vld [vmem:[#allocation5 + $0x6a0] sm:$0xff] }
 0x11e   :  { %1049 = vmatprep.subr.mxu0 %v748_v35  ;;  %1120 = vmatprep.subr.mxu1 %v876_v17  ;;  %v987_v35 = vld [vmem:[#allocation5 + $0x7a0] sm:$0xff] }
 0x11f   :  { %1050 = vmatpush1.msra.mxu0 %v747_v37  ;;  %1121 = vmatpush1.msra.mxu1 %v875_v19  ;;  %v984_v37 = vld [vmem:[#allocation5 + $0x788] sm:$0xff]  ;;  %v951_v62 = vld [vmem:[#allocation5 + $0x680] sm:$0xff] }
 0x120   :  { %1051 = vmatprep.subr.mxu0 %v744_v39  ;;  %1122 = vmatprep.subr.mxu1 %v872_v21  ;;  %v983_v39 = vld [vmem:[#allocation5 + $0x780] sm:$0xff] }
 0x121   :  { %1052 = vmatpush1.msra.mxu0 %v743_v41  ;;  %1123 = vmatpush1.msra.mxu1 %v871_v23  ;;  %v980_v41 = vld [vmem:[#allocation5 + $0x768] sm:$0xff]  ;;  %v947_v0 = vld [vmem:[#allocation5 + $0x660] sm:$0xff]  ;;  %v805_v23 = vld [vmem:[#allocation5 + $0x1f0] sm:$0xff] }
 0x122   :  { %1053 = vmatprep.subr.mxu0 %v868_v43  ;;  %1124 = vmatprep.subr.mxu1 %v996_v25  ;;  %v979_v43 = vld [vmem:[#allocation5 + $0x760] sm:$0xff]  ;;  %v802_v25 = vld [vmem:[#allocation5 + $0x1d8] sm:$0xff] }
 0x123   :  { %1054 = vmatpush2.msra.mxu0 %v867_v46  ;;  %1125 = vmatpush2.msra.mxu1 %v995_v27  ;;  %v976_v46 = vld [vmem:[#allocation5 + $0x748] sm:$0xff]  ;;  %v943_v2 = vld [vmem:[#allocation5 + $0x640] sm:$0xff]  ;;  %v798_v27 = vld [vmem:[#allocation5 + $0x1b8] sm:$0xff] }
 0x124   :  { %1055 = vmatprep.subr.mxu0 %v864_v49  ;;  %1126 = vmatprep.subr.mxu1 %v992_v29  ;;  %v806_v49 = vld [vmem:[#allocation5 + $0x1f8] sm:$0xff]  ;;  %v939_v4 = vld [vmem:[#allocation5 + $0x620] sm:$0xff] }
 0x125   :  { %1056 = vmatpush2.msra.mxu0 %v863_v51  ;;  %1127 = vmatpush2.msra.mxu1 %v991_v31  ;;  %v972_v51 = vld [vmem:[#allocation5 + $0x728] sm:$0xff]  ;;  %v935_v11 = vld [vmem:[#allocation5 + $0x600] sm:$0xff]  ;;  %v794_v29 = vld [vmem:[#allocation5 + $0x198] sm:$0xff] }
 0x126   :  { %1057 = vmatprep.subr.mxu0 %v860_v53  ;;  %1128 = vmatprep.subr.mxu1 %v988_v33  ;;  %v968_v53 = vld [vmem:[#allocation5 + $0x708] sm:$0xff]  ;;  %v3391_v47 = vld [vmem:[%s3719_s4] sm:$0xf]  ;;  %v790_v31 = vld [vmem:[#allocation5 + $0x178] sm:$0xff] }
 0x127   :  { %1058 = vmatpush2.msra.mxu0 %v859_v55  ;;  %1129 = vmatpush2.msra.mxu1 %v987_v35  ;;  %v964_v55 = vld [vmem:[#allocation5 + $0x6e8] sm:$0xff]  ;;  %v442_v13 = vrot.slane %v3391_v47, %v3351_v8  ;;  %v786_v33 = vld [vmem:[#allocation5 + $0x158] sm:$0xff] }
 0x128   :  { %1059 = vmatprep.subr.mxu0 %v856_v57  ;;  %1130 = vmatprep.subr.mxu1 %v984_v37  ;;  %v960_v57 = vld [vmem:[#allocation5 + $0x6c8] sm:$0xff]  ;;  %v782_v35 = vld [vmem:[#allocation5 + $0x138] sm:$0xff] }
 0x129   :  { %1060 = vmatpush2.msra.mxu0 %v855_v59  ;;  %1131 = vmatpush2.msra.mxu1 %v983_v39  ;;  %v956_v59 = vld [vmem:[#allocation5 + $0x6a8] sm:$0xff]  ;;  %v778_v37 = vld [vmem:[#allocation5 + $0x118] sm:$0xff] }
 0x12a   :  { %1061 = vmatprep.subr.mxu0 %v852_v61  ;;  %1132 = vmatprep.subr.mxu1 %v980_v41  ;;  %v952_v61 = vld [vmem:[#allocation5 + $0x688] sm:$0xff]  ;;  %v774_v39 = vld [vmem:[#allocation5 + $0xf8] sm:$0xff] }
 0x12b   :  { %1062 = vmatpush2.msra.mxu0 %v851_v63  ;;  %1133 = vmatpush2.msra.mxu1 %v979_v43  ;;  %v948_v63 = vld [vmem:[#allocation5 + $0x668] sm:$0xff]  ;;  %v770_v41 = vld [vmem:[#allocation5 + $0xd8] sm:$0xff] }
 0x12c   :  { %1063 = vmatprep.subr.mxu0 %v848_v1  ;;  %1134 = vmatprep.subr.mxu1 %v976_v46  ;;  %v944_v1 = vld [vmem:[#allocation5 + $0x648] sm:$0xff]  ;;  %v766_v43 = vld [vmem:[#allocation5 + $0xb8] sm:$0xff] }
 0x12d   :  { %1064 = vmatpush2.msra.mxu0 %v847_v3  ;;  %1135 = vmatpush2.msra.mxu1 %v975_v50  ;;  %v940_v3 = vld [vmem:[#allocation5 + $0x628] sm:$0xff]  ;;  %v762_v46 = vld [vmem:[#allocation5 + $0x98] sm:$0xff]  ;;  %v757_v50 = vld [vmem:[#allocation5 + $0x70] sm:$0xff] }
 0x12e   :  { %1065 = vmatprep.subr.mxu0 %v844_v5  ;;  %1136 = vmatprep.subr.mxu1 %v972_v51  ;;  %v936_v5 = vld [vmem:[#allocation5 + $0x608] sm:$0xff]  ;;  %v754_v51 = vld [vmem:[#allocation5 + $0x58] sm:$0xff] }
 0x12f   :  { %1066 = vmatpush2.msra.mxu0 %v843_v44  ;;  %1137 = vmatpush2.msra.mxu1 %v971_v52  ;;  %v934_v44 = vld [vmem:[#allocation5 + $0x5f8] sm:$0xff]  ;;  %v753_v52 = vld [vmem:[#allocation5 + $0x50] sm:$0xff] }
 0x130   :  { %1067 = vmatprep.subr.mxu0 %v840_v12  ;;  %1138 = vmatprep.subr.mxu1 %v968_v53  ;;  %v438_v12 = vrot.slane %v3391_v47, %v3348_v7  ;;  %v750_v53 = vld [vmem:[#allocation5 + $0x38] sm:$0xff] }
 0x131   :  { %1068 = vmatpush2.msra.mxu0 %v839_v14  ;;  %1139 = vmatpush2.msra.mxu1 %v967_v54  ;;  %v749_v54 = vld [vmem:[#allocation5 + $0x30] sm:$0xff] }
 0x132   :  { %1069 = vmatprep.subr.mxu0 %v836_v16  ;;  %1140 = vmatprep.subr.mxu1 %v964_v55  ;;  %v746_v55 = vld [vmem:[#allocation5 + $0x18] sm:$0xff] }
 0x133   :  { %1070 = vmatpush2.msra.mxu0 %v835_v18  ;;  %1141 = vmatpush2.msra.mxu1 %v963_v56  ;;  %v745_v56 = vld [vmem:[#allocation5 + $0x10] sm:$0xff] }
 0x134   :  { %1071 = vmatprep.subr.mxu0 %v832_v20  ;;  %1142 = vmatprep.subr.mxu1 %v960_v57  ;;  %v870_v57 = vld [vmem:[#allocation5 + $0x3f8] sm:$0xff] }
 0x135   :  { %1072 = vmatpush2.msra.mxu0 %v831_v22  ;;  %1143 = vmatpush2.msra.mxu1 %v959_v58  ;;  %v869_v58 = vld [vmem:[#allocation5 + $0x3f0] sm:$0xff] }
 0x136   :  { %1073 = vmatprep.subr.mxu0 %v828_v24  ;;  %1144 = vmatprep.subr.mxu1 %v956_v59  ;;  %v866_v59 = vld [vmem:[#allocation5 + $0x3d8] sm:$0xff] }
 0x137   :  { %1074 = vmatpush2.msra.mxu0 %v827_v26  ;;  %1145 = vmatpush2.msra.mxu1 %v955_v60  ;;  %v801_v26 = vld [vmem:[#allocation5 + $0x1d0] sm:$0xff] }
 0x138   :  { %1075 = vmatprep.subr.mxu0 %v824_v28  ;;  %1146 = vmatprep.subr.mxu1 %v952_v61  ;;  %v797_v28 = vld [vmem:[#allocation5 + $0x1b0] sm:$0xff]  ;;  %v862_v61 = vld [vmem:[#allocation5 + $0x3b8] sm:$0xff] }
 0x139   :  { %1076 = vmatpush2.msra.mxu0 %v823_v30  ;;  %1147 = vmatpush2.msra.mxu1 %v951_v62  ;;  %v793_v30 = vld [vmem:[#allocation5 + $0x190] sm:$0xff] }
 0x13a   :  { %1077 = vmatprep.subr.mxu0 %v820_v32  ;;  %1148 = vmatprep.subr.mxu1 %v948_v63  ;;  %v789_v32 = vld [vmem:[#allocation5 + $0x170] sm:$0xff]  ;;  %v858_v63 = vld [vmem:[#allocation5 + $0x398] sm:$0xff] }
 0x13b   :  { %1078 = vmatpush2.msra.mxu0 %v819_v34  ;;  %1149 = vmatpush2.msra.mxu1 %v947_v0  ;;  %v785_v34 = vld [vmem:[#allocation5 + $0x150] sm:$0xff] }
 0x13c   :  { %1079 = vmatprep.subr.mxu0 %v816_v36  ;;  %1150 = vmatprep.subr.mxu1 %v944_v1  ;;  %v781_v36 = vld [vmem:[#allocation5 + $0x130] sm:$0xff]  ;;  %v854_v1 = vld [vmem:[#allocation5 + $0x378] sm:$0xff] }
 0x13d   :  { %1080 = vmatpush2.msra.mxu0 %v815_v38  ;;  %1151 = vmatpush2.msra.mxu1 %v943_v2  ;;  %v777_v38 = vld [vmem:[#allocation5 + $0x110] sm:$0xff] }
 0x13e   :  { %1081 = vmatprep.subr.mxu0 %v812_v40  ;;  %1152 = vmatprep.subr.mxu1 %v940_v3  ;;  %v773_v40 = vld [vmem:[#allocation5 + $0xf0] sm:$0xff]  ;;  %v850_v3 = vld [vmem:[#allocation5 + $0x358] sm:$0xff] }
 0x13f   :  { %1082 = vmatpush2.msra.mxu0 %v811_v42  ;;  %1153 = vmatpush2.msra.mxu1 %v939_v4  ;;  %v769_v42 = vld [vmem:[#allocation5 + $0xd0] sm:$0xff] }
 0x140   :  { %1083 = vmatprep.subr.mxu0 %v808_v45  ;;  %1154 = vmatprep.subr.mxu1 %v936_v5  ;;  %v765_v45 = vld [vmem:[#allocation5 + $0xb0] sm:$0xff]  ;;  %v446_v5 = vrot.slane %v3391_v47, %v3354_v9 }
 0x141   :  { %1084 = vmatpush2.msra.mxu0 %v807_v48  ;;  %1155 = vmatpush2.msra.mxu1 %v935_v11  ;;  %v761_v48 = vld [vmem:[#allocation5 + $0x90] sm:$0xff]  ;;  %v846_v11 = vld [vmem:[#allocation5 + $0x338] sm:$0xff] }
 0x142   :  { %1163 = vmatprep.subr.mxu0 %v806_v49  ;;  %1234 = vmatprep.subr.mxu1 %v934_v44  ;;  %v758_v49 = vld [vmem:[#allocation5 + $0x78] sm:$0xff]  ;;  %v865_v60 = vld [vmem:[#allocation5 + $0x3d0] sm:$0xff] }
 0x143   :  { %v861_v62 = vld [vmem:[#allocation5 + $0x3b0] sm:$0xff] }
 0x144   :  { %v857_v0 = vld [vmem:[#allocation5 + $0x390] sm:$0xff] }
 0x145   :  { %v853_v2 = vld [vmem:[#allocation5 + $0x370] sm:$0xff] }
 0x146   :  { %v849_v4 = vld [vmem:[#allocation5 + $0x350] sm:$0xff] }
 0x147   :  { %v845_v44 = vld [vmem:[#allocation5 + $0x330] sm:$0xff] }
 0x17f   :  { %v521_v14 = vpop.f32.mrf.mxu0 }
 0x180   :  { %v522_v15 = vadd.f32 %v521_v14, %v438_v12  ;;  %v450_v12 = vrot.slane %v3391_v47, %v3357_v10  ;;  %v830_v47 = vld [vmem:[#allocation5 + $0x2b8] sm:$0xff] }
 0x181   :  { %v592_v16 = vpop.f32.mrf.mxu1  ;;  %v523_v17 = vpop.f32.mrf.mxu0 }
 0x182   :  { %v524_v18 = vadd.f32 %v523_v17, %v442_v13  ;;  %v593_v19 = vadd.f32 %v592_v16, %v522_v15  ;;  %v842_v13 = vld [vmem:[#allocation5 + $0x318] sm:$0xff]  ;;  %v841_v16 = vld [vmem:[#allocation5 + $0x310] sm:$0xff] }
 0x183   :  { %v594_v20 = vpop.f32.mrf.mxu1 }
 0x184   :  { %v595_v21 = vadd.f32 %v594_v20, %v524_v18  ;;  %v838_v18 = vld [vmem:[#allocation5 + $0x2f8] sm:$0xff]  ;;  %v837_v20 = vld [vmem:[#allocation5 + $0x2f0] sm:$0xff] }
 0x186   :  { %3099 = vtanh.f32 %v595_v21 }
 0x187   :  { %3101 = vtanh.f32 %v593_v19 }
 0x193   :  { %v3100_v22 = vpop.eup %3099 }
 0x194   :  { %v3397_v24 = vpop.eup %3101  ;;  %1085 = vmatprep.mubr.f32.mxu0 %v3100_v22 }
 0x195   :  { %1086 = vmatmul.mubr.f32.vlgmr.msra.gmra.mxu0 %v3397_v24 }
 0x196   :  { %1164 = vmatpush1.msra.mxu0 %v805_v23  ;;  %1227 = vmatprep.mubr.f32.mxu0 %v3100_v22  ;;  %v834_v22 = vld [vmem:[#allocation5 + $0x2d8] sm:$0xff] }
 0x197   :  { %1165 = vmatprep.subr.mxu0 %v802_v25 }
 0x198   :  { %1166 = vmatpush1.msra.mxu0 %v801_v26  ;;  %v833_v26 = vld [vmem:[#allocation5 + $0x2d0] sm:$0xff] }
 0x199   :  { %1167 = vmatprep.subr.mxu0 %v798_v27 }
 0x19a   :  { %1168 = vmatpush1.msra.mxu0 %v797_v28  ;;  %v829_v28 = vld [vmem:[#allocation5 + $0x2b0] sm:$0xff] }
 0x19b   :  { %1169 = vmatprep.subr.mxu0 %v794_v29  ;;  %v826_v29 = vld [vmem:[#allocation5 + $0x298] sm:$0xff] }
 0x19c   :  { %1170 = vmatpush1.msra.mxu0 %v793_v30  ;;  %v825_v30 = vld [vmem:[#allocation5 + $0x290] sm:$0xff] }
 0x19d   :  { %1171 = vmatprep.subr.mxu0 %v790_v31  ;;  %v822_v31 = vld [vmem:[#allocation5 + $0x278] sm:$0xff] }
 0x19e   :  { %1172 = vmatpush1.msra.mxu0 %v789_v32  ;;  %v821_v32 = vld [vmem:[#allocation5 + $0x270] sm:$0xff] }
 0x19f   :  { %1173 = vmatprep.subr.mxu0 %v786_v33  ;;  %v818_v33 = vld [vmem:[#allocation5 + $0x258] sm:$0xff] }
 0x1a0   :  { %1174 = vmatpush1.msra.mxu0 %v785_v34  ;;  %v817_v34 = vld [vmem:[#allocation5 + $0x250] sm:$0xff] }
 0x1a1   :  { %1175 = vmatprep.subr.mxu0 %v782_v35  ;;  %v814_v35 = vld [vmem:[#allocation5 + $0x238] sm:$0xff] }
 0x1a2   :  { %1176 = vmatpush1.msra.mxu0 %v781_v36  ;;  %v813_v36 = vld [vmem:[#allocation5 + $0x230] sm:$0xff] }
 0x1a3   :  { %1177 = vmatprep.subr.mxu0 %v778_v37  ;;  %v810_v37 = vld [vmem:[#allocation5 + $0x218] sm:$0xff] }
 0x1a4   :  { %1178 = vmatpush1.msra.mxu0 %v777_v38  ;;  %v809_v38 = vld [vmem:[#allocation5 + $0x210] sm:$0xff] }
 0x1a5   :  { %1179 = vmatprep.subr.mxu0 %v774_v39 }
 0x1a6   :  { %1180 = vmatpush1.msra.mxu0 %v773_v40  ;;  %v933_v40 = vld [vmem:[#allocation5 + $0x5f0] sm:$0xff] }
 0x1a7   :  { %1181 = vmatprep.subr.mxu0 %v770_v41 }
 0x1a8   :  { %1182 = vmatpush1.msra.mxu0 %v769_v42  ;;  %v930_v42 = vld [vmem:[#allocation5 + $0x5d8] sm:$0xff] }
 0x1a9   :  { %1183 = vmatprep.subr.mxu0 %v766_v43  ;;  %v929_v43 = vld [vmem:[#allocation5 + $0x5d0] sm:$0xff] }
 0x1aa   :  { %1184 = vmatpush1.msra.mxu0 %v765_v45  ;;  %v926_v45 = vld [vmem:[#allocation5 + $0x5b8] sm:$0xff] }
 0x1ab   :  { %1185 = vmatprep.subr.mxu0 %v762_v46  ;;  %v1340_v46 = vld [vmem:[%s3722_s7 + $0xf8] sm:$0xff] }
 0x1ac   :  { %1186 = vmatpush1.msra.mxu0 %v761_v48  ;;  %v1324_v48 = vld [vmem:[%s3722_s7 + $0x78] sm:$0xff] }
 0x1ad   :  { %1187 = vmatprep.subr.mxu0 %v758_v49  ;;  %v925_v49 = vld [vmem:[#allocation5 + $0x5b0] sm:$0xff] }
 0x1ae   :  { %1188 = vmatpush1.msra.mxu0 %v757_v50  ;;  %v1323_v50 = vld [vmem:[%s3722_s7 + $0x70] sm:$0xff] }
 0x1af   :  { %1189 = vmatprep.subr.mxu0 %v754_v51  ;;  %v922_v51 = vld [vmem:[#allocation5 + $0x598] sm:$0xff] }
 0x1b0   :  { %1190 = vmatpush1.msra.mxu0 %v753_v52  ;;  %v1338_v52 = vld [vmem:[%s3722_s7 + $0xe8] sm:$0xff] }
 0x1b1   :  { %1191 = vmatprep.subr.mxu0 %v750_v53  ;;  %v921_v53 = vld [vmem:[#allocation5 + $0x590] sm:$0xff] }
 0x1b2   :  { %1192 = vmatpush1.msra.mxu0 %v749_v54  ;;  %v1322_v54 = vld [vmem:[%s3722_s7 + $0x68] sm:$0xff] }
 0x1b3   :  { %1193 = vmatprep.subr.mxu0 %v746_v55  ;;  %v918_v55 = vld [vmem:[#allocation5 + $0x578] sm:$0xff] }
 0x1b4   :  { %1194 = vmatpush1.msra.mxu0 %v745_v56  ;;  %v1337_v56 = vld [vmem:[%s3722_s7 + $0xe0] sm:$0xff] }
 0x1b5   :  { %1195 = vmatprep.subr.mxu0 %v870_v57  ;;  %v917_v57 = vld [vmem:[#allocation5 + $0x570] sm:$0xff] }
 0x1b6   :  { %1196 = vmatpush2.msra.mxu0 %v869_v58  ;;  %v1321_v58 = vld [vmem:[%s3722_s7 + $0x60] sm:$0xff] }
 0x1b7   :  { %1197 = vmatprep.subr.mxu0 %v866_v59  ;;  %v914_v59 = vld [vmem:[#allocation5 + $0x558] sm:$0xff] }
 0x1b8   :  { %1198 = vmatpush2.msra.mxu0 %v865_v60  ;;  %v1336_v60 = vld [vmem:[%s3722_s7 + $0xd8] sm:$0xff] }
 0x1b9   :  { %1199 = vmatprep.subr.mxu0 %v862_v61  ;;  %v913_v61 = vld [vmem:[#allocation5 + $0x550] sm:$0xff] }
 0x1ba   :  { %1200 = vmatpush2.msra.mxu0 %v861_v62  ;;  %v1320_v62 = vld [vmem:[%s3722_s7 + $0x58] sm:$0xff] }
 0x1bb   :  { %1201 = vmatprep.subr.mxu0 %v858_v63  ;;  %v910_v63 = vld [vmem:[#allocation5 + $0x538] sm:$0xff] }
 0x1bc   :  { %1202 = vmatpush2.msra.mxu0 %v857_v0  ;;  %v1335_v0 = vld [vmem:[%s3722_s7 + $0xd0] sm:$0xff] }
 0x1bd   :  { %1203 = vmatprep.subr.mxu0 %v854_v1  ;;  %v909_v1 = vld [vmem:[#allocation5 + $0x530] sm:$0xff] }
 0x1be   :  { %1204 = vmatpush2.msra.mxu0 %v853_v2  ;;  %v1319_v2 = vld [vmem:[%s3722_s7 + $0x50] sm:$0xff] }
 0x1bf   :  { %1205 = vmatprep.subr.mxu0 %v850_v3  ;;  %v906_v3 = vld [vmem:[#allocation5 + $0x518] sm:$0xff] }
 0x1c0   :  { %1206 = vmatpush2.msra.mxu0 %v849_v4  ;;  %v905_v4 = vld [vmem:[#allocation5 + $0x510] sm:$0xff] }
 0x1c1   :  { %v663_v14 = vpop.f32.mrf.mxu0  ;;  %v734_v15 = vpop.f32.mrf.mxu1  ;;  %1207 = vmatprep.subr.mxu0 %v846_v11  ;;  %v901_v11 = vld [vmem:[#allocation5 + $0x4f0] sm:$0xff] }
 0x1c2   :  { %v664_v17 = vadd.f32 %v663_v14, %v446_v5  ;;  %1208 = vmatpush2.msra.mxu0 %v845_v44  ;;  %v902_v5 = vld [vmem:[#allocation5 + $0x4f8] sm:$0xff]  ;;  %v893_v14 = vld [vmem:[#allocation5 + $0x4b0] sm:$0xff] }
 0x1c3   :  { %v665_v19 = vpop.f32.mrf.mxu0  ;;  %1209 = vmatprep.subr.mxu0 %v842_v13  ;;  %v736_v25 = vpop.f32.mrf.mxu1  ;;  %v898_v44 = vld [vmem:[#allocation5 + $0x4d8] sm:$0xff] }
 0x1c4   :  { %v666_v21 = vadd.f32 %v665_v19, %v450_v12  ;;  %1210 = vmatpush2.msra.mxu0 %v841_v16  ;;  %v735_v23 = vadd.f32 %v734_v15, %v664_v17  ;;  %v897_v12 = vld [vmem:[#allocation5 + $0x4d0] sm:$0xff]  ;;  %v894_v13 = vld [vmem:[#allocation5 + $0x4b8] sm:$0xff] }
 0x1c5   :  { %1211 = vmatprep.subr.mxu0 %v838_v18  ;;  %v890_v15 = vld [vmem:[#allocation5 + $0x498] sm:$0xff]  ;;  %v889_v16 = vld [vmem:[#allocation5 + $0x490] sm:$0xff] }
 0x1c6   :  { %v737_v27 = vadd.f32 %v736_v25, %v666_v21  ;;  %1212 = vmatpush2.msra.mxu0 %v837_v20  ;;  %v886_v17 = vld [vmem:[#allocation5 + $0x478] sm:$0xff]  ;;  %v885_v18 = vld [vmem:[#allocation5 + $0x470] sm:$0xff] }
 0x1c7   :  { %1213 = vmatprep.subr.mxu0 %v834_v22  ;;  %v882_v19 = vld [vmem:[#allocation5 + $0x458] sm:$0xff]  ;;  %v881_v20 = vld [vmem:[#allocation5 + $0x450] sm:$0xff] }
 0x1c8   :  { %3103 = vtanh.f32 %v737_v27  ;;  %1214 = vmatpush2.msra.mxu0 %v833_v26  ;;  %v878_v21 = vld [vmem:[#allocation5 + $0x438] sm:$0xff]  ;;  %v877_v22 = vld [vmem:[#allocation5 + $0x430] sm:$0xff] }
 0x1c9   :  { %3105 = vtanh.f32 %v735_v23  ;;  %1215 = vmatprep.subr.mxu0 %v830_v47  ;;  %v874_v23 = vld [vmem:[#allocation5 + $0x418] sm:$0xff]  ;;  %v873_v25 = vld [vmem:[#allocation5 + $0x410] sm:$0xff] }
 0x1ca   :  { %1216 = vmatpush2.msra.mxu0 %v829_v28  ;;  %v998_v26 = vld [vmem:[#allocation5 + $0x7f8] sm:$0xff]  ;;  %v997_v27 = vld [vmem:[#allocation5 + $0x7f0] sm:$0xff] }
 0x1cb   :  { %1217 = vmatprep.subr.mxu0 %v826_v29  ;;  %v994_v47 = vld [vmem:[#allocation5 + $0x7d8] sm:$0xff]  ;;  %v993_v28 = vld [vmem:[#allocation5 + $0x7d0] sm:$0xff] }
 0x1cc   :  { %1218 = vmatpush2.msra.mxu0 %v825_v30  ;;  %v990_v29 = vld [vmem:[#allocation5 + $0x7b8] sm:$0xff]  ;;  %v989_v30 = vld [vmem:[#allocation5 + $0x7b0] sm:$0xff] }
 0x1cd   :  { %1219 = vmatprep.subr.mxu0 %v822_v31  ;;  %v986_v31 = vld [vmem:[#allocation5 + $0x798] sm:$0xff] }
 0x1ce   :  { %1220 = vmatpush2.msra.mxu0 %v821_v32  ;;  %v985_v32 = vld [vmem:[#allocation5 + $0x790] sm:$0xff] }
 0x1cf   :  { %1221 = vmatprep.subr.mxu0 %v818_v33  ;;  %v982_v33 = vld [vmem:[#allocation5 + $0x778] sm:$0xff] }
 0x1d0   :  { %1222 = vmatpush2.msra.mxu0 %v817_v34  ;;  %v981_v34 = vld [vmem:[#allocation5 + $0x770] sm:$0xff] }
 0x1d1   :  { %1223 = vmatprep.subr.mxu0 %v814_v35  ;;  %v978_v35 = vld [vmem:[#allocation5 + $0x758] sm:$0xff] }
 0x1d2   :  { %1224 = vmatpush2.msra.mxu0 %v813_v36  ;;  %v977_v36 = vld [vmem:[#allocation5 + $0x750] sm:$0xff] }
 0x1d3   :  { %1225 = vmatprep.subr.mxu0 %v810_v37  ;;  %v974_v37 = vld [vmem:[#allocation5 + $0x738] sm:$0xff] }
 0x1d4   :  { %1226 = vmatpush2.msra.mxu0 %v809_v38  ;;  %v973_v38 = vld [vmem:[#allocation5 + $0x730] sm:$0xff] }
 0x1d5   :  { %v3104_v39 = vpop.eup %3103  ;;  %1228 = vmatmul.mubr.f32.vlgmr.msra.gmra.mxu0 %v3397_v24  ;;  %v1339_v24 = vld [vmem:[%s3722_s7 + $0xf0] sm:$0xff]  ;;  %2979 = vmatprep.subr.mxu0 %v1340_v46 }
 0x1d6   :  { %v3405_v41 = vpop.eup %3105  ;;  %1156 = vmatprep.mubr.f32.mxu1 %v3104_v39  ;;  %2980 = vmatpush3.msra.mxu0 %v1324_v48  ;;  %v961_v46 = vld [vmem:[#allocation5 + $0x6d0] sm:$0xff]  ;;  %v958_v48 = vld [vmem:[#allocation5 + $0x6b8] sm:$0xff] }
 0x1d7   :  { %1157 = vmatmul.mubr.f32.vlgmr.msra.gmra.mxu1 %v3405_v41  ;;  %2981 = vmatprep.subr.mxu0 %v1339_v24  ;;  %v957_v24 = vld [vmem:[#allocation5 + $0x6b0] sm:$0xff] }
 0x1d8   :  { %1235 = vmatpush1.msra.mxu1 %v933_v40  ;;  %1298 = vmatprep.mubr.f32.mxu1 %v3104_v39  ;;  %v970_v39 = vld [vmem:[#allocation5 + $0x718] sm:$0xff]  ;;  %v969_v40 = vld [vmem:[#allocation5 + $0x710] sm:$0xff] }
 0x1d9   :  { %1236 = vmatprep.subr.mxu1 %v930_v42  ;;  %2982 = vmatpush3.msra.mxu0 %v1323_v50  ;;  %v966_v42 = vld [vmem:[#allocation5 + $0x6f8] sm:$0xff]  ;;  %v953_v50 = vld [vmem:[#allocation5 + $0x690] sm:$0xff] }
 0x1da   :  { %1237 = vmatpush1.msra.mxu1 %v929_v43  ;;  %2983 = vmatprep.subr.mxu0 %v1338_v52  ;;  %v965_v43 = vld [vmem:[#allocation5 + $0x6f0] sm:$0xff] }
 0x1db   :  { %1238 = vmatprep.subr.mxu1 %v926_v45  ;;  %2984 = vmatpush3.msra.mxu0 %v1322_v54  ;;  %v962_v45 = vld [vmem:[#allocation5 + $0x6d8] sm:$0xff]  ;;  %v949_v52 = vld [vmem:[#allocation5 + $0x670] sm:$0xff] }
 0x1dc   :  { %1239 = vmatpush1.msra.mxu1 %v925_v49  ;;  %2985 = vmatprep.subr.mxu0 %v1337_v56  ;;  %v954_v49 = vld [vmem:[#allocation5 + $0x698] sm:$0xff]  ;;  %v945_v54 = vld [vmem:[#allocation5 + $0x650] sm:$0xff] }
 0x1dd   :  { %1240 = vmatprep.subr.mxu1 %v922_v51  ;;  %2986 = vmatpush3.msra.mxu0 %v1321_v58  ;;  %v950_v51 = vld [vmem:[#allocation5 + $0x678] sm:$0xff]  ;;  %v941_v56 = vld [vmem:[#allocation5 + $0x630] sm:$0xff] }
 0x1de   :  { %1241 = vmatpush1.msra.mxu1 %v921_v53  ;;  %2987 = vmatprep.subr.mxu0 %v1336_v60  ;;  %v946_v53 = vld [vmem:[#allocation5 + $0x658] sm:$0xff]  ;;  %v937_v58 = vld [vmem:[#allocation5 + $0x610] sm:$0xff]  ;;  %v1318_v60 = vld [vmem:[%s3722_s7 + $0x48] sm:$0xff] }
 0x1df   :  { %1242 = vmatprep.subr.mxu1 %v918_v55  ;;  %2988 = vmatpush3.msra.mxu0 %v1320_v62  ;;  %v942_v55 = vld [vmem:[#allocation5 + $0x638] sm:$0xff]  ;;  %v1317_v62 = vld [vmem:[%s3722_s7 + $0x40] sm:$0xff] }
 0x1e0   :  { %1243 = vmatpush1.msra.mxu1 %v917_v57  ;;  %2989 = vmatprep.subr.mxu0 %v1335_v0  ;;  %v938_v57 = vld [vmem:[#allocation5 + $0x618] sm:$0xff]  ;;  %v1331_v0 = vld [vmem:[%s3722_s7 + $0xb0] sm:$0xff] }
 0x1e1   :  { %1244 = vmatprep.subr.mxu1 %v914_v59  ;;  %2990 = vmatpush3.msra.mxu0 %v1319_v2  ;;  %v1334_v59 = vld [vmem:[%s3722_s7 + $0xc8] sm:$0xff] }
 0x1e2   :  { %1245 = vmatpush1.msra.mxu1 %v913_v61  ;;  %2991 = vmatprep.subr.mxu0 %v1334_v59  ;;  %v1333_v61 = vld [vmem:[%s3722_s7 + $0xc0] sm:$0xff]  ;;  %v1330_v2 = vld [vmem:[%s3722_s7 + $0xa8] sm:$0xff] }
 0x1e3   :  { %1246 = vmatprep.subr.mxu1 %v910_v63  ;;  %2992 = vmatpush3.msra.mxu0 %v1318_v60  ;;  %v1316_v63 = vld [vmem:[%s3722_s7 + $0x38] sm:$0xff] }
 0x1e4   :  { %1247 = vmatpush1.msra.mxu1 %v909_v1  ;;  %2993 = vmatprep.subr.mxu0 %v1333_v61  ;;  %v1315_v1 = vld [vmem:[%s3722_s7 + $0x30] sm:$0xff] }
 0x1e5   :  { %1248 = vmatprep.subr.mxu1 %v906_v3  ;;  %2994 = vmatpush3.msra.mxu0 %v1317_v62  ;;  %v1314_v3 = vld [vmem:[%s3722_s7 + $0x28] sm:$0xff] }
 0x1e6   :  { %1249 = vmatpush1.msra.mxu1 %v905_v4  ;;  %v1329_v4 = vld [vmem:[%s3722_s7 + $0xa0] sm:$0xff] }
 0x1e7   :  { %1250 = vmatprep.subr.mxu1 %v902_v5  ;;  %v1313_v5 = vld [vmem:[%s3722_s7 + $0x20] sm:$0xff] }
 0x1e8   :  { %1251 = vmatpush1.msra.mxu1 %v901_v11  ;;  %v1328_v11 = vld [vmem:[%s3722_s7 + $0x98] sm:$0xff] }
 0x1e9   :  { %1252 = vmatprep.subr.mxu1 %v898_v44  ;;  %v1312_v44 = vld [vmem:[%s3722_s7 + $0x18] sm:$0xff] }
 0x1ea   :  { %1253 = vmatpush1.msra.mxu1 %v897_v12  ;;  %v1327_v12 = vld [vmem:[%s3722_s7 + $0x90] sm:$0xff] }
 0x1eb   :  { %1254 = vmatprep.subr.mxu1 %v894_v13  ;;  %v1311_v13 = vld [vmem:[%s3722_s7 + $0x10] sm:$0xff] }
 0x1ec   :  { %1255 = vmatpush1.msra.mxu1 %v893_v14  ;;  %v1326_v14 = vld [vmem:[%s3722_s7 + $0x88] sm:$0xff] }
 0x1ed   :  { %1256 = vmatprep.subr.mxu1 %v890_v15  ;;  %v1310_v15 = vld [vmem:[%s3722_s7 + $0x8] sm:$0xff] }
 0x1ee   :  { %1257 = vmatpush1.msra.mxu1 %v889_v16  ;;  %v1325_v16 = vld [vmem:[%s3722_s7 + $0x80] sm:$0xff] }
 0x1ef   :  { %1258 = vmatprep.subr.mxu1 %v886_v17  ;;  %v1309_v17 = vld [vmem:[%s3722_s7] sm:$0xff] }
 0x1f0   :  { %1259 = vmatpush1.msra.mxu1 %v885_v18  ;;  %v1372_v18 = vld [vmem:[%s3722_s7 + $0x1f8] sm:$0xff] }
 0x1f1   :  { %1260 = vmatprep.subr.mxu1 %v882_v19  ;;  %v1356_v19 = vld [vmem:[%s3722_s7 + $0x178] sm:$0xff] }
 0x1f2   :  { %1261 = vmatpush1.msra.mxu1 %v881_v20  ;;  %v1371_v20 = vld [vmem:[%s3722_s7 + $0x1f0] sm:$0xff] }
 0x1f3   :  { %1262 = vmatprep.subr.mxu1 %v878_v21  ;;  %v1355_v21 = vld [vmem:[%s3722_s7 + $0x170] sm:$0xff] }
 0x1f4   :  { %1263 = vmatpush1.msra.mxu1 %v877_v22  ;;  %v1370_v22 = vld [vmem:[%s3722_s7 + $0x1e8] sm:$0xff] }
 0x1f5   :  { %1264 = vmatprep.subr.mxu1 %v874_v23  ;;  %v1354_v23 = vld [vmem:[%s3722_s7 + $0x168] sm:$0xff] }
 0x1f6   :  { %1265 = vmatpush1.msra.mxu1 %v873_v25  ;;  %v1369_v25 = vld [vmem:[%s3722_s7 + $0x1e0] sm:$0xff] }
 0x1f7   :  { %1266 = vmatprep.subr.mxu1 %v998_v26  ;;  %v1353_v26 = vld [vmem:[%s3722_s7 + $0x160] sm:$0xff] }
 0x1f8   :  { %1267 = vmatpush2.msra.mxu1 %v997_v27  ;;  %v1368_v27 = vld [vmem:[%s3722_s7 + $0x1d8] sm:$0xff] }
 0x1f9   :  { %1268 = vmatprep.subr.mxu1 %v994_v47  ;;  %v1352_v47 = vld [vmem:[%s3722_s7 + $0x158] sm:$0xff] }
 0x1fa   :  { %1269 = vmatpush2.msra.mxu1 %v993_v28  ;;  %v1367_v28 = vld [vmem:[%s3722_s7 + $0x1d0] sm:$0xff] }
 0x1fb   :  { %1270 = vmatprep.subr.mxu1 %v990_v29  ;;  %v1351_v29 = vld [vmem:[%s3722_s7 + $0x150] sm:$0xff] }
 0x1fc   :  { %1271 = vmatpush2.msra.mxu1 %v989_v30  ;;  %v1366_v30 = vld [vmem:[%s3722_s7 + $0x1c8] sm:$0xff] }
 0x1fd   :  { %1272 = vmatprep.subr.mxu1 %v986_v31  ;;  %v1350_v31 = vld [vmem:[%s3722_s7 + $0x148] sm:$0xff] }
 0x1fe   :  { %1273 = vmatpush2.msra.mxu1 %v985_v32  ;;  %v1365_v32 = vld [vmem:[%s3722_s7 + $0x1c0] sm:$0xff] }
 0x1ff   :  { %1274 = vmatprep.subr.mxu1 %v982_v33  ;;  %v1349_v33 = vld [vmem:[%s3722_s7 + $0x140] sm:$0xff] }
 0x200   :  { %1275 = vmatpush2.msra.mxu1 %v981_v34  ;;  %v1364_v34 = vld [vmem:[%s3722_s7 + $0x1b8] sm:$0xff] }
 0x201   :  { %1276 = vmatprep.subr.mxu1 %v978_v35  ;;  %v1348_v35 = vld [vmem:[%s3722_s7 + $0x138] sm:$0xff] }
 0x202   :  { %1277 = vmatpush2.msra.mxu1 %v977_v36  ;;  %v1363_v36 = vld [vmem:[%s3722_s7 + $0x1b0] sm:$0xff] }
 0x203   :  { %1278 = vmatprep.subr.mxu1 %v974_v37  ;;  %v1347_v37 = vld [vmem:[%s3722_s7 + $0x130] sm:$0xff] }
 0x204   :  { %1279 = vmatpush2.msra.mxu1 %v973_v38  ;;  %v1362_v38 = vld [vmem:[%s3722_s7 + $0x1a8] sm:$0xff] }
 0x205   :  { %1280 = vmatprep.subr.mxu1 %v970_v39  ;;  %v1346_v39 = vld [vmem:[%s3722_s7 + $0x128] sm:$0xff] }
 0x206   :  { %1281 = vmatpush2.msra.mxu1 %v969_v40  ;;  %v1361_v40 = vld [vmem:[%s3722_s7 + $0x1a0] sm:$0xff] }
 0x207   :  { %1282 = vmatprep.subr.mxu1 %v966_v42  ;;  %v1345_v42 = vld [vmem:[%s3722_s7 + $0x120] sm:$0xff] }
 0x208   :  { %1283 = vmatpush2.msra.mxu1 %v965_v43  ;;  %v1360_v43 = vld [vmem:[%s3722_s7 + $0x198] sm:$0xff] }
 0x209   :  { %1284 = vmatprep.subr.mxu1 %v962_v45  ;;  %v1344_v45 = vld [vmem:[%s3722_s7 + $0x118] sm:$0xff] }
 0x20a   :  { %1285 = vmatpush2.msra.mxu1 %v961_v46  ;;  %v1359_v46 = vld [vmem:[%s3722_s7 + $0x190] sm:$0xff] }
 0x20b   :  { %1286 = vmatprep.subr.mxu1 %v958_v48  ;;  %v1343_v48 = vld [vmem:[%s3722_s7 + $0x110] sm:$0xff] }
 0x20c   :  { %1287 = vmatpush2.msra.mxu1 %v957_v24  ;;  %v1358_v24 = vld [vmem:[%s3722_s7 + $0x188] sm:$0xff] }
 0x20d   :  { %1288 = vmatprep.subr.mxu1 %v954_v49  ;;  %v1342_v49 = vld [vmem:[%s3722_s7 + $0x108] sm:$0xff] }
 0x20e   :  { %1289 = vmatpush2.msra.mxu1 %v953_v50  ;;  %v1357_v50 = vld [vmem:[%s3722_s7 + $0x180] sm:$0xff] }
 0x20f   :  { %1290 = vmatprep.subr.mxu1 %v950_v51  ;;  %v1341_v51 = vld [vmem:[%s3722_s7 + $0x100] sm:$0xff] }
 0x210   :  { %1291 = vmatpush2.msra.mxu1 %v949_v52  ;;  %v999_v52 = vld [vmem:[%s3721_s6] sm:$0xf] }
 0x211   :  { %1292 = vmatprep.subr.mxu1 %v946_v53 }
 0x212   :  { %1293 = vmatpush2.msra.mxu1 %v945_v54  ;;  %v1004_v54 = vrot.slane %v999_v52, %v3348_v7 }
 0x213   :  { %1294 = vmatprep.subr.mxu1 %v942_v55  ;;  %v1008_v55 = vrot.slane %v999_v52, %v3351_v8 }
 0x214   :  { %1295 = vmatpush2.msra.mxu1 %v941_v56 }
 0x215   :  { %1296 = vmatprep.subr.mxu1 %v938_v57 }
 0x216   :  { %1297 = vmatpush2.msra.mxu1 %v937_v58 }
 0x217   :  { %1299 = vmatmul.mubr.f32.vlgmr.msra.gmra.mxu1 %v3405_v41  ;;  %v1332_v41 = vld [vmem:[%s3722_s7 + $0xb8] sm:$0xff]  ;;  %3014 = vmatprep.subr.mxu1 %v1372_v18 }
 0x218   :  { %2995 = vmatprep.subr.mxu0 %v1332_v41  ;;  %3015 = vmatpush3.msra.mxu1 %v1356_v19  ;;  %v1701_v18 = vld [vmem:[#allocation7 + $0x578] sm:$0xff]  ;;  %v1703_v19 = vld [vmem:[#allocation7 + $0x588] sm:$0xff] }
 0x219   :  { %2996 = vmatpush3.msra.mxu0 %v1316_v63  ;;  %3016 = vmatprep.subr.mxu1 %v1371_v20  ;;  %v1677_v20 = vld [vmem:[#allocation7 + $0x4b8] sm:$0xff] }
 0x21a   :  { %2997 = vmatprep.subr.mxu0 %v1331_v0  ;;  %3017 = vmatpush3.msra.mxu1 %v1355_v21  ;;  %v1679_v21 = vld [vmem:[#allocation7 + $0x4c8] sm:$0xff] }
 0x21b   :  { %2998 = vmatpush3.msra.mxu0 %v1315_v1  ;;  %3018 = vmatprep.subr.mxu1 %v1370_v22  ;;  %v1012_v1 = vrot.slane %v999_v52, %v3354_v9  ;;  %v1676_v22 = vld [vmem:[#allocation7 + $0x4b0] sm:$0xff] }
 0x21c   :  { %2999 = vmatprep.subr.mxu0 %v1330_v2  ;;  %3019 = vmatpush3.msra.mxu1 %v1354_v23  ;;  %v1016_v2 = vrot.slane %v999_v52, %v3357_v10  ;;  %v1678_v23 = vld [vmem:[#allocation7 + $0x4c0] sm:$0xff]  ;;  %v3270_v52 = vmov 0.0  }
 0x21d   :  { %3000 = vmatpush3.msra.mxu0 %v1314_v3  ;;  %3020 = vmatprep.subr.mxu1 %v1369_v25  ;;  %v1652_v25 = vld [vmem:[#allocation7 + $0x3f0] sm:$0xff] }
 0x21e   :  { %3001 = vmatprep.subr.mxu0 %v1329_v4  ;;  %3021 = vmatpush3.msra.mxu1 %v1353_v26  ;;  %v1654_v26 = vld [vmem:[#allocation7 + $0x400] sm:$0xff] }
 0x21f   :  { %3002 = vmatpush3.msra.mxu0 %v1313_v5  ;;  %3022 = vmatprep.subr.mxu1 %v1368_v27  ;;  %v1651_v27 = vld [vmem:[#allocation7 + $0x3e8] sm:$0xff] }
 0x220   :  { %3003 = vmatprep.subr.mxu0 %v1328_v11  ;;  %3023 = vmatpush3.msra.mxu1 %v1352_v47  ;;  %v1653_v47 = vld [vmem:[#allocation7 + $0x3f8] sm:$0xff] }
 0x221   :  { %3004 = vmatpush3.msra.mxu0 %v1312_v44  ;;  %3024 = vmatprep.subr.mxu1 %v1367_v28  ;;  %v1627_v28 = vld [vmem:[#allocation7 + $0x328] sm:$0xff] }
 0x222   :  { %3005 = vmatprep.subr.mxu0 %v1327_v12  ;;  %3025 = vmatpush3.msra.mxu1 %v1351_v29  ;;  %v1629_v29 = vld [vmem:[#allocation7 + $0x338] sm:$0xff] }
 0x223   :  { %3006 = vmatpush3.msra.mxu0 %v1311_v13  ;;  %3026 = vmatprep.subr.mxu1 %v1366_v30  ;;  %v1626_v30 = vld [vmem:[#allocation7 + $0x320] sm:$0xff] }
 0x224   :  { %3007 = vmatprep.subr.mxu0 %v1326_v14  ;;  %3027 = vmatpush3.msra.mxu1 %v1350_v31  ;;  %v1628_v31 = vld [vmem:[#allocation7 + $0x330] sm:$0xff] }
 0x225   :  { %3008 = vmatpush3.msra.mxu0 %v1310_v15  ;;  %3028 = vmatprep.subr.mxu1 %v1365_v32  ;;  %v1602_v32 = vld [vmem:[#allocation7 + $0x260] sm:$0xff] }
 0x226   :  { %3009 = vmatprep.subr.mxu0 %v1325_v16  ;;  %3029 = vmatpush3.msra.mxu1 %v1349_v33  ;;  %v1702_v16 = vld [vmem:[#allocation7 + $0x580] sm:$0xff]  ;;  %v1604_v33 = vld [vmem:[#allocation7 + $0x270] sm:$0xff] }
 0x227   :  { %3010 = vmatpush3.msra.mxu0 %v1309_v17  ;;  %3030 = vmatprep.subr.mxu1 %v1364_v34  ;;  %v1704_v17 = vld [vmem:[#allocation7 + $0x590] sm:$0xff]  ;;  %v1601_v34 = vld [vmem:[#allocation7 + $0x258] sm:$0xff] }
 0x228   :  { %3031 = vmatpush3.msra.mxu1 %v1348_v35  ;;  %1879 = vmatprep.subr.mxu0 %v1702_v16  ;;  %v1603_v35 = vld [vmem:[#allocation7 + $0x268] sm:$0xff]  ;;  %v1633_v16 = vld [vmem:[#allocation7 + $0x358] sm:$0xff] }
 0x229   :  { %3032 = vmatprep.subr.mxu1 %v1363_v36  ;;  %v1577_v36 = vld [vmem:[#allocation7 + $0x198] sm:$0xff] }
 0x22a   :  { %3033 = vmatpush3.msra.mxu1 %v1347_v37  ;;  %v1579_v37 = vld [vmem:[#allocation7 + $0x1a8] sm:$0xff] }
 0x22b   :  { %3034 = vmatprep.subr.mxu1 %v1362_v38  ;;  %v1576_v38 = vld [vmem:[#allocation7 + $0x190] sm:$0xff] }
 0x22c   :  { %3035 = vmatpush3.msra.mxu1 %v1346_v39  ;;  %v1578_v39 = vld [vmem:[#allocation7 + $0x1a0] sm:$0xff] }
 0x22d   :  { %3036 = vmatprep.subr.mxu1 %v1361_v40  ;;  %v1552_v40 = vld [vmem:[#allocation7 + $0xd0] sm:$0xff] }
 0x22e   :  { %3037 = vmatpush3.msra.mxu1 %v1345_v42  ;;  %v1554_v42 = vld [vmem:[#allocation7 + $0xe0] sm:$0xff] }
 0x22f   :  { %3038 = vmatprep.subr.mxu1 %v1360_v43  ;;  %v1551_v43 = vld [vmem:[#allocation7 + $0xc8] sm:$0xff] }
 0x230   :  { %3039 = vmatpush3.msra.mxu1 %v1344_v45  ;;  %v1553_v45 = vld [vmem:[#allocation7 + $0xd8] sm:$0xff] }
 0x231   :  { %3040 = vmatprep.subr.mxu1 %v1359_v46  ;;  %v1527_v46 = vld [vmem:[#allocation7 + $0x8] sm:$0xff] }
 0x232   :  { %3041 = vmatpush3.msra.mxu1 %v1343_v48  ;;  %v1529_v48 = vld [vmem:[#allocation7 + $0x18] sm:$0xff] }
 0x233   :  { %3042 = vmatprep.subr.mxu1 %v1358_v24  ;;  %v1526_v24 = vld [vmem:[#allocation7] sm:$0xff] }
 0x234   :  { %3043 = vmatpush3.msra.mxu1 %v1342_v49  ;;  %v1528_v49 = vld [vmem:[#allocation7 + $0x10] sm:$0xff] }
 0x235   :  { %3044 = vmatprep.subr.mxu1 %v1357_v50  ;;  %v1706_v50 = vld [vmem:[#allocation7 + $0x5a0] sm:$0xff] }
 0x236   :  { %3045 = vmatpush3.msra.mxu1 %v1341_v51  ;;  %v1708_v51 = vld [vmem:[#allocation7 + $0x5b0] sm:$0xff] }
 0x237   :  { %1950 = vmatprep.subr.mxu1 %v1704_v17  ;;  %v1630_v17 = vld [vmem:[#allocation7 + $0x340] sm:$0xff] }
 0x255   :  { %v1087_v53 = vpop.f32.mrf.mxu0 }
 0x256   :  { %v1088_v57 = vadd.f32 %v1087_v53, %v1004_v54 }
 0x257   :  { %v1089_v56 = vpop.f32.mrf.mxu0 }
 0x258   :  { %v1090_v59 = vadd.f32 %v1089_v56, %v1008_v55  ;;  %v2958_v56 = vld [vmem:[%s3723_s8] ss:$0 sm:$0xff] }
 0x295   :  { %v1229_v0 = vpop.f32.mrf.mxu0 }
 0x296   :  { %v1230_v4 = vadd.f32 %v1229_v0, %v1012_v1  ;;  %v1705_v0 = vld [vmem:[#allocation7 + $0x598] sm:$0xff]  ;;  %v1707_v1 = vld [vmem:[#allocation7 + $0x5a8] sm:$0xff] }
 0x297   :  { %v1158_v58 = vpop.f32.mrf.mxu1  ;;  %v1231_v3 = vpop.f32.mrf.mxu0 }
 0x298   :  { %v1159_v60 = vadd.f32 %v1158_v58, %v1088_v57  ;;  %v1232_v11 = vadd.f32 %v1231_v3, %v1016_v2  ;;  %v1681_v3 = vld [vmem:[#allocation7 + $0x4d8] sm:$0xff] }
 0x299   :  { %v1160_v61 = vpop.f32.mrf.mxu1 }
 0x29a   :  { %v1161_v62 = vadd.f32 %v1160_v61, %v1090_v59 }
 0x29c   :  { %3107 = vtanh.f32 %v1161_v62 }
 0x29d   :  { %3109 = vtanh.f32 %v1159_v60 }
 0x2a9   :  { %v3108_v41 = vpop.eup %3107 }
 0x2aa   :  { %v3110_v63 = vpop.eup %3109  ;;  %1444 = vmatprep.mubr.f32.mxu0 %v3108_v41 }
 0x2ab   :  { %1445 = vmatmul.mubr.f32.vlgmr.msra.gmra.mxu0 %v3110_v63 }
 0x2ac   :  { %1880 = vmatpush1.msra.mxu0 %v1701_v18  ;;  %1927 = vmatprep.mubr.f32.mxu0 %v3270_v52  ;;  %v1632_v18 = vld [vmem:[#allocation7 + $0x350] sm:$0xff] }
 0x2ad   :  { %1881 = vmatprep.subr.mxu0 %v1677_v20  ;;  %v1608_v20 = vld [vmem:[#allocation7 + $0x290] sm:$0xff] }
 0x2ae   :  { %1882 = vmatpush1.msra.mxu0 %v1676_v22  ;;  %v1607_v22 = vld [vmem:[#allocation7 + $0x288] sm:$0xff] }
 0x2af   :  { %1883 = vmatprep.subr.mxu0 %v1652_v25  ;;  %v1583_v25 = vld [vmem:[#allocation7 + $0x1c8] sm:$0xff] }
 0x2b0   :  { %1884 = vmatpush1.msra.mxu0 %v1651_v27  ;;  %v1582_v27 = vld [vmem:[#allocation7 + $0x1c0] sm:$0xff] }
 0x2b1   :  { %1885 = vmatprep.subr.mxu0 %v1627_v28  ;;  %v1558_v28 = vld [vmem:[#allocation7 + $0x100] sm:$0xff] }
 0x2b2   :  { %1886 = vmatpush1.msra.mxu0 %v1626_v30  ;;  %v1557_v30 = vld [vmem:[#allocation7 + $0xf8] sm:$0xff] }
 0x2b3   :  { %1887 = vmatprep.subr.mxu0 %v1602_v32  ;;  %v1533_v32 = vld [vmem:[#allocation7 + $0x38] sm:$0xff] }
 0x2b4   :  { %1888 = vmatpush1.msra.mxu0 %v1601_v34  ;;  %v1532_v34 = vld [vmem:[#allocation7 + $0x30] sm:$0xff] }
 0x2b5   :  { %1889 = vmatprep.subr.mxu0 %v1577_v36  ;;  %v1712_v36 = vld [vmem:[#allocation7 + $0x5d0] sm:$0xff] }
 0x2b6   :  { %1890 = vmatpush1.msra.mxu0 %v1576_v38  ;;  %v1711_v38 = vld [vmem:[#allocation7 + $0x5c8] sm:$0xff] }
 0x2b7   :  { %1891 = vmatprep.subr.mxu0 %v1552_v40  ;;  %v1687_v40 = vld [vmem:[#allocation7 + $0x508] sm:$0xff] }
 0x2b8   :  { %1892 = vmatpush1.msra.mxu0 %v1551_v43  ;;  %v1686_v43 = vld [vmem:[#allocation7 + $0x500] sm:$0xff] }
 0x2b9   :  { %1893 = vmatprep.subr.mxu0 %v1527_v46  ;;  %v1662_v46 = vld [vmem:[#allocation7 + $0x440] sm:$0xff] }
 0x2ba   :  { %1894 = vmatpush1.msra.mxu0 %v1526_v24  ;;  %v1661_v24 = vld [vmem:[#allocation7 + $0x438] sm:$0xff] }
 0x2bb   :  { %2021 = vmatprep.subr.mxu0 %v1706_v50  ;;  %v1637_v50 = vld [vmem:[#allocation7 + $0x378] sm:$0xff] }
 0x2d7   :  { %v1300_v5 = vpop.f32.mrf.mxu1 }
 0x2d8   :  { %v1301_v44 = vadd.f32 %v1300_v5, %v1230_v4  ;;  %v1683_v4 = vld [vmem:[#allocation7 + $0x4e8] sm:$0xff]  ;;  %v1680_v5 = vld [vmem:[#allocation7 + $0x4d0] sm:$0xff] }
 0x2d9   :  { %v1302_v12 = vpop.f32.mrf.mxu1 }
 0x2da   :  { %v1303_v13 = vadd.f32 %v1302_v12, %v1232_v11  ;;  %v1682_v11 = vld [vmem:[#allocation7 + $0x4e0] sm:$0xff] }
 0x2db   :  { %v1658_v12 = vld [vmem:[#allocation7 + $0x420] sm:$0xff] }
 0x2dc   :  { %3111 = vtanh.f32 %v1303_v13  ;;  %v1655_v13 = vld [vmem:[#allocation7 + $0x408] sm:$0xff] }
 0x2dd   :  { %3113 = vtanh.f32 %v1301_v44  ;;  %v1656_v44 = vld [vmem:[#allocation7 + $0x410] sm:$0xff] }
 0x2e9   :  { %v3112_v14 = vpop.eup %3111 }
 0x2ea   :  { %v3114_v15 = vpop.eup %3113  ;;  %1514 = vmatprep.mubr.f32.mxu1 %v3112_v14  ;;  %v1657_v14 = vld [vmem:[#allocation7 + $0x418] sm:$0xff] }
 0x2eb   :  { %1515 = vmatmul.mubr.f32.vlgmr.msra.gmra.mxu1 %v3114_v15  ;;  %v1631_v15 = vld [vmem:[#allocation7 + $0x348] sm:$0xff] }
 0x2ec   :  { %1951 = vmatpush1.msra.mxu1 %v1703_v19  ;;  %1998 = vmatprep.mubr.f32.mxu1 %v3270_v52  ;;  %v1606_v19 = vld [vmem:[#allocation7 + $0x280] sm:$0xff] }
 0x2ed   :  { %1952 = vmatprep.subr.mxu1 %v1679_v21  ;;  %v1605_v21 = vld [vmem:[#allocation7 + $0x278] sm:$0xff] }
 0x2ee   :  { %1953 = vmatpush1.msra.mxu1 %v1678_v23  ;;  %v1581_v23 = vld [vmem:[#allocation7 + $0x1b8] sm:$0xff] }
 0x2ef   :  { %1954 = vmatprep.subr.mxu1 %v1654_v26  ;;  %v1580_v26 = vld [vmem:[#allocation7 + $0x1b0] sm:$0xff] }
 0x2f0   :  { %1955 = vmatpush1.msra.mxu1 %v1653_v47  ;;  %v1556_v47 = vld [vmem:[#allocation7 + $0xf0] sm:$0xff] }
 0x2f1   :  { %1956 = vmatprep.subr.mxu1 %v1629_v29  ;;  %v1555_v29 = vld [vmem:[#allocation7 + $0xe8] sm:$0xff] }
 0x2f2   :  { %1957 = vmatpush1.msra.mxu1 %v1628_v31  ;;  %v1531_v31 = vld [vmem:[#allocation7 + $0x28] sm:$0xff] }
 0x2f3   :  { %1958 = vmatprep.subr.mxu1 %v1604_v33  ;;  %v1530_v33 = vld [vmem:[#allocation7 + $0x20] sm:$0xff] }
 0x2f4   :  { %1959 = vmatpush1.msra.mxu1 %v1603_v35  ;;  %v1710_v35 = vld [vmem:[#allocation7 + $0x5c0] sm:$0xff] }
 0x2f5   :  { %1960 = vmatprep.subr.mxu1 %v1579_v37  ;;  %v1709_v37 = vld [vmem:[#allocation7 + $0x5b8] sm:$0xff] }
 0x2f6   :  { %1961 = vmatpush1.msra.mxu1 %v1578_v39  ;;  %v1685_v39 = vld [vmem:[#allocation7 + $0x4f8] sm:$0xff] }
 0x2f7   :  { %1962 = vmatprep.subr.mxu1 %v1554_v42  ;;  %v1684_v42 = vld [vmem:[#allocation7 + $0x4f0] sm:$0xff] }
 0x2f8   :  { %1963 = vmatpush1.msra.mxu1 %v1553_v45  ;;  %v1660_v45 = vld [vmem:[#allocation7 + $0x430] sm:$0xff] }
 0x2f9   :  { %1964 = vmatprep.subr.mxu1 %v1529_v48  ;;  %v1659_v48 = vld [vmem:[#allocation7 + $0x428] sm:$0xff] }
 0x2fa   :  { %1965 = vmatpush1.msra.mxu1 %v1528_v49  ;;  %v1635_v49 = vld [vmem:[#allocation7 + $0x368] sm:$0xff] }
 0x2fb   :  { %2092 = vmatprep.subr.mxu1 %v1708_v51  ;;  %v1634_v51 = vld [vmem:[#allocation7 + $0x360] sm:$0xff] }
 0x36b   :  { %v3011_v53 = vpop.f32.mrf.mxu0 }
 0x36d   :  { %v3012_v54 = vpop.f32.mrf.mxu0 }
 0x36e   :  { %v3013_v55 = vadd.f32 %v3012_v54, %v3011_v53  ;;  %v1636_v53 = vld [vmem:[#allocation7 + $0x370] sm:$0xff]  ;;  %v1610_v54 = vld [vmem:[#allocation7 + $0x2a0] sm:$0xff] }
 0x370   :  { %v1447_v59 = vadd.f32 %v3013_v55, %v2958_v56  ;;  %v1612_v55 = vld [vmem:[#allocation7 + $0x2b0] sm:$0xff]  ;;  %v1609_v56 = vld [vmem:[#allocation7 + $0x298] sm:$0xff] }
 0x3ab   :  { %v3046_v57 = vpop.f32.mrf.mxu1 }
 0x3ad   :  { %v3047_v58 = vpop.f32.mrf.mxu1 }
 0x3ae   :  { %v3048_v60 = vadd.f32 %v3047_v58, %v3046_v57  ;;  %v1611_v57 = vld [vmem:[#allocation7 + $0x2a8] sm:$0xff]  ;;  %v1585_v58 = vld [vmem:[#allocation7 + $0x1d8] sm:$0xff] }
 0x3b0   :  { %v1517_v61 = vadd.f32 %v3048_v60, %v1447_v59  ;;  %v1587_v59 = vld [vmem:[#allocation7 + $0x1e8] sm:$0xff]  ;;  %v1584_v60 = vld [vmem:[#allocation7 + $0x1d0] sm:$0xff] }
 0x3b2   :  { %v2959_v62 = vmul.f32 -1.442695, %v1517_v61  ;;  %v1586_v61 = vld [vmem:[#allocation7 + $0x1e0] sm:$0xff] }
 0x3b4   :  { %3115 = vpow2.f32 %v2959_v62  ;;  %v1560_v62 = vld [vmem:[#allocation7 + $0x110] sm:$0xff] }
 0x3c1   :  { %v3116_v41 = vpop.eup %3115 }
 0x3c2   :  { %v1523_v63 = vadd.f32 1.0, %v3116_v41  ;;  %v1562_v41 = vld [vmem:[#allocation7 + $0x120] sm:$0xff] }
 0x3c4   :  { %3117 = vrcp.f32 %v1523_v63  ;;  %v1559_v63 = vld [vmem:[#allocation7 + $0x108] sm:$0xff] }
 0x3d1   :  { %v3613_v2 = vpop.eup %3117 }
 0x3d2   :  { %2961 = vmatmul.mubr.msk.f32.vlgmr.msra.gmra.mxu0 %vm1859_vm0, %v3613_v2  ;;  %2962 = vmatmul.mubr.msk.f32.vlgmr.msra.gmra.mxu1 %vm1859_vm0, %v3613_v2 }
 0x3d3   :  { %2022 = vmatpush1.msra.mxu0 %v1705_v0  ;;  %2093 = vmatpush1.msra.mxu1 %v1707_v1  ;;  %v1561_v0 = vld [vmem:[#allocation7 + $0x118] sm:$0xff]  ;;  %v1535_v1 = vld [vmem:[#allocation7 + $0x48] sm:$0xff] }
 0x3d4   :  { %2023 = vmatprep.subr.mxu0 %v1681_v3  ;;  %2094 = vmatprep.subr.mxu1 %v1683_v4  ;;  %v1537_v3 = vld [vmem:[#allocation7 + $0x58] sm:$0xff]  ;;  %v1534_v4 = vld [vmem:[#allocation7 + $0x40] sm:$0xff] }
 0x3d5   :  { %2024 = vmatpush1.msra.mxu0 %v1680_v5  ;;  %2095 = vmatpush1.msra.mxu1 %v1682_v11  ;;  %v1536_v5 = vld [vmem:[#allocation7 + $0x50] sm:$0xff]  ;;  %v1714_v11 = vld [vmem:[#allocation7 + $0x5e0] sm:$0xff] }
 0x3d6   :  { %2025 = vmatprep.subr.mxu0 %v1656_v44  ;;  %2096 = vmatprep.subr.mxu1 %v1658_v12  ;;  %v1716_v44 = vld [vmem:[#allocation7 + $0x5f0] sm:$0xff]  ;;  %v1713_v12 = vld [vmem:[#allocation7 + $0x5d8] sm:$0xff] }
 0x3d7   :  { %2026 = vmatpush1.msra.mxu0 %v1655_v13  ;;  %2097 = vmatpush1.msra.mxu1 %v1657_v14  ;;  %v1715_v13 = vld [vmem:[#allocation7 + $0x5e8] sm:$0xff]  ;;  %v1689_v14 = vld [vmem:[#allocation7 + $0x518] sm:$0xff] }
 0x3d8   :  { %2027 = vmatprep.subr.mxu0 %v1631_v15  ;;  %2098 = vmatprep.subr.mxu1 %v1633_v16  ;;  %v1691_v15 = vld [vmem:[#allocation7 + $0x528] sm:$0xff]  ;;  %v1688_v16 = vld [vmem:[#allocation7 + $0x510] sm:$0xff] }
 0x3d9   :  { %2028 = vmatpush1.msra.mxu0 %v1630_v17  ;;  %2099 = vmatpush1.msra.mxu1 %v1632_v18  ;;  %v1690_v17 = vld [vmem:[#allocation7 + $0x520] sm:$0xff]  ;;  %v1664_v18 = vld [vmem:[#allocation7 + $0x450] sm:$0xff] }
 0x3da   :  { %2029 = vmatprep.subr.mxu0 %v1606_v19  ;;  %2100 = vmatprep.subr.mxu1 %v1608_v20  ;;  %v1666_v19 = vld [vmem:[#allocation7 + $0x460] sm:$0xff]  ;;  %v1663_v20 = vld [vmem:[#allocation7 + $0x448] sm:$0xff] }
 0x3db   :  { %2030 = vmatpush1.msra.mxu0 %v1605_v21  ;;  %2101 = vmatpush1.msra.mxu1 %v1607_v22  ;;  %v1665_v21 = vld [vmem:[#allocation7 + $0x458] sm:$0xff]  ;;  %v1639_v22 = vld [vmem:[#allocation7 + $0x388] sm:$0xff] }
 0x3dc   :  { %2031 = vmatprep.subr.mxu0 %v1581_v23  ;;  %2102 = vmatprep.subr.mxu1 %v1583_v25  ;;  %v1641_v23 = vld [vmem:[#allocation7 + $0x398] sm:$0xff]  ;;  %v1638_v25 = vld [vmem:[#allocation7 + $0x380] sm:$0xff] }
 0x3dd   :  { %2032 = vmatpush1.msra.mxu0 %v1580_v26  ;;  %2103 = vmatpush1.msra.mxu1 %v1582_v27  ;;  %v1640_v26 = vld [vmem:[#allocation7 + $0x390] sm:$0xff]  ;;  %v1614_v27 = vld [vmem:[#allocation7 + $0x2c0] sm:$0xff] }
 0x3de   :  { %2033 = vmatprep.subr.mxu0 %v1556_v47  ;;  %2104 = vmatprep.subr.mxu1 %v1558_v28  ;;  %v1616_v47 = vld [vmem:[#allocation7 + $0x2d0] sm:$0xff]  ;;  %v1613_v28 = vld [vmem:[#allocation7 + $0x2b8] sm:$0xff] }
 0x3df   :  { %2034 = vmatpush1.msra.mxu0 %v1555_v29  ;;  %2105 = vmatpush1.msra.mxu1 %v1557_v30  ;;  %v1615_v29 = vld [vmem:[#allocation7 + $0x2c8] sm:$0xff]  ;;  %v1589_v30 = vld [vmem:[#allocation7 + $0x1f8] sm:$0xff] }
 0x3e0   :  { %2035 = vmatprep.subr.mxu0 %v1531_v31  ;;  %2106 = vmatprep.subr.mxu1 %v1533_v32  ;;  %v1591_v31 = vld [vmem:[#allocation7 + $0x208] sm:$0xff]  ;;  %v1588_v32 = vld [vmem:[#allocation7 + $0x1f0] sm:$0xff] }
 0x3e1   :  { %2036 = vmatpush1.msra.mxu0 %v1530_v33  ;;  %2069 = vmatprep.mubr.f32.mxu0 %v3270_v52  ;;  %v1590_v33 = vld [vmem:[#allocation7 + $0x200] sm:$0xff] }
 0x3e2   :  { %2107 = vmatpush1.msra.mxu1 %v1532_v34  ;;  %2140 = vmatprep.mubr.f32.mxu1 %v3270_v52  ;;  %v1564_v34 = vld [vmem:[#allocation7 + $0x130] sm:$0xff] }
 0x3e3   :  { %2963 = vmatmul.mubr.msk.f32.vlgmr.msra.gmra.mxu0 %vm1859_vm0, %v3613_v2  ;;  %2964 = vmatmul.mubr.msk.f32.vlgmr.msra.gmra.mxu1 %vm1859_vm0, %v3613_v2 }
 0x3e4   :  { %2163 = vmatprep.subr.mxu0 %v1710_v35  ;;  %2234 = vmatprep.subr.mxu1 %v1712_v36  ;;  %v1566_v35 = vld [vmem:[#allocation7 + $0x140] sm:$0xff]  ;;  %v1563_v36 = vld [vmem:[#allocation7 + $0x128] sm:$0xff] }
 0x3e5   :  { %2164 = vmatpush1.msra.mxu0 %v1709_v37  ;;  %2235 = vmatpush1.msra.mxu1 %v1711_v38  ;;  %v1565_v37 = vld [vmem:[#allocation7 + $0x138] sm:$0xff]  ;;  %v1539_v38 = vld [vmem:[#allocation7 + $0x68] sm:$0xff] }
 0x3e6   :  { %2165 = vmatprep.subr.mxu0 %v1685_v39  ;;  %2236 = vmatprep.subr.mxu1 %v1687_v40  ;;  %v1541_v39 = vld [vmem:[#allocation7 + $0x78] sm:$0xff]  ;;  %v1538_v40 = vld [vmem:[#allocation7 + $0x60] sm:$0xff] }
 0x3e7   :  { %2166 = vmatpush1.msra.mxu0 %v1684_v42  ;;  %2237 = vmatpush1.msra.mxu1 %v1686_v43  ;;  %v1540_v42 = vld [vmem:[#allocation7 + $0x70] sm:$0xff]  ;;  %v1718_v43 = vld [vmem:[#allocation7 + $0x600] sm:$0xff] }
 0x3e8   :  { %2167 = vmatprep.subr.mxu0 %v1660_v45  ;;  %2238 = vmatprep.subr.mxu1 %v1662_v46  ;;  %v1720_v45 = vld [vmem:[#allocation7 + $0x610] sm:$0xff]  ;;  %v1717_v46 = vld [vmem:[#allocation7 + $0x5f8] sm:$0xff] }
 0x3e9   :  { %2168 = vmatpush1.msra.mxu0 %v1659_v48  ;;  %2239 = vmatpush1.msra.mxu1 %v1661_v24  ;;  %v1719_v48 = vld [vmem:[#allocation7 + $0x608] sm:$0xff]  ;;  %v1693_v24 = vld [vmem:[#allocation7 + $0x538] sm:$0xff] }
 0x3ea   :  { %2169 = vmatprep.subr.mxu0 %v1635_v49  ;;  %2240 = vmatprep.subr.mxu1 %v1637_v50  ;;  %v1695_v49 = vld [vmem:[#allocation7 + $0x548] sm:$0xff]  ;;  %v1692_v50 = vld [vmem:[#allocation7 + $0x530] sm:$0xff] }
 0x3eb   :  { %2170 = vmatpush1.msra.mxu0 %v1634_v51  ;;  %2241 = vmatpush1.msra.mxu1 %v1636_v53  ;;  %v1694_v51 = vld [vmem:[#allocation7 + $0x540] sm:$0xff]  ;;  %v1668_v53 = vld [vmem:[#allocation7 + $0x470] sm:$0xff] }
 0x3ec   :  { %2171 = vmatprep.subr.mxu0 %v1610_v54  ;;  %2242 = vmatprep.subr.mxu1 %v1612_v55  ;;  %v1670_v54 = vld [vmem:[#allocation7 + $0x480] sm:$0xff]  ;;  %v1667_v55 = vld [vmem:[#allocation7 + $0x468] sm:$0xff] }
 0x3ed   :  { %2172 = vmatpush1.msra.mxu0 %v1609_v56  ;;  %2243 = vmatpush1.msra.mxu1 %v1611_v57  ;;  %v1669_v56 = vld [vmem:[#allocation7 + $0x478] sm:$0xff]  ;;  %v1643_v57 = vld [vmem:[#allocation7 + $0x3a8] sm:$0xff] }
 0x3ee   :  { %2173 = vmatprep.subr.mxu0 %v1585_v58  ;;  %2244 = vmatprep.subr.mxu1 %v1587_v59  ;;  %v1645_v58 = vld [vmem:[#allocation7 + $0x3b8] sm:$0xff]  ;;  %v1642_v59 = vld [vmem:[#allocation7 + $0x3a0] sm:$0xff] }
 0x3ef   :  { %2174 = vmatpush1.msra.mxu0 %v1584_v60  ;;  %2245 = vmatpush1.msra.mxu1 %v1586_v61  ;;  %v1644_v60 = vld [vmem:[#allocation7 + $0x3b0] sm:$0xff]  ;;  %v1618_v61 = vld [vmem:[#allocation7 + $0x2e0] sm:$0xff] }
 0x3f0   :  { %2175 = vmatprep.subr.mxu0 %v1560_v62  ;;  %2246 = vmatprep.subr.mxu1 %v1562_v41  ;;  %v1620_v62 = vld [vmem:[#allocation7 + $0x2f0] sm:$0xff]  ;;  %v1617_v41 = vld [vmem:[#allocation7 + $0x2d8] sm:$0xff] }
 0x3f1   :  { %2176 = vmatpush1.msra.mxu0 %v1559_v63  ;;  %2247 = vmatpush1.msra.mxu1 %v1561_v0  ;;  %v1619_v63 = vld [vmem:[#allocation7 + $0x2e8] sm:$0xff]  ;;  %v1593_v0 = vld [vmem:[#allocation7 + $0x218] sm:$0xff] }
 0x3f2   :  { %2177 = vmatprep.subr.mxu0 %v1535_v1  ;;  %2248 = vmatprep.subr.mxu1 %v1537_v3  ;;  %v1595_v1 = vld [vmem:[#allocation7 + $0x228] sm:$0xff]  ;;  %v1592_v3 = vld [vmem:[#allocation7 + $0x210] sm:$0xff] }
 0x3f3   :  { %2178 = vmatpush1.msra.mxu0 %v1534_v4  ;;  %2211 = vmatprep.mubr.f32.mxu0 %v3270_v52  ;;  %v1594_v4 = vld [vmem:[#allocation7 + $0x220] sm:$0xff] }
 0x3f4   :  { %2249 = vmatpush1.msra.mxu1 %v1536_v5  ;;  %2282 = vmatprep.mubr.f32.mxu1 %v3270_v52  ;;  %v1568_v5 = vld [vmem:[#allocation7 + $0x150] sm:$0xff] }
 0x3f5   :  { %2965 = vmatmul.mubr.msk.f32.vlgmr.msra.gmra.mxu0 %vm1859_vm0, %v3613_v2  ;;  %2966 = vmatmul.mubr.msk.f32.vlgmr.msra.gmra.mxu1 %vm1859_vm0, %v3613_v2 }
 0x3f6   :  { %2305 = vmatprep.subr.mxu0 %v1714_v11  ;;  %2376 = vmatprep.subr.mxu1 %v1716_v44  ;;  %v1570_v11 = vld [vmem:[#allocation7 + $0x160] sm:$0xff]  ;;  %v1567_v44 = vld [vmem:[#allocation7 + $0x148] sm:$0xff] }
 0x3f7   :  { %2306 = vmatpush1.msra.mxu0 %v1713_v12  ;;  %2377 = vmatpush1.msra.mxu1 %v1715_v13  ;;  %v1569_v12 = vld [vmem:[#allocation7 + $0x158] sm:$0xff]  ;;  %v1543_v13 = vld [vmem:[#allocation7 + $0x88] sm:$0xff] }
 0x3f8   :  { %2307 = vmatprep.subr.mxu0 %v1689_v14  ;;  %2378 = vmatprep.subr.mxu1 %v1691_v15  ;;  %v1545_v14 = vld [vmem:[#allocation7 + $0x98] sm:$0xff]  ;;  %v1542_v15 = vld [vmem:[#allocation7 + $0x80] sm:$0xff] }
 0x3f9   :  { %2308 = vmatpush1.msra.mxu0 %v1688_v16  ;;  %2379 = vmatpush1.msra.mxu1 %v1690_v17  ;;  %v1544_v16 = vld [vmem:[#allocation7 + $0x90] sm:$0xff]  ;;  %v1722_v17 = vld [vmem:[#allocation7 + $0x620] sm:$0xff] }
 0x3fa   :  { %2309 = vmatprep.subr.mxu0 %v1664_v18  ;;  %2380 = vmatprep.subr.mxu1 %v1666_v19  ;;  %v1724_v18 = vld [vmem:[#allocation7 + $0x630] sm:$0xff]  ;;  %v1721_v19 = vld [vmem:[#allocation7 + $0x618] sm:$0xff] }
 0x3fb   :  { %2310 = vmatpush1.msra.mxu0 %v1663_v20  ;;  %2381 = vmatpush1.msra.mxu1 %v1665_v21  ;;  %v1723_v20 = vld [vmem:[#allocation7 + $0x628] sm:$0xff]  ;;  %v1697_v21 = vld [vmem:[#allocation7 + $0x558] sm:$0xff] }
 0x3fc   :  { %2311 = vmatprep.subr.mxu0 %v1639_v22  ;;  %2382 = vmatprep.subr.mxu1 %v1641_v23  ;;  %v1699_v22 = vld [vmem:[#allocation7 + $0x568] sm:$0xff]  ;;  %v1696_v23 = vld [vmem:[#allocation7 + $0x550] sm:$0xff] }
 0x3fd   :  { %2312 = vmatpush1.msra.mxu0 %v1638_v25  ;;  %2383 = vmatpush1.msra.mxu1 %v1640_v26  ;;  %v1698_v25 = vld [vmem:[#allocation7 + $0x560] sm:$0xff]  ;;  %v1672_v26 = vld [vmem:[#allocation7 + $0x490] sm:$0xff] }
 0x3fe   :  { %2313 = vmatprep.subr.mxu0 %v1614_v27  ;;  %2384 = vmatprep.subr.mxu1 %v1616_v47  ;;  %v1674_v27 = vld [vmem:[#allocation7 + $0x4a0] sm:$0xff]  ;;  %v1671_v47 = vld [vmem:[#allocation7 + $0x488] sm:$0xff] }
 0x3ff   :  { %2314 = vmatpush1.msra.mxu0 %v1613_v28  ;;  %2385 = vmatpush1.msra.mxu1 %v1615_v29  ;;  %v1673_v28 = vld [vmem:[#allocation7 + $0x498] sm:$0xff]  ;;  %v1647_v29 = vld [vmem:[#allocation7 + $0x3c8] sm:$0xff] }
 0x400   :  { %2315 = vmatprep.subr.mxu0 %v1589_v30  ;;  %2386 = vmatprep.subr.mxu1 %v1591_v31  ;;  %v1649_v30 = vld [vmem:[#allocation7 + $0x3d8] sm:$0xff]  ;;  %v1646_v31 = vld [vmem:[#allocation7 + $0x3c0] sm:$0xff] }
 0x401   :  { %2316 = vmatpush1.msra.mxu0 %v1588_v32  ;;  %2387 = vmatpush1.msra.mxu1 %v1590_v33  ;;  %v1648_v32 = vld [vmem:[#allocation7 + $0x3d0] sm:$0xff]  ;;  %v1622_v33 = vld [vmem:[#allocation7 + $0x300] sm:$0xff] }
 0x402   :  { %2317 = vmatprep.subr.mxu0 %v1564_v34  ;;  %2388 = vmatprep.subr.mxu1 %v1566_v35  ;;  %v1624_v34 = vld [vmem:[#allocation7 + $0x310] sm:$0xff]  ;;  %v1621_v35 = vld [vmem:[#allocation7 + $0x2f8] sm:$0xff] }
 0x403   :  { %2318 = vmatpush1.msra.mxu0 %v1563_v36  ;;  %2389 = vmatpush1.msra.mxu1 %v1565_v37  ;;  %v1623_v36 = vld [vmem:[#allocation7 + $0x308] sm:$0xff]  ;;  %v1597_v37 = vld [vmem:[#allocation7 + $0x238] sm:$0xff] }
 0x404   :  { %2319 = vmatprep.subr.mxu0 %v1539_v38  ;;  %2390 = vmatprep.subr.mxu1 %v1541_v39  ;;  %v1599_v38 = vld [vmem:[#allocation7 + $0x248] sm:$0xff]  ;;  %v1596_v39 = vld [vmem:[#allocation7 + $0x230] sm:$0xff] }
 0x405   :  { %2320 = vmatpush1.msra.mxu0 %v1538_v40  ;;  %2353 = vmatprep.mubr.f32.mxu0 %v3270_v52  ;;  %v1598_v40 = vld [vmem:[#allocation7 + $0x240] sm:$0xff] }
 0x406   :  { %2391 = vmatpush1.msra.mxu1 %v1540_v42  ;;  %2424 = vmatprep.mubr.f32.mxu1 %v3270_v52  ;;  %v1572_v42 = vld [vmem:[#allocation7 + $0x170] sm:$0xff] }
 0x407   :  { %2967 = vmatmul.mubr.msk.f32.vlgmr.msra.gmra.mxu0 %vm1859_vm0, %v3613_v2  ;;  %2968 = vmatmul.mubr.msk.f32.vlgmr.msra.gmra.mxu1 %vm1859_vm0, %v3613_v2 }
 0x408   :  { %2447 = vmatprep.subr.mxu0 %v1718_v43  ;;  %2518 = vmatprep.subr.mxu1 %v1720_v45  ;;  %v1574_v43 = vld [vmem:[#allocation7 + $0x180] sm:$0xff]  ;;  %v1571_v45 = vld [vmem:[#allocation7 + $0x168] sm:$0xff] }
 0x409   :  { %2448 = vmatpush1.msra.mxu0 %v1717_v46  ;;  %2519 = vmatpush1.msra.mxu1 %v1719_v48  ;;  %v1573_v46 = vld [vmem:[#allocation7 + $0x178] sm:$0xff]  ;;  %v1547_v48 = vld [vmem:[#allocation7 + $0xa8] sm:$0xff] }
 0x40a   :  { %2449 = vmatprep.subr.mxu0 %v1693_v24  ;;  %2520 = vmatprep.subr.mxu1 %v1695_v49  ;;  %v1549_v24 = vld [vmem:[#allocation7 + $0xb8] sm:$0xff]  ;;  %v1546_v49 = vld [vmem:[#allocation7 + $0xa0] sm:$0xff] }
 0x40b   :  { %2450 = vmatpush1.msra.mxu0 %v1692_v50  ;;  %2521 = vmatpush1.msra.mxu1 %v1694_v51  ;;  %v1548_v50 = vld [vmem:[#allocation7 + $0xb0] sm:$0xff]  ;;  %v1725_v51 = vld [vmem:[#allocation7 + $0x638] sm:$0xff] }
 0x40c   :  { %2451 = vmatprep.subr.mxu0 %v1668_v53  ;;  %2522 = vmatprep.subr.mxu1 %v1670_v54  ;;  %v1700_v53 = vld [vmem:[#allocation7 + $0x570] sm:$0xff]  ;;  %v1675_v54 = vld [vmem:[#allocation7 + $0x4a8] sm:$0xff] }
 0x40d   :  { %2452 = vmatpush1.msra.mxu0 %v1667_v55  ;;  %2523 = vmatpush1.msra.mxu1 %v1669_v56  ;;  %v1650_v55 = vld [vmem:[#allocation7 + $0x3e0] sm:$0xff]  ;;  %v1625_v56 = vld [vmem:[#allocation7 + $0x318] sm:$0xff] }
 0x40e   :  { %2453 = vmatprep.subr.mxu0 %v1643_v57  ;;  %2524 = vmatprep.subr.mxu1 %v1645_v58  ;;  %v1600_v57 = vld [vmem:[#allocation7 + $0x250] sm:$0xff]  ;;  %v1575_v58 = vld [vmem:[#allocation7 + $0x188] sm:$0xff] }
 0x40f   :  { %2454 = vmatpush1.msra.mxu0 %v1642_v59  ;;  %2525 = vmatpush1.msra.mxu1 %v1644_v60  ;;  %v1550_v59 = vld [vmem:[#allocation7 + $0xc0] sm:$0xff] }
 0x410   :  { %2455 = vmatprep.subr.mxu0 %v1618_v61  ;;  %2526 = vmatprep.subr.mxu1 %v1620_v62  ;;  %v1726_v61 = vld [vmem:[%s3725_s10] sm:$0xff] }
 0x411   :  { %2456 = vmatpush1.msra.mxu0 %v1617_v41  ;;  %2527 = vmatpush1.msra.mxu1 %v1619_v63  ;;  %v1749_v62 = vrot.slane %v1726_v61, %v3357_v10  ;;  %v3665_v41 = vsub.s32 4, %v3345_v6  ;;  %v3668_v63 = vsub.s32 6, %v3345_v6 }
 0x412   :  { %2457 = vmatprep.subr.mxu0 %v1593_v0  ;;  %2528 = vmatprep.subr.mxu1 %v1595_v1 }
 0x413   :  { %2458 = vmatpush1.msra.mxu0 %v1592_v3  ;;  %2529 = vmatpush1.msra.mxu1 %v1594_v4  ;;  %v3672_v3 = vsub.s32 7, %v3345_v6 }
 0x414   :  { %2459 = vmatprep.subr.mxu0 %v1568_v5  ;;  %2530 = vmatprep.subr.mxu1 %v1570_v11  ;;  %v1753_v5 = vrot.slane %v1726_v61, %v3665_v41  ;;  %v1761_v11 = vrot.slane %v1726_v61, %v3668_v63 }
 0x415   :  { %2460 = vmatpush1.msra.mxu0 %v1567_v44  ;;  %2531 = vmatpush1.msra.mxu1 %v1569_v12 }
 0x416   :  { %2461 = vmatprep.subr.mxu0 %v1543_v13  ;;  %2532 = vmatprep.subr.mxu1 %v1545_v14  ;;  %v1765_v13 = vrot.slane %v1726_v61, %v3672_v3 }
 0x417   :  { %2462 = vmatpush1.msra.mxu0 %v1542_v15  ;;  %2495 = vmatprep.mubr.f32.mxu0 %v3270_v52 }
 0x418   :  { %2533 = vmatpush1.msra.mxu1 %v1544_v16  ;;  %2566 = vmatprep.mubr.f32.mxu1 %v3270_v52 }
 0x419   :  { %2969 = vmatmul.mubr.msk.f32.vlgmr.msra.gmra.mxu0 %vm1859_vm0, %v3613_v2  ;;  %2970 = vmatmul.mubr.msk.f32.vlgmr.msra.gmra.mxu1 %vm1859_vm0, %v3613_v2 }
 0x41a   :  { %2589 = vmatprep.subr.mxu0 %v1722_v17  ;;  %2660 = vmatprep.subr.mxu1 %v1724_v18 }
 0x41b   :  { %2590 = vmatpush1.msra.mxu0 %v1721_v19  ;;  %2661 = vmatpush1.msra.mxu1 %v1723_v20 }
 0x41c   :  { %2591 = vmatprep.subr.mxu0 %v1697_v21  ;;  %2662 = vmatprep.subr.mxu1 %v1699_v22 }
 0x41d   :  { %2592 = vmatpush1.msra.mxu0 %v1696_v23  ;;  %2663 = vmatpush1.msra.mxu1 %v1698_v25 }
 0x41e   :  { %2593 = vmatprep.subr.mxu0 %v1672_v26  ;;  %2664 = vmatprep.subr.mxu1 %v1674_v27 }
 0x41f   :  { %2594 = vmatpush1.msra.mxu0 %v1671_v47  ;;  %2665 = vmatpush1.msra.mxu1 %v1673_v28  ;;  %v3679_v47 = vsub.s32 5, %v3345_v6  ;;  %v1727_v6 = vld [vmem:[%s3725_s10 + $0x8] sm:$0xff] }
 0x420   :  { %2595 = vmatprep.subr.mxu0 %v1647_v29  ;;  %2666 = vmatprep.subr.mxu1 %v1649_v30 }
 0x421   :  { %2596 = vmatpush1.msra.mxu0 %v1646_v31  ;;  %2667 = vmatpush1.msra.mxu1 %v1648_v32 }
 0x422   :  { %2597 = vmatprep.subr.mxu0 %v1622_v33  ;;  %2668 = vmatprep.subr.mxu1 %v1624_v34 }
 0x423   :  { %2598 = vmatpush1.msra.mxu0 %v1621_v35  ;;  %2669 = vmatpush1.msra.mxu1 %v1623_v36 }
 0x424   :  { %2599 = vmatprep.subr.mxu0 %v1597_v37  ;;  %2670 = vmatprep.subr.mxu1 %v1599_v38  ;;  %v1757_v37 = vrot.slane %v1726_v61, %v3679_v47 }
 0x425   :  { %2600 = vmatpush1.msra.mxu0 %v1596_v39  ;;  %2671 = vmatpush1.msra.mxu1 %v1598_v40  ;;  %v1745_v40 = vrot.slane %v1726_v61, %v3354_v9 }
 0x426   :  { %2601 = vmatprep.subr.mxu0 %v1572_v42  ;;  %2672 = vmatprep.subr.mxu1 %v1574_v43  ;;  %v1769_v43 = vrot.slane %v1727_v6, %v3348_v7 }
 0x427   :  { %2602 = vmatpush1.msra.mxu0 %v1571_v45  ;;  %2673 = vmatpush1.msra.mxu1 %v1573_v46  ;;  %v1777_v45 = vrot.slane %v1727_v6, %v3354_v9 }
 0x428   :  { %2603 = vmatprep.subr.mxu0 %v1547_v48  ;;  %2674 = vmatprep.subr.mxu1 %v1549_v24  ;;  %v1773_v48 = vrot.slane %v1727_v6, %v3351_v8  ;;  %v1781_v24 = vrot.slane %v1727_v6, %v3357_v10 }
 0x429   :  { %2604 = vmatpush1.msra.mxu0 %v1546_v49  ;;  %2637 = vmatprep.mubr.f32.mxu0 %v3270_v52 }
 0x42a   :  { %2675 = vmatpush1.msra.mxu1 %v1548_v50  ;;  %2708 = vmatprep.mubr.f32.mxu1 %v3270_v52 }
 0x42b   :  { %2971 = vmatmul.mubr.msk.f32.vlgmr.msra.gmra.mxu0 %vm1859_vm0, %v3613_v2  ;;  %2972 = vmatmul.mubr.msk.f32.vlgmr.msra.gmra.mxu1 %vm1859_vm0, %v3613_v2 }
 0x42c   :  { %3058 = vmatprep.subr.mxu0 %v3270_v52  ;;  %3074 = vmatprep.mubr.msk.f32.mxu0 %vm3271_vm1, %v3270_v52 }
 0x42d   :  { %3059 = vmatpush3.msra.mxu0 %v1725_v51 }
 0x42e   :  { %3060 = vmatprep.subr.mxu0 %v3270_v52 }
 0x42f   :  { %3061 = vmatpush3.msra.mxu0 %v1700_v53 }
 0x430   :  { %3062 = vmatprep.subr.mxu0 %v3270_v52 }
 0x431   :  { %3063 = vmatpush3.msra.mxu0 %v1675_v54 }
 0x432   :  { %3064 = vmatprep.subr.mxu0 %v3270_v52 }
 0x433   :  { %3065 = vmatpush3.msra.mxu0 %v1650_v55 }
 0x434   :  { %3066 = vmatprep.subr.mxu0 %v3270_v52 }
 0x435   :  { %3067 = vmatpush3.msra.mxu0 %v1625_v56 }
 0x436   :  { %3068 = vmatprep.subr.mxu0 %v3270_v52 }
 0x437   :  { %3069 = vmatpush3.msra.mxu0 %v1600_v57 }
 0x438   :  { %3070 = vmatprep.subr.mxu0 %v3270_v52 }
 0x439   :  { %3071 = vmatpush3.msra.mxu0 %v1575_v58 }
 0x43a   :  { %3072 = vmatprep.subr.mxu0 %v3270_v52  ;;  %v1737_v52 = vrot.slane %v1726_v61, %v3348_v7 }
 0x43b   :  { %3073 = vmatpush3.msra.mxu0 %v1550_v59 }
 0x43c   :  { %3075 = vmatmul.mubr.msk.f32.vlgmr.msra.gmra.mxu0 %vm1859_vm0, %v3613_v2  ;;  %v1741_v2 = vrot.slane %v1726_v61, %v3351_v8 }
 0x492   :  { %v2000_v60 = vpop.f32.mrf.mxu1  ;;  %v1929_v0 = vpop.f32.mrf.mxu0 }
 0x493   :  { %v1930_v12 = vadd.f32 %v1929_v0, %v1737_v52  ;;  %v2001_v46 = vadd.f32 %v2000_v60, %v1745_v40 }
 0x494   :  { %v2002_v1 = vpop.f32.mrf.mxu1  ;;  %v1931_v44 = vpop.f32.mrf.mxu0 }
 0x495   :  { %v2003_v4 = vadd.f32 %v2002_v1, %v1749_v62  ;;  %v1932_v16 = vadd.f32 %v1931_v44, %v1741_v2 }
 0x497   :  { %v2785_v17 = vmax.f32 %v1930_v12, %v2003_v4 }
 0x4a3   :  { %v2071_v14 = vpop.f32.mrf.mxu0  ;;  %v2142_v15 = vpop.f32.mrf.mxu1 }
 0x4a4   :  { %v2072_v18 = vadd.f32 %v2071_v14, %v1753_v5  ;;  %v2143_v19 = vadd.f32 %v2142_v15, %v1761_v11 }
 0x4a5   :  { %v2144_v20 = vpop.f32.mrf.mxu1  ;;  %v2073_v39 = vpop.f32.mrf.mxu0 }
 0x4a6   :  { %v2786_v21 = vmax.f32 %v1932_v16, %v2072_v18  ;;  %v2788_v22 = vmax.f32 %v2785_v17, %v2143_v19  ;;  %v2145_v23 = vadd.f32 %v2144_v20, %v1765_v13  ;;  %v2074_v42 = vadd.f32 %v2073_v39, %v1757_v37 }
 0x4a7   :  { %v1785_v17 = vrot.slane %v1727_v6, %v3665_v41  ;;  %v1797_v20 = vrot.slane %v1727_v6, %v3672_v3 }
 0x4a8   :  { %v2791_v25 = vsub.f32 %v1930_v12, %v2788_v22  ;;  %v2800_v26 = vsub.f32 %v2003_v4, %v2788_v22  ;;  %v2809_v27 = vsub.f32 %v2143_v19, %v2788_v22  ;;  %v2789_v28 = vmax.f32 %v2786_v21, %v2145_v23 }
 0x4a9   :  { %v2787_v51 = vmax.f32 %v2001_v46, %v2074_v42  ;;  %v1789_v19 = vrot.slane %v1727_v6, %v3679_v47 }
 0x4aa   :  { %v2794_v29 = vmul.f32 1.442695, %v2791_v25  ;;  %v2803_v30 = vmul.f32 1.442695, %v2800_v26  ;;  %v2812_v31 = vmul.f32 1.442695, %v2809_v27  ;;  %v2792_v32 = vsub.f32 %v1932_v16, %v2789_v28 }
 0x4ab   :  { %v2801_v33 = vsub.f32 %v2072_v18, %v2789_v28  ;;  %v2810_v34 = vsub.f32 %v2145_v23, %v2789_v28  ;;  %v1793_v18 = vrot.slane %v1727_v6, %v3668_v63 }
 0x4ac   :  { %3119 = vpow2.f32 %v2794_v29  ;;  %v2796_v35 = vmul.f32 1.442695, %v2792_v32 }
 0x4ad   :  { %3121 = vpow2.f32 %v2803_v30  ;;  %v2805_v36 = vmul.f32 1.442695, %v2801_v33  ;;  %v2814_v38 = vmul.f32 1.442695, %v2810_v34 }
 0x4ae   :  { %3123 = vpow2.f32 %v2812_v31 }
 0x4af   :  { %3125 = vpow2.f32 %v2796_v35 }
 0x4b0   :  { %3127 = vpow2.f32 %v2805_v36 }
 0x4b1   :  { %3129 = vpow2.f32 %v2814_v38 }
 0x4b5   :  { %v2213_v49 = vpop.f32.mrf.mxu0  ;;  %v2284_v50 = vpop.f32.mrf.mxu1 }
 0x4b6   :  { %v2214_v53 = vadd.f32 %v2213_v49, %v1769_v43  ;;  %v2285_v54 = vadd.f32 %v2284_v50, %v1777_v45 }
 0x4b7   :  { %v2215_v55 = vpop.f32.mrf.mxu0  ;;  %v2286_v56 = vpop.f32.mrf.mxu1 }
 0x4b8   :  { %v2790_v57 = vmax.f32 %v2787_v51, %v2214_v53  ;;  %2846 = vst [vmem:[#allocation8 + $0x50] sm:$0xff] %v2285_v54  ;;  %v2216_v58 = vadd.f32 %v2215_v55, %v1773_v48  ;;  %v2287_v59 = vadd.f32 %v2286_v56, %v1781_v24 }
 0x4b9   :  { %v3120_v61 = vpop.eup %3119 }
 0x4ba   :  { %v3122_v62 = vpop.eup %3121  ;;  %v2793_v0 = vsub.f32 %v2001_v46, %v2790_v57  ;;  %v2802_v1 = vsub.f32 %v2074_v42, %v2790_v57  ;;  %v2811_v60 = vsub.f32 %v2214_v53, %v2790_v57  ;;  %2845 = vst [vmem:[#allocation8 + $0x48] sm:$0xff] %v2216_v58  ;;  %2847 = vst [vmem:[#allocation8 + $0x58] sm:$0xff] %v2287_v59  ;;  %v1728_v46 = vld [vmem:[%s3725_s10 + $0x10] sm:$0xff] }
 0x4bb   :  { %v3124_v52 = vpop.eup %3123  ;;  %v2818_v2 = vadd.f32 %v3122_v62, %v3120_v61  ;;  %v1801_v48 = vrot.slane %v1728_v46, %v3348_v7  ;;  %v1809_v24 = vrot.slane %v1728_v46, %v3354_v9  ;;  %v1805_v53 = vrot.slane %v1728_v46, %v3351_v8 }
 0x4bc   :  { %v3126_v4 = vpop.eup %3125  ;;  %v2798_v5 = vmul.f32 1.442695, %v2793_v0  ;;  %v2807_v11 = vmul.f32 1.442695, %v2802_v1  ;;  %v2816_v13 = vmul.f32 1.442695, %v2811_v60  ;;  %v1813_v54 = vrot.slane %v1728_v46, %v3357_v10 }
 0x4bd   :  { %v3128_v44 = vpop.eup %3127  ;;  %v2821_v12 = vadd.f32 %v3124_v52, %v2818_v2 }
 0x4be   :  { %v2819_v14 = vadd.f32 %v3128_v44, %v3126_v4  ;;  %3131 = vpow2.f32 %v2798_v5  ;;  %v3130_v15 = vpop.eup %3129  ;;  %v1825_v5 = vrot.slane %v1728_v46, %v3668_v63 }
 0x4bf   :  { %3133 = vrcp.f32 %v2821_v12  ;;  %v1821_v12 = vrot.slane %v1728_v46, %v3679_v47 }
 0x4c0   :  { %v2822_v16 = vadd.f32 %v3130_v15, %v2819_v14  ;;  %3135 = vpow2.f32 %v2807_v11 }
 0x4c1   :  { %3137 = vpow2.f32 %v2816_v13 }
 0x4c2   :  { %3139 = vrcp.f32 %v2822_v16  ;;  %v1829_v16 = vrot.slane %v1728_v46, %v3672_v3 }
 0x4c7   :  { %v2355_v21 = vpop.f32.mrf.mxu0  ;;  %v2426_v22 = vpop.f32.mrf.mxu1 }
 0x4c8   :  { %v2356_v23 = vadd.f32 %v2355_v21, %v1785_v17  ;;  %v2427_v25 = vadd.f32 %v2426_v22, %v1793_v18 }
 0x4c9   :  { %v2357_v26 = vpop.f32.mrf.mxu0  ;;  %v2428_v27 = vpop.f32.mrf.mxu1 }
 0x4ca   :  { %2848 = vst [vmem:[#allocation8 + $0x60] sm:$0xff] %v2356_v23  ;;  %v2974_v28 = vmul.f32 -1.442695, %v2427_v25  ;;  %v2358_v29 = vadd.f32 %v2357_v26, %v1789_v19  ;;  %v2429_v30 = vadd.f32 %v2428_v27, %v1797_v20 }
 0x4cb   :  { %v3132_v31 = vpop.eup %3131 }
 0x4cc   :  { %v3134_v32 = vpop.eup %3133  ;;  %3141 = vpow2.f32 %v2974_v28  ;;  %2849 = vst [vmem:[#allocation8 + $0x68] sm:$0xff] %v2358_v29  ;;  %v2975_v33 = vmul.f32 -1.442695, %v2429_v30 }
 0x4cd   :  { %v3136_v34 = vpop.eup %3135  ;;  %v2827_v35 = vmul.f32 %v3134_v32, %v3120_v61  ;;  %v2833_v36 = vmul.f32 %v3134_v32, %v3122_v62  ;;  %v2839_v37 = vmul.f32 %v3134_v32, %v3124_v52 }
 0x4ce   :  { %v3138_v38 = vpop.eup %3137  ;;  %v2820_v39 = vadd.f32 %v3136_v34, %v3132_v31  ;;  %3143 = vpow2.f32 %v2975_v33  ;;  %v2960_v33 = vld [vmem:[%s3725_s10 + $0x18] ss:$0 sm:$0xff]  ;;  %s3272_s10 = smov [#allocation8]  }
 0x4cf   :  { %v3140_v6 = vpop.eup %3139  ;;  %2830 = vst [vmem:[#allocation8] sm:$0xff] %v2827_v35  ;;  %2836 = vst [vmem:[#allocation8 + $0x18] sm:$0xff] %v2833_v36  ;;  %s2947_s27 = sshll.u32 %s3272_s10, 4  ;;  %s2948_s27 = int_to_ptr.vmem [resolvable:$true] %s2947_s27 }
 0x4d0   :  { %2842 = vst [vmem:[#allocation8 + $0x30] sm:$0xff] %v2839_v37  ;;  %v2828_v40 = vmul.f32 %v3140_v6, %v3126_v4  ;;  %v2834_v42 = vmul.f32 %v3140_v6, %v3128_v44  ;;  %v2840_v43 = vmul.f32 %v3140_v6, %v3130_v15  ;;  %v2823_v45 = vadd.f32 %v3138_v38, %v2820_v39  ;;  %s3235_s28 = scalar_lea.vmem %s2948_s27, 3200  ;;  %p3240_p2 = scmp.lt.s32.totalorder %s2948_s27, %s2948_s27 }
 0x4d1   :  { %v1817_v4 = vrot.slane %v1728_v46, %v3665_v41  ;;  %p3236_p1 = scmp.ne.s32.totalorder %s2948_s27, %s3235_s28  ;;  %p3241_p3 = scmp.lt.s32.totalorder %s3235_s28, %s3235_s28 }
 0x4d2   :  { %2831 = vst [vmem:[#allocation8 + $0x8] sm:$0xff] %v2828_v40  ;;  %2837 = vst [vmem:[#allocation8 + $0x20] sm:$0xff] %v2834_v42  ;;  %3145 = vrcp.f32 %v2823_v45 }
 0x4d3   :  { %2843 = vst [vmem:[#allocation8 + $0x38] sm:$0xff] %v2840_v43  ;;  %p3242_p4 = por %p3241_p3, %p3240_p2 }
 0x4d5   :  { %p3243_p5 = pnand %p3242_p4, %p3236_p1 }
 0x4d9   :  { %v3142_v49 = vpop.eup %3141  ;;  %v2497_v50 = vpop.f32.mrf.mxu0 }
 0x4da   :  { %v2568_v51 = vpop.f32.mrf.mxu1  ;;  %v2865_v55 = vadd.f32 1.0, %v3142_v49  ;;  %v2498_v56 = vadd.f32 %v2497_v50, %v1801_v48 }
 0x4db   :  { %v2569_v57 = vadd.f32 %v2568_v51, %v1809_v24  ;;  %v3144_v58 = vpop.eup %3143  ;;  %v2499_v59 = vpop.f32.mrf.mxu0 }
 0x4dc   :  { %v2570_v61 = vpop.f32.mrf.mxu1  ;;  %3147 = vrcp.f32 %v2865_v55  ;;  %v2866_v62 = vadd.f32 1.0, %v3144_v58  ;;  %v2976_v0 = vmul.f32 -1.442695, %v2498_v56  ;;  %v2500_v7 = vadd.f32 %v2499_v59, %v1805_v53 }
 0x4dd   :  { %v2978_v1 = vmul.f32 -1.442695, %v2569_v57  ;;  %v2571_v60 = vadd.f32 %v2570_v61, %v1813_v54 }
 0x4de   :  { %3149 = vrcp.f32 %v2866_v62  ;;  %v2977_v52 = vmul.f32 -1.442695, %v2500_v7 }
 0x4df   :  { %v3146_v9 = vpop.eup %3145  ;;  %3151 = vpow2.f32 %v2976_v0  ;;  %2890 = vst [vmem:[#allocation8 + $0x98] sm:$0xff] %v2571_v60 }
 0x4e0   :  { %v2829_v8 = vmul.f32 %v3146_v9, %v3132_v31  ;;  %v2835_v2 = vmul.f32 %v3146_v9, %v3136_v34  ;;  %v2841_v10 = vmul.f32 %v3146_v9, %v3138_v38  ;;  %3153 = vpow2.f32 %v2978_v1 }
 0x4e1   :  { %3155 = vpow2.f32 %v2977_v52 }
 0x4e2   :  { %2832 = vst [vmem:[#allocation8 + $0x10] sm:$0xff] %v2829_v8  ;;  %2838 = vst [vmem:[#allocation8 + $0x28] sm:$0xff] %v2835_v2 }
 0x4e3   :  { %2844 = vst [vmem:[#allocation8 + $0x40] sm:$0xff] %v2841_v10 }
 0x4e9   :  { %v3148_v11 = vpop.eup %3147 }
 0x4ea   :  { %v2880_v44 = vmul.f32 0.8, %v3148_v11 }
 0x4eb   :  { %v3150_v13 = vpop.eup %3149  ;;  %v2639_v14 = vpop.f32.mrf.mxu0 }
 0x4ec   :  { %v2710_v15 = vpop.f32.mrf.mxu1  ;;  %v3152_v17 = vpop.eup %3151  ;;  %2885 = vst [vmem:[#allocation8 + $0x70] sm:$0xff] %v2880_v44  ;;  %v2881_v18 = vmul.f32 0.8, %v3150_v13  ;;  %v2640_v19 = vadd.f32 %v2639_v14, %v1817_v4 }
 0x4ed   :  { %v3705_v20 = vadd.f32 %v2710_v15, %v1825_v5  ;;  %v3154_v21 = vpop.eup %3153  ;;  %v2867_v22 = vadd.f32 1.0, %v3152_v17  ;;  %v2641_v41 = vpop.f32.mrf.mxu0 }
 0x4ee   :  { %v2712_v23 = vpop.f32.mrf.mxu1  ;;  %v3156_v63 = vpop.eup %3155  ;;  %2886 = vst [vmem:[#allocation8 + $0x78] sm:$0xff] %v2881_v18  ;;  %v2869_v25 = vadd.f32 1.0, %v3154_v21  ;;  %2891 = vst [vmem:[#allocation8 + $0xa0] sm:$0xff] %v2640_v19  ;;  %v2642_v26 = vadd.f32 %v2641_v41, %v1821_v12 }
 0x4ef   :  { %v2893_v47 = vand.u32 2147483647, %v3705_v20  ;;  %3157 = vrcp.f32 %v2867_v22  ;;  %v2868_v27 = vadd.f32 1.0, %v3156_v63  ;;  %v2713_v3 = vadd.f32 %v2712_v23, %v1829_v16 }
 0x4f0   :  { %3159 = vrcp.f32 %v2869_v25  ;;  %2892 = vst [vmem:[#allocation8 + $0xa8] sm:$0xff] %v2642_v26  ;;  %v2932_v0 = vmax.f32 %v3705_v20, 0.0 }
 0x4f1   :  { %v2896_v28 = vsub.f32 0.0, %v2893_v47  ;;  %3161 = vrcp.f32 %v2868_v27  ;;  %v2894_v29 = vand.u32 2147483647, %v2713_v3  ;;  %v2933_v2 = vmax.f32 %v2713_v3, 0.0 }
 0x4f3   :  { %v2899_v30 = vmul.f32 1.442695, %v2896_v28  ;;  %v2897_v31 = vsub.f32 0.0, %v2894_v29 }
 0x4f5   :  { %3163 = vpow2.f32 %v2899_v30  ;;  %v2901_v32 = vmul.f32 1.442695, %v2897_v31 }
 0x4f7   :  { %3165 = vpow2.f32 %v2901_v32 }
 0x4fc   :  { %v3158_v34 = vpop.eup %3157  ;;  %v2781_v35 = vpop.f32.mrf.mxu0 }
 0x4fd   :  { %v3160_v36 = vpop.eup %3159  ;;  %v2882_v37 = vmul.f32 0.8, %v3158_v34  ;;  %v2782_v38 = vadd.f32 %v2960_v33, %v2781_v35 }
 0x4fe   :  { %v3162_v39 = vpop.eup %3161  ;;  %v2884_v6 = vmul.f32 0.8, %v3160_v36  ;;  %v3076_v40 = vpop.f32.mrf.mxu0 }
 0x4ff   :  { %2887 = vst [vmem:[#allocation8 + $0x80] sm:$0xff] %v2882_v37  ;;  %v2883_v42 = vmul.f32 0.8, %v3162_v39  ;;  %v2895_v43 = vand.u32 2147483647, %v2782_v38  ;;  %v2934_v15 = vmax.f32 %v2782_v38, 0.0 }
 0x500   :  { %2889 = vst [vmem:[#allocation8 + $0x90] sm:$0xff] %v2884_v6 }
 0x501   :  { %2888 = vst [vmem:[#allocation8 + $0x88] sm:$0xff] %v2883_v42  ;;  %v2898_v46 = vsub.f32 0.0, %v2895_v43 }
 0x502   :  { %v3164_v45 = vpop.eup %3163 }
 0x503   :  { %v2905_v48 = vadd.f32 1.0, %v3164_v45  ;;  %v2903_v24 = vmul.f32 1.442695, %v2898_v46  ;;  %v2908_v51 = vmul.f32 -0.5, %v3164_v45  ;;  %v2911_v55 = vand.u32 2147483647, %v3164_v45 }
 0x504   :  { %v3166_v49 = vpop.eup %3165 }
 0x505   :  { %3167 = vlog2.f32 %v2905_v48  ;;  %v2914_v50 = vadd.f32 1.0, %v3166_v49  ;;  %v2917_v53 = vmul.f32 -0.5, %v3166_v49  ;;  %v2909_v54 = vadd.f32 1.0, %v2908_v51 }
 0x506   :  { %3169 = vpow2.f32 %v2903_v24  ;;  %v2920_v62 = vand.u32 2147483647, %v3166_v49  ;;  %vm2912_vm2 = vcmp.lt.f32.partialorder %v2911_v55, 0.0004427343 }
 0x507   :  { %3171 = vlog2.f32 %v2914_v50  ;;  %v2918_v57 = vadd.f32 1.0, %v2917_v53  ;;  %v2910_v61 = vmul.f32 %v3164_v45, %v2909_v54 }
 0x508   :  { %vm2921_vm3 = vcmp.lt.f32.partialorder %v2920_v62, 0.0004427343 }
 0x509   :  { %v2919_v8 = vmul.f32 %v3166_v49, %v2918_v57 }
 0x512   :  { %v3168_v56 = vpop.eup %3167 }
 0x513   :  { %v3170_v58 = vpop.eup %3169  ;;  %v2907_v59 = vmul.f32 0.6931472, %v3168_v56 }
 0x514   :  { %v2923_v1 = vadd.f32 1.0, %v3170_v58  ;;  %v3172_v7 = vpop.eup %3171  ;;  %v2926_v5 = vmul.f32 -0.5, %v3170_v58  ;;  %v2929_v44 = vand.u32 2147483647, %v3170_v58 }
 0x515   :  { %v2913_v60 = vsel %vm2912_vm2, %v2910_v61, %v2907_v59  ;;  %v2916_v52 = vmul.f32 0.6931472, %v3172_v7 }
 0x516   :  { %v2935_v9 = vadd.f32 %v2932_v0, %v2913_v60  ;;  %3173 = vlog2.f32 %v2923_v1  ;;  %v2927_v11 = vadd.f32 1.0, %v2926_v5  ;;  %vm2930_vm4 = vcmp.lt.f32.partialorder %v2929_v44, 0.0004427343 }
 0x517   :  { %v2922_v10 = vsel %vm2921_vm3, %v2919_v8, %v2916_v52 }
 0x518   :  { %2938 = vst [vmem:[#allocation8 + $0xb0] sm:$0xff] %v2935_v9  ;;  %v2936_v4 = vadd.f32 %v2933_v2, %v2922_v10  ;;  %v2928_v14 = vmul.f32 %v3170_v58, %v2927_v11 }
 0x51a   :  { %2939 = vst [vmem:[#allocation8 + $0xb8] sm:$0xff] %v2936_v4 }
 0x523   :  { %v3174_v12 = vpop.eup %3173 }
 0x524   :  { %v2925_v13 = vmul.f32 0.6931472, %v3174_v12 }
 0x526   :  { %v2931_v16 = vsel %vm2930_vm4, %v2928_v14, %v2925_v13 }
 0x527   :  { %v2937_v17 = vadd.f32 %v2934_v15, %v2931_v16 }
 0x529   :  { %2940 = vst [vmem:[#allocation8 + $0xc0] sm:$0xff] %v2937_v17 }
 0x52a   :  { %3246 = shalt.err (!%p3243_p5)
}
 0x52b   :  { %2950 = dma.vmem_to_hbm [thread:$0]  %s2948_s27, 3200, %s3726_s11, [#allocation4]  }
 0x52c   :  { %3259 = dma.done.wait [#allocation4], 3200  }
 0x52d   :  { %3260 = vsyncadd [#allocation4], 4294964096 }
 0x52e   :  { %2954 = vsyncpa [#allocation3], 1 }
 0x52f   :  { %2955 = vsyncpa [#allocation6], 1 }
 0x530   :  { %2956 = vsyncpa [#allocation4], 1 }

</bundles_post_ra>
